<compile_context>
chip_gen: v5e
topology: v5e:2x2
jax: 0.10.0
libtpu: 0.0.40
codegen_flags: <defaults>
</compile_context>

<pallas_src>
import functools

import jax
import jax.numpy as jnp
from jax.experimental import pallas as pl
from jax.experimental.pallas import tpu as pltpu


def _gru_decoder_kernel(x_ref, g_ref, wih0_ref, whh0_ref, wih1_ref, whh1_ref,
                        wlin_h_ref, wlin_a_ref, a2_ref, b2_ref, out_ref, pre_buf,
                        *, eps, seq_len, unroll):
    """One grid step == one batch tile; the whole T recurrence runs inside."""
    cdt = wih0_ref.dtype                       # MXU compute dtype (bf16 by default)
    H = whh0_ref.shape[0]
    tb = g_ref.shape[1]
    E = x_ref.shape[-1]

    # Weights / LN params loaded from VMEM once for the whole sequence.
    wih0 = wih0_ref[...]                       # (E, 3H)  fused [r | z | n]
    whh0 = whh0_ref[...]                       # (H, 3H)
    wih1 = wih1_ref[...]                       # (H, 3H)
    whh1 = whh1_ref[...]                       # (H, 3H)
    wlin_h = wlin_h_ref[...]                   # (H, H)   rows of Wlin hit by h_prev0
    wlin_a = wlin_a_ref[...]                   # (H, H)   rows of Wlin hit by h_
    a2 = a2_ref[...].astype(jnp.float32)       # (1, H)
    b2 = b2_ref[...].astype(jnp.float32)       # (1, H)

    # ---- hoisted layer-0 input projection (time-independent work, out of the loop) ----
    if tb % 8 == 0:
        # one full-occupancy matmul over all timesteps of the tile
        x2d = x_ref[...].reshape(seq_len * tb, E)                        # (T*tb, E)
        pre_all = jnp.dot(x2d, wih0, preferred_element_type=jnp.float32)  # (T*tb, 3H) f32
        pre_buf[...] = pre_all.reshape(seq_len, tb, 3 * H)
    else:
        # sublane-unaligned batch tile: keep the projection hoisted (no serial dependency)
        # but compute it per step to avoid an unaligned relayout/reshape.
        @pl.loop(0, seq_len)
        def _(t):
            pre_buf[t] = jnp.dot(x_ref[t], wih0, preferred_element_type=jnp.float32)

    h0 = g_ref[0].astype(jnp.float32)          # (tb, H) layer-0 hidden carry (f32)
    h1 = g_ref[1].astype(jnp.float32)          # (tb, H) layer-1 hidden carry (f32)

    inv_nm1 = 1.0 / (H - 1)                    # unbiased-std divisor

    def gru_gates(pre_x, pre_h, hid):
        # pre_x, pre_h: (tb, 3H) fused pre-activations in f32; hid: (tb, H) f32.
        r = jax.nn.sigmoid(pre_x[:, :H] + pre_h[:, :H])
        z = jax.nn.sigmoid(pre_x[:, H:2 * H] + pre_h[:, H:2 * H])
        n = jnp.tanh(pre_x[:, 2 * H:] + r * pre_h[:, 2 * H:])
        return (1.0 - z) * n + z * hid

    def step(t, carry):
        h0, h1 = carry
        h0c = h0.astype(cdt)

        # ---- gru_l0: input projection precomputed, only the hidden dot per step ----
        pre_h0 = jnp.dot(h0c, whh0, preferred_element_type=jnp.float32)
        g0 = gru_gates(pre_buf[t], pre_h0, h0)                 # (tb, H) f32

        # ---- gru_l1 ----
        g0c = g0.astype(cdt)
        pre_x1 = jnp.dot(g0c, wih1, preferred_element_type=jnp.float32)
        pre_h1 = jnp.dot(h1.astype(cdt), whh1, preferred_element_type=jnp.float32)
        g1 = gru_gates(pre_x1, pre_h1, h1)                     # (tb, H) f32

        # dropout(p=0) -> identity; attn() returns its h input unchanged -> g1.
        # TODO(synk): attn's bmm+softmax is dead code in the original module (its result
        # is discarded); it is intentionally not computed here, so L is unused.
        h_att = g1

        # new h[0] = tanh(Linear(cat([h_prev0, h_att])))  -- no lane concat:
        # two accumulated dots against the two H-row halves of Wlin.
        lin = jnp.dot(h0c, wlin_h, preferred_element_type=jnp.float32)
        lin = lin + jnp.dot(h_att.astype(cdt), wlin_a, preferred_element_type=jnp.float32)
        h0_new = jnp.tanh(lin)                                 # (tb, H) f32, pre-norm carry

        # ---- fused custom LayerNorm on the fresh rows (unbiased std, eps on the std) ----
        mean = jnp.mean(h0_new, axis=-1, keepdims=True)
        diff = h0_new - mean
        std = jnp.sqrt(jnp.sum(diff * diff, axis=-1, keepdims=True) * inv_nm1)
        inv = pl.reciprocal(std + eps, approx=True)            # EUP vrcp, slack slot
        out_ref[t] = (a2 * (diff * inv) + b2).astype(out_ref.dtype)

        return (h0_new, g1)

    jax.lax.fori_loop(0, seq_len, step, (h0, h1), unroll=unroll)


def _padded_bytes(shape, dtype):
    """Upper-bound VMEM bytes for a buffer: minor two dims rounded to the (8, 128) tile."""
    itemsize = jnp.dtype(dtype).itemsize
    dims = (1, 1) + tuple(int(d) for d in shape)
    lead, sub, lane = dims[:-2], dims[-2], dims[-1]
    sub = -(-sub // 8) * 8
    lane = -(-lane // 128) * 128
    n = sub * lane
    for d in lead:
        n *= d
    return n * itemsize


def gru_decoder_forward(X, G, L, params, eps=1e-6,
                        compute_dtype=jnp.bfloat16, b_tile=None):
    """X: (B, T, E), G: (2, B, H), L: (B, N, H) (unused -- attn is dead code).

    compute_dtype: dtype fed to the MXU (bf16 default; pass jnp.float32 for exact f32).
    b_tile: batch tile size for the (parallel) grid axis.  Default: two tiles of B//2 when
            that is a multiple of 8 (v7x megacore), else one tile covering the batch.
            A tile must divide B and be either the full batch or a multiple of 8.
    """
    del L  # attn() discards the attention result; L has no effect on the output
    wih0, whh0, wih1, whh1, wlin, a2, b2 = params
    B, T, E = X.shape
    H = G.shape[-1]

    if b_tile is None:
        b_tile = B // 2 if (B % 16 == 0) else B
    tb = int(b_tile)
    assert B % tb == 0, "b_tile must divide B"
    assert tb == B or tb % 8 == 0, "b_tile must be the full batch or a multiple of 8"

    # TODO(synk): remove the wrapper-side transposes (extra HBM pass, mainly a v5e cost)
    # via native-layout dynamic sublane indexing in-kernel.
    Xt = jnp.transpose(X, (1, 0, 2)).astype(compute_dtype)     # (T, B, E) time-major
    Gf = G.astype(jnp.float32)
    cd = lambda w: w.astype(compute_dtype)
    wlin_h, wlin_a = wlin[:H], wlin[H:]        # split so the kernel avoids a lane concat
    a2f = a2.astype(jnp.float32).reshape(1, H)
    b2f = b2.astype(jnp.float32).reshape(1, H)

    unroll = next(u for u in (8, 4, 2, 1) if T % u == 0)
    kernel = functools.partial(_gru_decoder_kernel, eps=eps, seq_len=T, unroll=unroll)

    # ---- scoped-VMEM budget: padded working set (x2 for the default double buffering) ----
    dbl = 2
    work = (dbl * _padded_bytes((T, tb, E), compute_dtype)          # X block
            + dbl * _padded_bytes((2, tb, H), jnp.float32)          # G block
            + dbl * (_padded_bytes((E, 3 * H), compute_dtype)       # grid-invariant weights
                     + 3 * _padded_bytes((H, 3 * H), compute_dtype)
                     + 2 * _padded_bytes((H, H), compute_dtype)
                     + 2 * _padded_bytes((1, H), jnp.float32))
            + dbl * _padded_bytes((T, tb, H), jnp.float32)          # out block
            + _padded_bytes((T, tb, 3 * H), jnp.float32))           # pre_x0 scratch
    vmem_limit = int(min(max(int(work * 1.5) + (4 << 20), 32 << 20), 100 << 20))

    out_t = pl.pallas_call(
        kernel,
        out_shape=jax.ShapeDtypeStruct((T, B, H), jnp.float32),
        grid_spec=pltpu.PrefetchScalarGridSpec(
            num_scalar_prefetch=0,
            grid=(B // tb,),                                        # independent batch tiles
            in_specs=[
                pl.BlockSpec((T, tb, E), lambda b: (0, b, 0)),      # X (time-major)
                pl.BlockSpec((2, tb, H), lambda b: (0, b, 0)),      # G (initial hidden)
                pl.BlockSpec((E, 3 * H), lambda b: (0, 0)),         # wih0 fused [r|z|n]
                pl.BlockSpec((H, 3 * H), lambda b: (0, 0)),         # whh0
                pl.BlockSpec((H, 3 * H), lambda b: (0, 0)),         # wih1
                pl.BlockSpec((H, 3 * H), lambda b: (0, 0)),         # whh1
                pl.BlockSpec((H, H), lambda b: (0, 0)),             # Wlin rows for h_prev0
                pl.BlockSpec((H, H), lambda b: (0, 0)),             # Wlin rows for h_
                pl.BlockSpec((1, H), lambda b: (0, 0)),             # LayerNorm a_2
                pl.BlockSpec((1, H), lambda b: (0, 0)),             # LayerNorm b_2
            ],
            out_specs=pl.BlockSpec((T, tb, H), lambda b: (0, b, 0)),
            scratch_shapes=[pltpu.VMEM((T, tb, 3 * H), jnp.float32)],  # hoisted pre_x0
        ),
        compiler_params=pltpu.CompilerParams(
            dimension_semantics=("parallel",),      # batch tiles independent (v7x megacore)
            vmem_limit_bytes=vmem_limit),
    )(Xt, Gf, cd(wih0), cd(whh0), cd(wih1), cd(whh1), cd(wlin_h), cd(wlin_a), a2f, b2f)

    return jnp.transpose(out_t, (1, 0, 2))                          # (B, T, H)


def reference_forward(X, G, L, params, eps=1e-6, compute_dtype=jnp.bfloat16):
    """Pure-JAX reference mirroring the PyTorch forward (attn == identity on h) with the
    same MXU dtype policy as the kernel (bf16 operands, f32 accumulation)."""
    del L
    wih0, whh0, wih1, whh1, wlin, a2, b2 = params
    B, T, E = X.shape
    H = G.shape[-1]
    c = lambda a: a.astype(compute_dtype)

    def cell(inp, hid, wih, whh):
        px = jnp.dot(c(inp), c(wih), preferred_element_type=jnp.float32)
        ph = jnp.dot(c(hid), c(whh), preferred_element_type=jnp.float32)
        r = jax.nn.sigmoid(px[:, :H] + ph[:, :H])
        z = jax.nn.sigmoid(px[:, H:2 * H] + ph[:, H:2 * H])
        n = jnp.tanh(px[:, 2 * H:] + r * ph[:, 2 * H:])
        return (1.0 - z) * n + z * hid

    h0, h1 = G[0].astype(jnp.float32), G[1].astype(jnp.float32)
    outs = []
    for t in range(T):
        x = X[:, t, :]
        g0 = cell(x, h0, wih0, whh0)
        g1 = cell(g0, h1, wih1, whh1)
        hcat = jnp.concatenate([c(h0), c(g1)], axis=-1)
        h0_new = jnp.tanh(jnp.dot(hcat, c(wlin), preferred_element_type=jnp.float32))
        outs.append(h0_new)
        h0, h1 = h0_new, g1
    out = jnp.stack(outs, axis=1)                                   # (B, T, H)
    mean = out.mean(-1, keepdims=True)
    std = jnp.sqrt(jnp.sum((out - mean) ** 2, -1, keepdims=True) / (out.shape[-1] - 1))
    return a2 * (out - mean) / (std + eps) + b2


def init_params(key, n_embs, hidden_size):
    """Deterministic init matching the module's parameter shapes, stored fused:

    GRUCell weight_ih/(hh) (3H, in) are stored transposed + gate-fused as (in, 3H) with
    gate order [r, z, n]; Linear(2H, H).weight (H, 2H) is stored transposed as (2H, H) so
    cat([h0, h_]) @ wlin reproduces the PyTorch Linear exactly.
    """
    H, E = hidden_size, n_embs
    k = 1.0 / jnp.sqrt(jnp.float32(H))
    keys = jax.random.split(key, 5)
    u = lambda kk, shape: jax.random.uniform(kk, shape, jnp.float32, -k, k)
    wih0 = u(keys[0], (E, 3 * H))
    whh0 = u(keys[1], (H, 3 * H))
    wih1 = u(keys[2], (H, 3 * H))
    whh1 = u(keys[3], (H, 3 * H))
    wlin = u(keys[4], (2 * H, H))
    a2 = jnp.ones((1, H), jnp.float32)      # LayerNorm.a_2
    b2 = jnp.zeros((1, H), jnp.float32)     # LayerNorm.b_2
    return (wih0, whh0, wih1, whh1, wlin, a2, b2)


if __name__ == "__main__":
    # small shapes: batch=8 (sublane-aligned tile), seq=8, n_embs=16, hidden=32, N=4
    B, T, E, H, N = 8, 8, 16, 32, 4

    key = jax.random.PRNGKey(0)
    kx, kg, kl, kp = jax.random.split(key, 4)
    X = jax.random.normal(kx, (B, T, E), jnp.float32)
    G = jax.random.normal(kg, (2, B, H), jnp.float32)
    L = jax.random.normal(kl, (B, N, H), jnp.float32)
    params = init_params(kp, E, H)

    out = jax.block_until_ready(gru_decoder_forward(X, G, L, params))
    ref = jax.block_until_ready(reference_forward(X, G, L, params))

    assert out.shape == (B, T, H)
    # tolerance covers the EUP approximate-reciprocal in the fused LayerNorm epilogue
    # (the reference uses an exact divide; matmul dtype policy is identical).
    err = float(jnp.max(jnp.abs(out - ref)))
    assert jnp.allclose(out, ref, rtol=5e-3, atol=5e-3), f"mismatch vs ref (max abs {err})"

    print("KERNEL_OK")
</pallas_src>

<mosaic_0001>
module attributes {stable_mosaic.version = 11 : i64} {
  func.func @_gru_decoder_kernel(%arg0: i32, %arg1: memref<8x8x16xbf16, #tpu.memory_space<vmem>>, %arg2: memref<2x8x32xf32, #tpu.memory_space<vmem>>, %arg3: memref<16x96xbf16, #tpu.memory_space<vmem>>, %arg4: memref<32x96xbf16, #tpu.memory_space<vmem>>, %arg5: memref<32x96xbf16, #tpu.memory_space<vmem>>, %arg6: memref<32x96xbf16, #tpu.memory_space<vmem>>, %arg7: memref<32x32xbf16, #tpu.memory_space<vmem>>, %arg8: memref<32x32xbf16, #tpu.memory_space<vmem>>, %arg9: memref<1x32xf32, #tpu.memory_space<vmem>>, %arg10: memref<1x32xf32, #tpu.memory_space<vmem>>, %arg11: memref<8x8x32xf32, #tpu.memory_space<vmem>>, %arg12: memref<8x8x96xf32, #tpu.memory_space<vmem>>) attributes {dimension_semantics = [#tpu.dimension_semantics<parallel>], iteration_bounds = array<i64: 1>, scalar_prefetch = 0 : i64, scratch_operands = 1 : i64, tpu.core_type = #tpu.core_type<tc>, window_params = [{transform_indices = @transform_0, window_bounds = array<i64: 8, 8, 16>}, {transform_indices = @transform_1, window_bounds = array<i64: 2, 8, 32>}, {pipeline_mode = #tpu.pipeline_mode<synchronous>, transform_indices = @transform_2, window_bounds = array<i64: 16, 96>}, {pipeline_mode = #tpu.pipeline_mode<synchronous>, transform_indices = @transform_3, window_bounds = array<i64: 32, 96>}, {pipeline_mode = #tpu.pipeline_mode<synchronous>, transform_indices = @transform_4, window_bounds = array<i64: 32, 96>}, {pipeline_mode = #tpu.pipeline_mode<synchronous>, transform_indices = @transform_5, window_bounds = array<i64: 32, 96>}, {pipeline_mode = #tpu.pipeline_mode<synchronous>, transform_indices = @transform_6, window_bounds = array<i64: 32, 32>}, {pipeline_mode = #tpu.pipeline_mode<synchronous>, transform_indices = @transform_7, window_bounds = array<i64: 32, 32>}, {pipeline_mode = #tpu.pipeline_mode<synchronous>, transform_indices = @transform_8, window_bounds = array<i64: 1, 32>}, {pipeline_mode = #tpu.pipeline_mode<synchronous>, transform_indices = @transform_9, window_bounds = array<i64: 1, 32>}, {transform_indices = @transform_10, window_bounds = array<i64: 8, 8, 32>}]} {
    %c0 = arith.constant 0 : index
    %c0_0 = arith.constant 0 : index
    %0 = vector.load %arg3[%c0, %c0_0] : memref<16x96xbf16, #tpu.memory_space<vmem>>, vector<16x96xbf16>
    %c0_1 = arith.constant 0 : index
    %c0_2 = arith.constant 0 : index
    %1 = vector.load %arg4[%c0_1, %c0_2] : memref<32x96xbf16, #tpu.memory_space<vmem>>, vector<32x96xbf16>
    %c0_3 = arith.constant 0 : index
    %c0_4 = arith.constant 0 : index
    %2 = vector.load %arg5[%c0_3, %c0_4] : memref<32x96xbf16, #tpu.memory_space<vmem>>, vector<32x96xbf16>
    %c0_5 = arith.constant 0 : index
    %c0_6 = arith.constant 0 : index
    %3 = vector.load %arg6[%c0_5, %c0_6] : memref<32x96xbf16, #tpu.memory_space<vmem>>, vector<32x96xbf16>
    %c0_7 = arith.constant 0 : index
    %c0_8 = arith.constant 0 : index
    %4 = vector.load %arg7[%c0_7, %c0_8] : memref<32x32xbf16, #tpu.memory_space<vmem>>, vector<32x32xbf16>
    %c0_9 = arith.constant 0 : index
    %c0_10 = arith.constant 0 : index
    %5 = vector.load %arg8[%c0_9, %c0_10] : memref<32x32xbf16, #tpu.memory_space<vmem>>, vector<32x32xbf16>
    %c0_11 = arith.constant 0 : index
    %c0_12 = arith.constant 0 : index
    %6 = vector.load %arg9[%c0_11, %c0_12] : memref<1x32xf32, #tpu.memory_space<vmem>>, vector<1x32xf32>
    %c0_13 = arith.constant 0 : index
    %c0_14 = arith.constant 0 : index
    %7 = vector.load %arg10[%c0_13, %c0_14] : memref<1x32xf32, #tpu.memory_space<vmem>>, vector<1x32xf32>
    %c0_15 = arith.constant 0 : index
    %c0_16 = arith.constant 0 : index
    %c0_17 = arith.constant 0 : index
    %8 = vector.load %arg1[%c0_15, %c0_16, %c0_17] : memref<8x8x16xbf16, #tpu.memory_space<vmem>>, vector<8x8x16xbf16>
    %9 = vector.shape_cast %8 : vector<8x8x16xbf16> to vector<64x16xbf16>
    %cst = arith.constant dense<0.000000e+00> : vector<64x96xf32>
    %10 = tpu.matmul %9, %0, %cst {dimension_numbers = #tpu.dot_dimension_numbers<[1], [0], [0], [1], [0, 0, 1, 1], [], []>} : vector<64x16xbf16>, vector<16x96xbf16>, vector<64x96xf32> -> vector<64x96xf32>
    %11 = vector.shape_cast %10 : vector<64x96xf32> to vector<8x8x96xf32>
    %c0_18 = arith.constant 0 : index
    %c0_19 = arith.constant 0 : index
    %c0_20 = arith.constant 0 : index
    %12 = vector.load %arg12[%c0_18, %c0_19, %c0_20] : memref<8x8x96xf32, #tpu.memory_space<vmem>>, vector<8x8x96xf32>
    tpu.vector_store %arg12[%c0_18, %c0_19, %c0_20], %11 {strides = array<i32>} : memref<8x8x96xf32, #tpu.memory_space<vmem>>, vector<8x8x96xf32>,
    %c0_21 = arith.constant 0 : index
    %c0_22 = arith.constant 0 : index
    %c0_23 = arith.constant 0 : index
    %13 = vector.load %arg2[%c0_21, %c0_22, %c0_23] : memref<2x8x32xf32, #tpu.memory_space<vmem>>, vector<1x8x32xf32>
    %14 = vector.shape_cast %13 : vector<1x8x32xf32> to vector<8x32xf32>
    %c1 = arith.constant 1 : index
    %c0_24 = arith.constant 0 : index
    %c0_25 = arith.constant 0 : index
    %15 = vector.load %arg2[%c1, %c0_24, %c0_25] : memref<2x8x32xf32, #tpu.memory_space<vmem>>, vector<1x8x32xf32>
    %16 = vector.shape_cast %15 : vector<1x8x32xf32> to vector<8x32xf32>
    %c0_i32 = arith.constant 0 : i32
    %17 = arith.truncf %14 : vector<8x32xf32> to vector<8x32xbf16>
    %cst_26 = arith.constant dense<0.000000e+00> : vector<8x96xf32>
    %18 = tpu.matmul %17, %1, %cst_26 {dimension_numbers = #tpu.dot_dimension_numbers<[1], [0], [0], [1], [0, 0, 1, 1], [], []>} : vector<8x32xbf16>, vector<32x96xbf16>, vector<8x96xf32> -> vector<8x96xf32>
    %19 = arith.index_cast %c0_i32 : i32 to index
    %c0_27 = arith.constant 0 : index
    %c0_28 = arith.constant 0 : index
    %20 = vector.load %arg12[%19, %c0_27, %c0_28] : memref<8x8x96xf32, #tpu.memory_space<vmem>>, vector<1x8x96xf32>
    %21 = vector.shape_cast %20 : vector<1x8x96xf32> to vector<8x96xf32>
    %22 = vector.extract_strided_slice %21 {offsets = [0, 0], sizes = [8, 32], strides = [1, 1]} : vector<8x96xf32> to vector<8x32xf32>
    %23 = vector.extract_strided_slice %18 {offsets = [0, 0], sizes = [8, 32], strides = [1, 1]} : vector<8x96xf32> to vector<8x32xf32>
    %24 = arith.addf %22, %23 : vector<8x32xf32>
    %25 = arith.negf %24 : vector<8x32xf32>
    %26 = math.exp %25 : vector<8x32xf32>
    %cst_29 = arith.constant 1.000000e+00 : f32
    %27 = vector.broadcast %cst_29 : f32 to vector<8x32xf32>
    %28 = arith.addf %27, %26 : vector<8x32xf32>
    %29 = arith.divf %27, %28 : vector<8x32xf32>
    %30 = vector.extract_strided_slice %21 {offsets = [0, 32], sizes = [8, 32], strides = [1, 1]} : vector<8x96xf32> to vector<8x32xf32>
    %31 = vector.extract_strided_slice %18 {offsets = [0, 32], sizes = [8, 32], strides = [1, 1]} : vector<8x96xf32> to vector<8x32xf32>
    %32 = arith.addf %30, %31 : vector<8x32xf32>
    %33 = arith.negf %32 : vector<8x32xf32>
    %34 = math.exp %33 : vector<8x32xf32>
    %cst_30 = arith.constant 1.000000e+00 : f32
    %35 = vector.broadcast %cst_30 : f32 to vector<8x32xf32>
    %36 = arith.addf %35, %34 : vector<8x32xf32>
    %37 = arith.divf %35, %36 : vector<8x32xf32>
    %38 = vector.extract_strided_slice %21 {offsets = [0, 64], sizes = [8, 32], strides = [1, 1]} : vector<8x96xf32> to vector<8x32xf32>
    %39 = vector.extract_strided_slice %18 {offsets = [0, 64], sizes = [8, 32], strides = [1, 1]} : vector<8x96xf32> to vector<8x32xf32>
    %40 = arith.mulf %29, %39 : vector<8x32xf32>
    %41 = arith.addf %38, %40 : vector<8x32xf32>
    %42 = math.tanh %41 : vector<8x32xf32>
    %cst_31 = arith.constant 1.000000e+00 : f32
    %43 = vector.broadcast %cst_31 : f32 to vector<8x32xf32>
    %44 = arith.subf %43, %37 : vector<8x32xf32>
    %45 = arith.mulf %44, %42 : vector<8x32xf32>
    %46 = arith.mulf %37, %14 : vector<8x32xf32>
    %47 = arith.addf %45, %46 : vector<8x32xf32>
    %48 = arith.truncf %47 : vector<8x32xf32> to vector<8x32xbf16>
    %cst_32 = arith.constant dense<0.000000e+00> : vector<8x96xf32>
    %49 = tpu.matmul %48, %2, %cst_32 {dimension_numbers = #tpu.dot_dimension_numbers<[1], [0], [0], [1], [0, 0, 1, 1], [], []>} : vector<8x32xbf16>, vector<32x96xbf16>, vector<8x96xf32> -> vector<8x96xf32>
    %50 = arith.truncf %16 : vector<8x32xf32> to vector<8x32xbf16>
    %cst_33 = arith.constant dense<0.000000e+00> : vector<8x96xf32>
    %51 = tpu.matmul %50, %3, %cst_33 {dimension_numbers = #tpu.dot_dimension_numbers<[1], [0], [0], [1], [0, 0, 1, 1], [], []>} : vector<8x32xbf16>, vector<32x96xbf16>, vector<8x96xf32> -> vector<8x96xf32>
    %52 = vector.extract_strided_slice %49 {offsets = [0, 0], sizes = [8, 32], strides = [1, 1]} : vector<8x96xf32> to vector<8x32xf32>
    %53 = vector.extract_strided_slice %51 {offsets = [0, 0], sizes = [8, 32], strides = [1, 1]} : vector<8x96xf32> to vector<8x32xf32>
    %54 = arith.addf %52, %53 : vector<8x32xf32>
    %55 = arith.negf %54 : vector<8x32xf32>
    %56 = math.exp %55 : vector<8x32xf32>
    %cst_34 = arith.constant 1.000000e+00 : f32
    %57 = vector.broadcast %cst_34 : f32 to vector<8x32xf32>
    %58 = arith.addf %57, %56 : vector<8x32xf32>
    %59 = arith.divf %57, %58 : vector<8x32xf32>
    %60 = vector.extract_strided_slice %49 {offsets = [0, 32], sizes = [8, 32], strides = [1, 1]} : vector<8x96xf32> to vector<8x32xf32>
    %61 = vector.extract_strided_slice %51 {offsets = [0, 32], sizes = [8, 32], strides = [1, 1]} : vector<8x96xf32> to vector<8x32xf32>
    %62 = arith.addf %60, %61 : vector<8x32xf32>
    %63 = arith.negf %62 : vector<8x32xf32>
    %64 = math.exp %63 : vector<8x32xf32>
    %cst_35 = arith.constant 1.000000e+00 : f32
    %65 = vector.broadcast %cst_35 : f32 to vector<8x32xf32>
    %66 = arith.addf %65, %64 : vector<8x32xf32>
    %67 = arith.divf %65, %66 : vector<8x32xf32>
    %68 = vector.extract_strided_slice %49 {offsets = [0, 64], sizes = [8, 32], strides = [1, 1]} : vector<8x96xf32> to vector<8x32xf32>
    %69 = vector.extract_strided_slice %51 {offsets = [0, 64], sizes = [8, 32], strides = [1, 1]} : vector<8x96xf32> to vector<8x32xf32>
    %70 = arith.mulf %59, %69 : vector<8x32xf32>
    %71 = arith.addf %68, %70 : vector<8x32xf32>
    %72 = math.tanh %71 : vector<8x32xf32>
    %cst_36 = arith.constant 1.000000e+00 : f32
    %73 = vector.broadcast %cst_36 : f32 to vector<8x32xf32>
    %74 = arith.subf %73, %67 : vector<8x32xf32>
    %75 = arith.mulf %74, %72 : vector<8x32xf32>
    %76 = arith.mulf %67, %16 : vector<8x32xf32>
    %77 = arith.addf %75, %76 : vector<8x32xf32>
    %cst_37 = arith.constant dense<0.000000e+00> : vector<8x32xf32>
    %78 = tpu.matmul %17, %4, %cst_37 {dimension_numbers = #tpu.dot_dimension_numbers<[1], [0], [0], [1], [0, 0, 1, 1], [], []>} : vector<8x32xbf16>, vector<32x32xbf16>, vector<8x32xf32> -> vector<8x32xf32>
    %79 = arith.truncf %77 : vector<8x32xf32> to vector<8x32xbf16>
    %cst_38 = arith.constant dense<0.000000e+00> : vector<8x32xf32>
    %80 = tpu.matmul %79, %5, %cst_38 {dimension_numbers = #tpu.dot_dimension_numbers<[1], [0], [0], [1], [0, 0, 1, 1], [], []>} : vector<8x32xbf16>, vector<32x32xbf16>, vector<8x32xf32> -> vector<8x32xf32>
    %81 = arith.addf %78, %80 : vector<8x32xf32>
    %82 = math.tanh %81 : vector<8x32xf32>
    %cst_39 = arith.constant dense<0.000000e+00> : vector<8xf32>
    %83 = vector.multi_reduction <add>, %82, %cst_39 [1] : vector<8x32xf32> to vector<8xf32>
    %84 = vector.shape_cast %83 : vector<8xf32> to vector<8x1xf32>
    %cst_40 = arith.constant 3.200000e+01 : f32
    %85 = vector.broadcast %cst_40 : f32 to vector<8x1xf32>
    %86 = arith.divf %84, %85 : vector<8x1xf32>
    %87 = vector.broadcast %86 : vector<8x1xf32> to vector<8x32xf32>
    %88 = arith.subf %82, %87 : vector<8x32xf32>
    %89 = arith.mulf %88, %88 : vector<8x32xf32>
    %cst_41 = arith.constant dense<0.000000e+00> : vector<8xf32>
    %90 = vector.multi_reduction <add>, %89, %cst_41 [1] : vector<8x32xf32> to vector<8xf32>
    %91 = vector.shape_cast %90 : vector<8xf32> to vector<8x1xf32>
    %cst_42 = arith.constant 0.0322580636 : f32
    %92 = vector.broadcast %cst_42 : f32 to vector<8x1xf32>
    %93 = arith.mulf %91, %92 : vector<8x1xf32>
    %94 = math.sqrt %93 : vector<8x1xf32>
    %cst_43 = arith.constant 9.99999997E-7 : f32
    %95 = vector.broadcast %cst_43 : f32 to vector<8x1xf32>
    %96 = arith.addf %94, %95 : vector<8x1xf32>
    %97 = tpu.reciprocal %96 {approx = true} : vector<8x1xf32> -> vector<8x1xf32>
    %98 = vector.broadcast %97 : vector<8x1xf32> to vector<8x32xf32>
    %99 = arith.mulf %88, %98 : vector<8x32xf32>
    %100 = vector.broadcast %6 : vector<1x32xf32> to vector<8x32xf32>
    %101 = arith.mulf %100, %99 : vector<8x32xf32>
    %102 = vector.broadcast %7 : vector<1x32xf32> to vector<8x32xf32>
    %103 = arith.addf %101, %102 : vector<8x32xf32>
    %104 = arith.index_cast %c0_i32 : i32 to index
    %c0_44 = arith.constant 0 : index
    %c0_45 = arith.constant 0 : index
    %105 = vector.load %arg11[%104, %c0_44, %c0_45] : memref<8x8x32xf32, #tpu.memory_space<vmem>>, vector<1x8x32xf32>
    %106 = vector.shape_cast %105 : vector<1x8x32xf32> to vector<8x32xf32>
    %107 = vector.shape_cast %103 : vector<8x32xf32> to vector<1x8x32xf32>
    tpu.vector_store %arg11[%104, %c0_44, %c0_45], %107 {strides = array<i32>} : memref<8x8x32xf32, #tpu.memory_space<vmem>>, vector<1x8x32xf32>,
    %c1_i32 = arith.constant 1 : i32
    %108 = arith.truncf %82 : vector<8x32xf32> to vector<8x32xbf16>
    %cst_46 = arith.constant dense<0.000000e+00> : vector<8x96xf32>
    %109 = tpu.matmul %108, %1, %cst_46 {dimension_numbers = #tpu.dot_dimension_numbers<[1], [0], [0], [1], [0, 0, 1, 1], [], []>} : vector<8x32xbf16>, vector<32x96xbf16>, vector<8x96xf32> -> vector<8x96xf32>
    %110 = arith.index_cast %c1_i32 : i32 to index
    %c0_47 = arith.constant 0 : index
    %c0_48 = arith.constant 0 : index
    %111 = vector.load %arg12[%110, %c0_47, %c0_48] : memref<8x8x96xf32, #tpu.memory_space<vmem>>, vector<1x8x96xf32>
    %112 = vector.shape_cast %111 : vector<1x8x96xf32> to vector<8x96xf32>
    %113 = vector.extract_strided_slice %112 {offsets = [0, 0], sizes = [8, 32], strides = [1, 1]} : vector<8x96xf32> to vector<8x32xf32>
    %114 = vector.extract_strided_slice %109 {offsets = [0, 0], sizes = [8, 32], strides = [1, 1]} : vector<8x96xf32> to vector<8x32xf32>
    %115 = arith.addf %113, %114 : vector<8x32xf32>
    %116 = arith.negf %115 : vector<8x32xf32>
    %117 = math.exp %116 : vector<8x32xf32>
    %cst_49 = arith.constant 1.000000e+00 : f32
    %118 = vector.broadcast %cst_49 : f32 to vector<8x32xf32>
    %119 = arith.addf %118, %117 : vector<8x32xf32>
    %120 = arith.divf %118, %119 : vector<8x32xf32>
    %121 = vector.extract_strided_slice %112 {offsets = [0, 32], sizes = [8, 32], strides = [1, 1]} : vector<8x96xf32> to vector<8x32xf32>
    %122 = vector.extract_strided_slice %109 {offsets = [0, 32], sizes = [8, 32], strides = [1, 1]} : vector<8x96xf32> to vector<8x32xf32>
    %123 = arith.addf %121, %122 : vector<8x32xf32>
    %124 = arith.negf %123 : vector<8x32xf32>
    %125 = math.exp %124 : vector<8x32xf32>
    %cst_50 = arith.constant 1.000000e+00 : f32
    %126 = vector.broadcast %cst_50 : f32 to vector<8x32xf32>
    %127 = arith.addf %126, %125 : vector<8x32xf32>
    %128 = arith.divf %126, %127 : vector<8x32xf32>
    %129 = vector.extract_strided_slice %112 {offsets = [0, 64], sizes = [8, 32], strides = [1, 1]} : vector<8x96xf32> to vector<8x32xf32>
    %130 = vector.extract_strided_slice %109 {offsets = [0, 64], sizes = [8, 32], strides = [1, 1]} : vector<8x96xf32> to vector<8x32xf32>
    %131 = arith.mulf %120, %130 : vector<8x32xf32>
    %132 = arith.addf %129, %131 : vector<8x32xf32>
    %133 = math.tanh %132 : vector<8x32xf32>
    %cst_51 = arith.constant 1.000000e+00 : f32
    %134 = vector.broadcast %cst_51 : f32 to vector<8x32xf32>
    %135 = arith.subf %134, %128 : vector<8x32xf32>
    %136 = arith.mulf %135, %133 : vector<8x32xf32>
    %137 = arith.mulf %128, %82 : vector<8x32xf32>
    %138 = arith.addf %136, %137 : vector<8x32xf32>
    %139 = arith.truncf %138 : vector<8x32xf32> to vector<8x32xbf16>
    %cst_52 = arith.constant dense<0.000000e+00> : vector<8x96xf32>
    %140 = tpu.matmul %139, %2, %cst_52 {dimension_numbers = #tpu.dot_dimension_numbers<[1], [0], [0], [1], [0, 0, 1, 1], [], []>} : vector<8x32xbf16>, vector<32x96xbf16>, vector<8x96xf32> -> vector<8x96xf32>
    %141 = arith.truncf %77 : vector<8x32xf32> to vector<8x32xbf16>
    %cst_53 = arith.constant dense<0.000000e+00> : vector<8x96xf32>
    %142 = tpu.matmul %141, %3, %cst_53 {dimension_numbers = #tpu.dot_dimension_numbers<[1], [0], [0], [1], [0, 0, 1, 1], [], []>} : vector<8x32xbf16>, vector<32x96xbf16>, vector<8x96xf32> -> vector<8x96xf32>
    %143 = vector.extract_strided_slice %140 {offsets = [0, 0], sizes = [8, 32], strides = [1, 1]} : vector<8x96xf32> to vector<8x32xf32>
    %144 = vector.extract_strided_slice %142 {offsets = [0, 0], sizes = [8, 32], strides = [1, 1]} : vector<8x96xf32> to vector<8x32xf32>
    %145 = arith.addf %143, %144 : vector<8x32xf32>
    %146 = arith.negf %145 : vector<8x32xf32>
    %147 = math.exp %146 : vector<8x32xf32>
    %cst_54 = arith.constant 1.000000e+00 : f32
    %148 = vector.broadcast %cst_54 : f32 to vector<8x32xf32>
    %149 = arith.addf %148, %147 : vector<8x32xf32>
    %150 = arith.divf %148, %149 : vector<8x32xf32>
    %151 = vector.extract_strided_slice %140 {offsets = [0, 32], sizes = [8, 32], strides = [1, 1]} : vector<8x96xf32> to vector<8x32xf32>
    %152 = vector.extract_strided_slice %142 {offsets = [0, 32], sizes = [8, 32], strides = [1, 1]} : vector<8x96xf32> to vector<8x32xf32>
    %153 = arith.addf %151, %152 : vector<8x32xf32>
    %154 = arith.negf %153 : vector<8x32xf32>
    %155 = math.exp %154 : vector<8x32xf32>
    %cst_55 = arith.constant 1.000000e+00 : f32
    %156 = vector.broadcast %cst_55 : f32 to vector<8x32xf32>
    %157 = arith.addf %156, %155 : vector<8x32xf32>
    %158 = arith.divf %156, %157 : vector<8x32xf32>
    %159 = vector.extract_strided_slice %140 {offsets = [0, 64], sizes = [8, 32], strides = [1, 1]} : vector<8x96xf32> to vector<8x32xf32>
    %160 = vector.extract_strided_slice %142 {offsets = [0, 64], sizes = [8, 32], strides = [1, 1]} : vector<8x96xf32> to vector<8x32xf32>
    %161 = arith.mulf %150, %160 : vector<8x32xf32>
    %162 = arith.addf %159, %161 : vector<8x32xf32>
    %163 = math.tanh %162 : vector<8x32xf32>
    %cst_56 = arith.constant 1.000000e+00 : f32
    %164 = vector.broadcast %cst_56 : f32 to vector<8x32xf32>
    %165 = arith.subf %164, %158 : vector<8x32xf32>
    %166 = arith.mulf %165, %163 : vector<8x32xf32>
    %167 = arith.mulf %158, %77 : vector<8x32xf32>
    %168 = arith.addf %166, %167 : vector<8x32xf32>
    %cst_57 = arith.constant dense<0.000000e+00> : vector<8x32xf32>
    %169 = tpu.matmul %108, %4, %cst_57 {dimension_numbers = #tpu.dot_dimension_numbers<[1], [0], [0], [1], [0, 0, 1, 1], [], []>} : vector<8x32xbf16>, vector<32x32xbf16>, vector<8x32xf32> -> vector<8x32xf32>
    %170 = arith.truncf %168 : vector<8x32xf32> to vector<8x32xbf16>
    %cst_58 = arith.constant dense<0.000000e+00> : vector<8x32xf32>
    %171 = tpu.matmul %170, %5, %cst_58 {dimension_numbers = #tpu.dot_dimension_numbers<[1], [0], [0], [1], [0, 0, 1, 1], [], []>} : vector<8x32xbf16>, vector<32x32xbf16>, vector<8x32xf32> -> vector<8x32xf32>
    %172 = arith.addf %169, %171 : vector<8x32xf32>
    %173 = math.tanh %172 : vector<8x32xf32>
    %cst_59 = arith.constant dense<0.000000e+00> : vector<8xf32>
    %174 = vector.multi_reduction <add>, %173, %cst_59 [1] : vector<8x32xf32> to vector<8xf32>
    %175 = vector.shape_cast %174 : vector<8xf32> to vector<8x1xf32>
    %cst_60 = arith.constant 3.200000e+01 : f32
    %176 = vector.broadcast %cst_60 : f32 to vector<8x1xf32>
    %177 = arith.divf %175, %176 : vector<8x1xf32>
    %178 = vector.broadcast %177 : vector<8x1xf32> to vector<8x32xf32>
    %179 = arith.subf %173, %178 : vector<8x32xf32>
    %180 = arith.mulf %179, %179 : vector<8x32xf32>
    %cst_61 = arith.constant dense<0.000000e+00> : vector<8xf32>
    %181 = vector.multi_reduction <add>, %180, %cst_61 [1] : vector<8x32xf32> to vector<8xf32>
    %182 = vector.shape_cast %181 : vector<8xf32> to vector<8x1xf32>
    %cst_62 = arith.constant 0.0322580636 : f32
    %183 = vector.broadcast %cst_62 : f32 to vector<8x1xf32>
    %184 = arith.mulf %182, %183 : vector<8x1xf32>
    %185 = math.sqrt %184 : vector<8x1xf32>
    %cst_63 = arith.constant 9.99999997E-7 : f32
    %186 = vector.broadcast %cst_63 : f32 to vector<8x1xf32>
    %187 = arith.addf %185, %186 : vector<8x1xf32>
    %188 = tpu.reciprocal %187 {approx = true} : vector<8x1xf32> -> vector<8x1xf32>
    %189 = vector.broadcast %188 : vector<8x1xf32> to vector<8x32xf32>
    %190 = arith.mulf %179, %189 : vector<8x32xf32>
    %191 = vector.broadcast %6 : vector<1x32xf32> to vector<8x32xf32>
    %192 = arith.mulf %191, %190 : vector<8x32xf32>
    %193 = vector.broadcast %7 : vector<1x32xf32> to vector<8x32xf32>
    %194 = arith.addf %192, %193 : vector<8x32xf32>
    %195 = arith.index_cast %c1_i32 : i32 to index
    %c0_64 = arith.constant 0 : index
    %c0_65 = arith.constant 0 : index
    %196 = vector.load %arg11[%195, %c0_64, %c0_65] : memref<8x8x32xf32, #tpu.memory_space<vmem>>, vector<1x8x32xf32>
    %197 = vector.shape_cast %196 : vector<1x8x32xf32> to vector<8x32xf32>
    %198 = vector.shape_cast %194 : vector<8x32xf32> to vector<1x8x32xf32>
    tpu.vector_store %arg11[%195, %c0_64, %c0_65], %198 {strides = array<i32>} : memref<8x8x32xf32, #tpu.memory_space<vmem>>, vector<1x8x32xf32>,
    %c2_i32 = arith.constant 2 : i32
    %199 = arith.truncf %173 : vector<8x32xf32> to vector<8x32xbf16>
    %cst_66 = arith.constant dense<0.000000e+00> : vector<8x96xf32>
    %200 = tpu.matmul %199, %1, %cst_66 {dimension_numbers = #tpu.dot_dimension_numbers<[1], [0], [0], [1], [0, 0, 1, 1], [], []>} : vector<8x32xbf16>, vector<32x96xbf16>, vector<8x96xf32> -> vector<8x96xf32>
    %201 = arith.index_cast %c2_i32 : i32 to index
    %c0_67 = arith.constant 0 : index
    %c0_68 = arith.constant 0 : index
    %202 = vector.load %arg12[%201, %c0_67, %c0_68] : memref<8x8x96xf32, #tpu.memory_space<vmem>>, vector<1x8x96xf32>
    %203 = vector.shape_cast %202 : vector<1x8x96xf32> to vector<8x96xf32>
    %204 = vector.extract_strided_slice %203 {offsets = [0, 0], sizes = [8, 32], strides = [1, 1]} : vector<8x96xf32> to vector<8x32xf32>
    %205 = vector.extract_strided_slice %200 {offsets = [0, 0], sizes = [8, 32], strides = [1, 1]} : vector<8x96xf32> to vector<8x32xf32>
    %206 = arith.addf %204, %205 : vector<8x32xf32>
    %207 = arith.negf %206 : vector<8x32xf32>
    %208 = math.exp %207 : vector<8x32xf32>
    %cst_69 = arith.constant 1.000000e+00 : f32
    %209 = vector.broadcast %cst_69 : f32 to vector<8x32xf32>
    %210 = arith.addf %209, %208 : vector<8x32xf32>
    %211 = arith.divf %209, %210 : vector<8x32xf32>
    %212 = vector.extract_strided_slice %203 {offsets = [0, 32], sizes = [8, 32], strides = [1, 1]} : vector<8x96xf32> to vector<8x32xf32>
    %213 = vector.extract_strided_slice %200 {offsets = [0, 32], sizes = [8, 32], strides = [1, 1]} : vector<8x96xf32> to vector<8x32xf32>
    %214 = arith.addf %212, %213 : vector<8x32xf32>
    %215 = arith.negf %214 : vector<8x32xf32>
    %216 = math.exp %215 : vector<8x32xf32>
    %cst_70 = arith.constant 1.000000e+00 : f32
    %217 = vector.broadcast %cst_70 : f32 to vector<8x32xf32>
    %218 = arith.addf %217, %216 : vector<8x32xf32>
    %219 = arith.divf %217, %218 : vector<8x32xf32>
    %220 = vector.extract_strided_slice %203 {offsets = [0, 64], sizes = [8, 32], strides = [1, 1]} : vector<8x96xf32> to vector<8x32xf32>
    %221 = vector.extract_strided_slice %200 {offsets = [0, 64], sizes = [8, 32], strides = [1, 1]} : vector<8x96xf32> to vector<8x32xf32>
    %222 = arith.mulf %211, %221 : vector<8x32xf32>
    %223 = arith.addf %220, %222 : vector<8x32xf32>
    %224 = math.tanh %223 : vector<8x32xf32>
    %cst_71 = arith.constant 1.000000e+00 : f32
    %225 = vector.broadcast %cst_71 : f32 to vector<8x32xf32>
    %226 = arith.subf %225, %219 : vector<8x32xf32>
    %227 = arith.mulf %226, %224 : vector<8x32xf32>
    %228 = arith.mulf %219, %173 : vector<8x32xf32>
    %229 = arith.addf %227, %228 : vector<8x32xf32>
    %230 = arith.truncf %229 : vector<8x32xf32> to vector<8x32xbf16>
    %cst_72 = arith.constant dense<0.000000e+00> : vector<8x96xf32>
    %231 = tpu.matmul %230, %2, %cst_72 {dimension_numbers = #tpu.dot_dimension_numbers<[1], [0], [0], [1], [0, 0, 1, 1], [], []>} : vector<8x32xbf16>, vector<32x96xbf16>, vector<8x96xf32> -> vector<8x96xf32>
    %232 = arith.truncf %168 : vector<8x32xf32> to vector<8x32xbf16>
    %cst_73 = arith.constant dense<0.000000e+00> : vector<8x96xf32>
    %233 = tpu.matmul %232, %3, %cst_73 {dimension_numbers = #tpu.dot_dimension_numbers<[1], [0], [0], [1], [0, 0, 1, 1], [], []>} : vector<8x32xbf16>, vector<32x96xbf16>, vector<8x96xf32> -> vector<8x96xf32>
    %234 = vector.extract_strided_slice %231 {offsets = [0, 0], sizes = [8, 32], strides = [1, 1]} : vector<8x96xf32> to vector<8x32xf32>
    %235 = vector.extract_strided_slice %233 {offsets = [0, 0], sizes = [8, 32], strides = [1, 1]} : vector<8x96xf32> to vector<8x32xf32>
    %236 = arith.addf %234, %235 : vector<8x32xf32>
    %237 = arith.negf %236 : vector<8x32xf32>
    %238 = math.exp %237 : vector<8x32xf32>
    %cst_74 = arith.constant 1.000000e+00 : f32
    %239 = vector.broadcast %cst_74 : f32 to vector<8x32xf32>
    %240 = arith.addf %239, %238 : vector<8x32xf32>
    %241 = arith.divf %239, %240 : vector<8x32xf32>
    %242 = vector.extract_strided_slice %231 {offsets = [0, 32], sizes = [8, 32], strides = [1, 1]} : vector<8x96xf32> to vector<8x32xf32>
    %243 = vector.extract_strided_slice %233 {offsets = [0, 32], sizes = [8, 32], strides = [1, 1]} : vector<8x96xf32> to vector<8x32xf32>
    %244 = arith.addf %242, %243 : vector<8x32xf32>
    %245 = arith.negf %244 : vector<8x32xf32>
    %246 = math.exp %245 : vector<8x32xf32>
    %cst_75 = arith.constant 1.000000e+00 : f32
    %247 = vector.broadcast %cst_75 : f32 to vector<8x32xf32>
    %248 = arith.addf %247, %246 : vector<8x32xf32>
    %249 = arith.divf %247, %248 : vector<8x32xf32>
    %250 = vector.extract_strided_slice %231 {offsets = [0, 64], sizes = [8, 32], strides = [1, 1]} : vector<8x96xf32> to vector<8x32xf32>
    %251 = vector.extract_strided_slice %233 {offsets = [0, 64], sizes = [8, 32], strides = [1, 1]} : vector<8x96xf32> to vector<8x32xf32>
    %252 = arith.mulf %241, %251 : vector<8x32xf32>
    %253 = arith.addf %250, %252 : vector<8x32xf32>
    %254 = math.tanh %253 : vector<8x32xf32>
    %cst_76 = arith.constant 1.000000e+00 : f32
    %255 = vector.broadcast %cst_76 : f32 to vector<8x32xf32>
    %256 = arith.subf %255, %249 : vector<8x32xf32>
    %257 = arith.mulf %256, %254 : vector<8x32xf32>
    %258 = arith.mulf %249, %168 : vector<8x32xf32>
    %259 = arith.addf %257, %258 : vector<8x32xf32>
    %cst_77 = arith.constant dense<0.000000e+00> : vector<8x32xf32>
    %260 = tpu.matmul %199, %4, %cst_77 {dimension_numbers = #tpu.dot_dimension_numbers<[1], [0], [0], [1], [0, 0, 1, 1], [], []>} : vector<8x32xbf16>, vector<32x32xbf16>, vector<8x32xf32> -> vector<8x32xf32>
    %261 = arith.truncf %259 : vector<8x32xf32> to vector<8x32xbf16>
    %cst_78 = arith.constant dense<0.000000e+00> : vector<8x32xf32>
    %262 = tpu.matmul %261, %5, %cst_78 {dimension_numbers = #tpu.dot_dimension_numbers<[1], [0], [0], [1], [0, 0, 1, 1], [], []>} : vector<8x32xbf16>, vector<32x32xbf16>, vector<8x32xf32> -> vector<8x32xf32>
    %263 = arith.addf %260, %262 : vector<8x32xf32>
    %264 = math.tanh %263 : vector<8x32xf32>
    %cst_79 = arith.constant dense<0.000000e+00> : vector<8xf32>
    %265 = vector.multi_reduction <add>, %264, %cst_79 [1] : vector<8x32xf32> to vector<8xf32>
    %266 = vector.shape_cast %265 : vector<8xf32> to vector<8x1xf32>
    %cst_80 = arith.constant 3.200000e+01 : f32
    %267 = vector.broadcast %cst_80 : f32 to vector<8x1xf32>
    %268 = arith.divf %266, %267 : vector<8x1xf32>
    %269 = vector.broadcast %268 : vector<8x1xf32> to vector<8x32xf32>
    %270 = arith.subf %264, %269 : vector<8x32xf32>
    %271 = arith.mulf %270, %270 : vector<8x32xf32>
    %cst_81 = arith.constant dense<0.000000e+00> : vector<8xf32>
    %272 = vector.multi_reduction <add>, %271, %cst_81 [1] : vector<8x32xf32> to vector<8xf32>
    %273 = vector.shape_cast %272 : vector<8xf32> to vector<8x1xf32>
    %cst_82 = arith.constant 0.0322580636 : f32
    %274 = vector.broadcast %cst_82 : f32 to vector<8x1xf32>
    %275 = arith.mulf %273, %274 : vector<8x1xf32>
    %276 = math.sqrt %275 : vector<8x1xf32>
    %cst_83 = arith.constant 9.99999997E-7 : f32
    %277 = vector.broadcast %cst_83 : f32 to vector<8x1xf32>
    %278 = arith.addf %276, %277 : vector<8x1xf32>
    %279 = tpu.reciprocal %278 {approx = true} : vector<8x1xf32> -> vector<8x1xf32>
    %280 = vector.broadcast %279 : vector<8x1xf32> to vector<8x32xf32>
    %281 = arith.mulf %270, %280 : vector<8x32xf32>
    %282 = vector.broadcast %6 : vector<1x32xf32> to vector<8x32xf32>
    %283 = arith.mulf %282, %281 : vector<8x32xf32>
    %284 = vector.broadcast %7 : vector<1x32xf32> to vector<8x32xf32>
    %285 = arith.addf %283, %284 : vector<8x32xf32>
    %286 = arith.index_cast %c2_i32 : i32 to index
    %c0_84 = arith.constant 0 : index
    %c0_85 = arith.constant 0 : index
    %287 = vector.load %arg11[%286, %c0_84, %c0_85] : memref<8x8x32xf32, #tpu.memory_space<vmem>>, vector<1x8x32xf32>
    %288 = vector.shape_cast %287 : vector<1x8x32xf32> to vector<8x32xf32>
    %289 = vector.shape_cast %285 : vector<8x32xf32> to vector<1x8x32xf32>
    tpu.vector_store %arg11[%286, %c0_84, %c0_85], %289 {strides = array<i32>} : memref<8x8x32xf32, #tpu.memory_space<vmem>>, vector<1x8x32xf32>,
    %c3_i32 = arith.constant 3 : i32
    %290 = arith.truncf %264 : vector<8x32xf32> to vector<8x32xbf16>
    %cst_86 = arith.constant dense<0.000000e+00> : vector<8x96xf32>
    %291 = tpu.matmul %290, %1, %cst_86 {dimension_numbers = #tpu.dot_dimension_numbers<[1], [0], [0], [1], [0, 0, 1, 1], [], []>} : vector<8x32xbf16>, vector<32x96xbf16>, vector<8x96xf32> -> vector<8x96xf32>
    %292 = arith.index_cast %c3_i32 : i32 to index
    %c0_87 = arith.constant 0 : index
    %c0_88 = arith.constant 0 : index
    %293 = vector.load %arg12[%292, %c0_87, %c0_88] : memref<8x8x96xf32, #tpu.memory_space<vmem>>, vector<1x8x96xf32>
    %294 = vector.shape_cast %293 : vector<1x8x96xf32> to vector<8x96xf32>
    %295 = vector.extract_strided_slice %294 {offsets = [0, 0], sizes = [8, 32], strides = [1, 1]} : vector<8x96xf32> to vector<8x32xf32>
    %296 = vector.extract_strided_slice %291 {offsets = [0, 0], sizes = [8, 32], strides = [1, 1]} : vector<8x96xf32> to vector<8x32xf32>
    %297 = arith.addf %295, %296 : vector<8x32xf32>
    %298 = arith.negf %297 : vector<8x32xf32>
    %299 = math.exp %298 : vector<8x32xf32>
    %cst_89 = arith.constant 1.000000e+00 : f32
    %300 = vector.broadcast %cst_89 : f32 to vector<8x32xf32>
    %301 = arith.addf %300, %299 : vector<8x32xf32>
    %302 = arith.divf %300, %301 : vector<8x32xf32>
    %303 = vector.extract_strided_slice %294 {offsets = [0, 32], sizes = [8, 32], strides = [1, 1]} : vector<8x96xf32> to vector<8x32xf32>
    %304 = vector.extract_strided_slice %291 {offsets = [0, 32], sizes = [8, 32], strides = [1, 1]} : vector<8x96xf32> to vector<8x32xf32>
    %305 = arith.addf %303, %304 : vector<8x32xf32>
    %306 = arith.negf %305 : vector<8x32xf32>
    %307 = math.exp %306 : vector<8x32xf32>
    %cst_90 = arith.constant 1.000000e+00 : f32
    %308 = vector.broadcast %cst_90 : f32 to vector<8x32xf32>
    %309 = arith.addf %308, %307 : vector<8x32xf32>
    %310 = arith.divf %308, %309 : vector<8x32xf32>
    %311 = vector.extract_strided_slice %294 {offsets = [0, 64], sizes = [8, 32], strides = [1, 1]} : vector<8x96xf32> to vector<8x32xf32>
    %312 = vector.extract_strided_slice %291 {offsets = [0, 64], sizes = [8, 32], strides = [1, 1]} : vector<8x96xf32> to vector<8x32xf32>
    %313 = arith.mulf %302, %312 : vector<8x32xf32>
    %314 = arith.addf %311, %313 : vector<8x32xf32>
    %315 = math.tanh %314 : vector<8x32xf32>
    %cst_91 = arith.constant 1.000000e+00 : f32
    %316 = vector.broadcast %cst_91 : f32 to vector<8x32xf32>
    %317 = arith.subf %316, %310 : vector<8x32xf32>
    %318 = arith.mulf %317, %315 : vector<8x32xf32>
    %319 = arith.mulf %310, %264 : vector<8x32xf32>
    %320 = arith.addf %318, %319 : vector<8x32xf32>
    %321 = arith.truncf %320 : vector<8x32xf32> to vector<8x32xbf16>
    %cst_92 = arith.constant dense<0.000000e+00> : vector<8x96xf32>
    %322 = tpu.matmul %321, %2, %cst_92 {dimension_numbers = #tpu.dot_dimension_numbers<[1], [0], [0], [1], [0, 0, 1, 1], [], []>} : vector<8x32xbf16>, vector<32x96xbf16>, vector<8x96xf32> -> vector<8x96xf32>
    %323 = arith.truncf %259 : vector<8x32xf32> to vector<8x32xbf16>
    %cst_93 = arith.constant dense<0.000000e+00> : vector<8x96xf32>
    %324 = tpu.matmul %323, %3, %cst_93 {dimension_numbers = #tpu.dot_dimension_numbers<[1], [0], [0], [1], [0, 0, 1, 1], [], []>} : vector<8x32xbf16>, vector<32x96xbf16>, vector<8x96xf32> -> vector<8x96xf32>
    %325 = vector.extract_strided_slice %322 {offsets = [0, 0], sizes = [8, 32], strides = [1, 1]} : vector<8x96xf32> to vector<8x32xf32>
    %326 = vector.extract_strided_slice %324 {offsets = [0, 0], sizes = [8, 32], strides = [1, 1]} : vector<8x96xf32> to vector<8x32xf32>
    %327 = arith.addf %325, %326 : vector<8x32xf32>
    %328 = arith.negf %327 : vector<8x32xf32>
    %329 = math.exp %328 : vector<8x32xf32>
    %cst_94 = arith.constant 1.000000e+00 : f32
    %330 = vector.broadcast %cst_94 : f32 to vector<8x32xf32>
    %331 = arith.addf %330, %329 : vector<8x32xf32>
    %332 = arith.divf %330, %331 : vector<8x32xf32>
    %333 = vector.extract_strided_slice %322 {offsets = [0, 32], sizes = [8, 32], strides = [1, 1]} : vector<8x96xf32> to vector<8x32xf32>
    %334 = vector.extract_strided_slice %324 {offsets = [0, 32], sizes = [8, 32], strides = [1, 1]} : vector<8x96xf32> to vector<8x32xf32>
    %335 = arith.addf %333, %334 : vector<8x32xf32>
    %336 = arith.negf %335 : vector<8x32xf32>
    %337 = math.exp %336 : vector<8x32xf32>
    %cst_95 = arith.constant 1.000000e+00 : f32
    %338 = vector.broadcast %cst_95 : f32 to vector<8x32xf32>
    %339 = arith.addf %338, %337 : vector<8x32xf32>
    %340 = arith.divf %338, %339 : vector<8x32xf32>
    %341 = vector.extract_strided_slice %322 {offsets = [0, 64], sizes = [8, 32], strides = [1, 1]} : vector<8x96xf32> to vector<8x32xf32>
    %342 = vector.extract_strided_slice %324 {offsets = [0, 64], sizes = [8, 32], strides = [1, 1]} : vector<8x96xf32> to vector<8x32xf32>
    %343 = arith.mulf %332, %342 : vector<8x32xf32>
    %344 = arith.addf %341, %343 : vector<8x32xf32>
    %345 = math.tanh %344 : vector<8x32xf32>
    %cst_96 = arith.constant 1.000000e+00 : f32
    %346 = vector.broadcast %cst_96 : f32 to vector<8x32xf32>
    %347 = arith.subf %346, %340 : vector<8x32xf32>
    %348 = arith.mulf %347, %345 : vector<8x32xf32>
    %349 = arith.mulf %340, %259 : vector<8x32xf32>
    %350 = arith.addf %348, %349 : vector<8x32xf32>
    %cst_97 = arith.constant dense<0.000000e+00> : vector<8x32xf32>
    %351 = tpu.matmul %290, %4, %cst_97 {dimension_numbers = #tpu.dot_dimension_numbers<[1], [0], [0], [1], [0, 0, 1, 1], [], []>} : vector<8x32xbf16>, vector<32x32xbf16>, vector<8x32xf32> -> vector<8x32xf32>
    %352 = arith.truncf %350 : vector<8x32xf32> to vector<8x32xbf16>
    %cst_98 = arith.constant dense<0.000000e+00> : vector<8x32xf32>
    %353 = tpu.matmul %352, %5, %cst_98 {dimension_numbers = #tpu.dot_dimension_numbers<[1], [0], [0], [1], [0, 0, 1, 1], [], []>} : vector<8x32xbf16>, vector<32x32xbf16>, vector<8x32xf32> -> vector<8x32xf32>
    %354 = arith.addf %351, %353 : vector<8x32xf32>
    %355 = math.tanh %354 : vector<8x32xf32>
    %cst_99 = arith.constant dense<0.000000e+00> : vector<8xf32>
    %356 = vector.multi_reduction <add>, %355, %cst_99 [1] : vector<8x32xf32> to vector<8xf32>
    %357 = vector.shape_cast %356 : vector<8xf32> to vector<8x1xf32>
    %cst_100 = arith.constant 3.200000e+01 : f32
    %358 = vector.broadcast %cst_100 : f32 to vector<8x1xf32>
    %359 = arith.divf %357, %358 : vector<8x1xf32>
    %360 = vector.broadcast %359 : vector<8x1xf32> to vector<8x32xf32>
    %361 = arith.subf %355, %360 : vector<8x32xf32>
    %362 = arith.mulf %361, %361 : vector<8x32xf32>
    %cst_101 = arith.constant dense<0.000000e+00> : vector<8xf32>
    %363 = vector.multi_reduction <add>, %362, %cst_101 [1] : vector<8x32xf32> to vector<8xf32>
    %364 = vector.shape_cast %363 : vector<8xf32> to vector<8x1xf32>
    %cst_102 = arith.constant 0.0322580636 : f32
    %365 = vector.broadcast %cst_102 : f32 to vector<8x1xf32>
    %366 = arith.mulf %364, %365 : vector<8x1xf32>
    %367 = math.sqrt %366 : vector<8x1xf32>
    %cst_103 = arith.constant 9.99999997E-7 : f32
    %368 = vector.broadcast %cst_103 : f32 to vector<8x1xf32>
    %369 = arith.addf %367, %368 : vector<8x1xf32>
    %370 = tpu.reciprocal %369 {approx = true} : vector<8x1xf32> -> vector<8x1xf32>
    %371 = vector.broadcast %370 : vector<8x1xf32> to vector<8x32xf32>
    %372 = arith.mulf %361, %371 : vector<8x32xf32>
    %373 = vector.broadcast %6 : vector<1x32xf32> to vector<8x32xf32>
    %374 = arith.mulf %373, %372 : vector<8x32xf32>
    %375 = vector.broadcast %7 : vector<1x32xf32> to vector<8x32xf32>
    %376 = arith.addf %374, %375 : vector<8x32xf32>
    %377 = arith.index_cast %c3_i32 : i32 to index
    %c0_104 = arith.constant 0 : index
    %c0_105 = arith.constant 0 : index
    %378 = vector.load %arg11[%377, %c0_104, %c0_105] : memref<8x8x32xf32, #tpu.memory_space<vmem>>, vector<1x8x32xf32>
    %379 = vector.shape_cast %378 : vector<1x8x32xf32> to vector<8x32xf32>
    %380 = vector.shape_cast %376 : vector<8x32xf32> to vector<1x8x32xf32>
    tpu.vector_store %arg11[%377, %c0_104, %c0_105], %380 {strides = array<i32>} : memref<8x8x32xf32, #tpu.memory_space<vmem>>, vector<1x8x32xf32>,
    %c4_i32 = arith.constant 4 : i32
    %381 = arith.truncf %355 : vector<8x32xf32> to vector<8x32xbf16>
    %cst_106 = arith.constant dense<0.000000e+00> : vector<8x96xf32>
    %382 = tpu.matmul %381, %1, %cst_106 {dimension_numbers = #tpu.dot_dimension_numbers<[1], [0], [0], [1], [0, 0, 1, 1], [], []>} : vector<8x32xbf16>, vector<32x96xbf16>, vector<8x96xf32> -> vector<8x96xf32>
    %383 = arith.index_cast %c4_i32 : i32 to index
    %c0_107 = arith.constant 0 : index
    %c0_108 = arith.constant 0 : index
    %384 = vector.load %arg12[%383, %c0_107, %c0_108] : memref<8x8x96xf32, #tpu.memory_space<vmem>>, vector<1x8x96xf32>
    %385 = vector.shape_cast %384 : vector<1x8x96xf32> to vector<8x96xf32>
    %386 = vector.extract_strided_slice %385 {offsets = [0, 0], sizes = [8, 32], strides = [1, 1]} : vector<8x96xf32> to vector<8x32xf32>
    %387 = vector.extract_strided_slice %382 {offsets = [0, 0], sizes = [8, 32], strides = [1, 1]} : vector<8x96xf32> to vector<8x32xf32>
    %388 = arith.addf %386, %387 : vector<8x32xf32>
    %389 = arith.negf %388 : vector<8x32xf32>
    %390 = math.exp %389 : vector<8x32xf32>
    %cst_109 = arith.constant 1.000000e+00 : f32
    %391 = vector.broadcast %cst_109 : f32 to vector<8x32xf32>
    %392 = arith.addf %391, %390 : vector<8x32xf32>
    %393 = arith.divf %391, %392 : vector<8x32xf32>
    %394 = vector.extract_strided_slice %385 {offsets = [0, 32], sizes = [8, 32], strides = [1, 1]} : vector<8x96xf32> to vector<8x32xf32>
    %395 = vector.extract_strided_slice %382 {offsets = [0, 32], sizes = [8, 32], strides = [1, 1]} : vector<8x96xf32> to vector<8x32xf32>
    %396 = arith.addf %394, %395 : vector<8x32xf32>
    %397 = arith.negf %396 : vector<8x32xf32>
    %398 = math.exp %397 : vector<8x32xf32>
    %cst_110 = arith.constant 1.000000e+00 : f32
    %399 = vector.broadcast %cst_110 : f32 to vector<8x32xf32>
    %400 = arith.addf %399, %398 : vector<8x32xf32>
    %401 = arith.divf %399, %400 : vector<8x32xf32>
    %402 = vector.extract_strided_slice %385 {offsets = [0, 64], sizes = [8, 32], strides = [1, 1]} : vector<8x96xf32> to vector<8x32xf32>
    %403 = vector.extract_strided_slice %382 {offsets = [0, 64], sizes = [8, 32], strides = [1, 1]} : vector<8x96xf32> to vector<8x32xf32>
    %404 = arith.mulf %393, %403 : vector<8x32xf32>
    %405 = arith.addf %402, %404 : vector<8x32xf32>
    %406 = math.tanh %405 : vector<8x32xf32>
    %cst_111 = arith.constant 1.000000e+00 : f32
    %407 = vector.broadcast %cst_111 : f32 to vector<8x32xf32>
    %408 = arith.subf %407, %401 : vector<8x32xf32>
    %409 = arith.mulf %408, %406 : vector<8x32xf32>
    %410 = arith.mulf %401, %355 : vector<8x32xf32>
    %411 = arith.addf %409, %410 : vector<8x32xf32>
    %412 = arith.truncf %411 : vector<8x32xf32> to vector<8x32xbf16>
    %cst_112 = arith.constant dense<0.000000e+00> : vector<8x96xf32>
    %413 = tpu.matmul %412, %2, %cst_112 {dimension_numbers = #tpu.dot_dimension_numbers<[1], [0], [0], [1], [0, 0, 1, 1], [], []>} : vector<8x32xbf16>, vector<32x96xbf16>, vector<8x96xf32> -> vector<8x96xf32>
    %414 = arith.truncf %350 : vector<8x32xf32> to vector<8x32xbf16>
    %cst_113 = arith.constant dense<0.000000e+00> : vector<8x96xf32>
    %415 = tpu.matmul %414, %3, %cst_113 {dimension_numbers = #tpu.dot_dimension_numbers<[1], [0], [0], [1], [0, 0, 1, 1], [], []>} : vector<8x32xbf16>, vector<32x96xbf16>, vector<8x96xf32> -> vector<8x96xf32>
    %416 = vector.extract_strided_slice %413 {offsets = [0, 0], sizes = [8, 32], strides = [1, 1]} : vector<8x96xf32> to vector<8x32xf32>
    %417 = vector.extract_strided_slice %415 {offsets = [0, 0], sizes = [8, 32], strides = [1, 1]} : vector<8x96xf32> to vector<8x32xf32>
    %418 = arith.addf %416, %417 : vector<8x32xf32>
    %419 = arith.negf %418 : vector<8x32xf32>
    %420 = math.exp %419 : vector<8x32xf32>
    %cst_114 = arith.constant 1.000000e+00 : f32
    %421 = vector.broadcast %cst_114 : f32 to vector<8x32xf32>
    %422 = arith.addf %421, %420 : vector<8x32xf32>
    %423 = arith.divf %421, %422 : vector<8x32xf32>
    %424 = vector.extract_strided_slice %413 {offsets = [0, 32], sizes = [8, 32], strides = [1, 1]} : vector<8x96xf32> to vector<8x32xf32>
    %425 = vector.extract_strided_slice %415 {offsets = [0, 32], sizes = [8, 32], strides = [1, 1]} : vector<8x96xf32> to vector<8x32xf32>
    %426 = arith.addf %424, %425 : vector<8x32xf32>
    %427 = arith.negf %426 : vector<8x32xf32>
    %428 = math.exp %427 : vector<8x32xf32>
    %cst_115 = arith.constant 1.000000e+00 : f32
    %429 = vector.broadcast %cst_115 : f32 to vector<8x32xf32>
    %430 = arith.addf %429, %428 : vector<8x32xf32>
    %431 = arith.divf %429, %430 : vector<8x32xf32>
    %432 = vector.extract_strided_slice %413 {offsets = [0, 64], sizes = [8, 32], strides = [1, 1]} : vector<8x96xf32> to vector<8x32xf32>
    %433 = vector.extract_strided_slice %415 {offsets = [0, 64], sizes = [8, 32], strides = [1, 1]} : vector<8x96xf32> to vector<8x32xf32>
    %434 = arith.mulf %423, %433 : vector<8x32xf32>
    %435 = arith.addf %432, %434 : vector<8x32xf32>
    %436 = math.tanh %435 : vector<8x32xf32>
    %cst_116 = arith.constant 1.000000e+00 : f32
    %437 = vector.broadcast %cst_116 : f32 to vector<8x32xf32>
    %438 = arith.subf %437, %431 : vector<8x32xf32>
    %439 = arith.mulf %438, %436 : vector<8x32xf32>
    %440 = arith.mulf %431, %350 : vector<8x32xf32>
    %441 = arith.addf %439, %440 : vector<8x32xf32>
    %cst_117 = arith.constant dense<0.000000e+00> : vector<8x32xf32>
    %442 = tpu.matmul %381, %4, %cst_117 {dimension_numbers = #tpu.dot_dimension_numbers<[1], [0], [0], [1], [0, 0, 1, 1], [], []>} : vector<8x32xbf16>, vector<32x32xbf16>, vector<8x32xf32> -> vector<8x32xf32>
    %443 = arith.truncf %441 : vector<8x32xf32> to vector<8x32xbf16>
    %cst_118 = arith.constant dense<0.000000e+00> : vector<8x32xf32>
    %444 = tpu.matmul %443, %5, %cst_118 {dimension_numbers = #tpu.dot_dimension_numbers<[1], [0], [0], [1], [0, 0, 1, 1], [], []>} : vector<8x32xbf16>, vector<32x32xbf16>, vector<8x32xf32> -> vector<8x32xf32>
    %445 = arith.addf %442, %444 : vector<8x32xf32>
    %446 = math.tanh %445 : vector<8x32xf32>
    %cst_119 = arith.constant dense<0.000000e+00> : vector<8xf32>
    %447 = vector.multi_reduction <add>, %446, %cst_119 [1] : vector<8x32xf32> to vector<8xf32>
    %448 = vector.shape_cast %447 : vector<8xf32> to vector<8x1xf32>
    %cst_120 = arith.constant 3.200000e+01 : f32
    %449 = vector.broadcast %cst_120 : f32 to vector<8x1xf32>
    %450 = arith.divf %448, %449 : vector<8x1xf32>
    %451 = vector.broadcast %450 : vector<8x1xf32> to vector<8x32xf32>
    %452 = arith.subf %446, %451 : vector<8x32xf32>
    %453 = arith.mulf %452, %452 : vector<8x32xf32>
    %cst_121 = arith.constant dense<0.000000e+00> : vector<8xf32>
    %454 = vector.multi_reduction <add>, %453, %cst_121 [1] : vector<8x32xf32> to vector<8xf32>
    %455 = vector.shape_cast %454 : vector<8xf32> to vector<8x1xf32>
    %cst_122 = arith.constant 0.0322580636 : f32
    %456 = vector.broadcast %cst_122 : f32 to vector<8x1xf32>
    %457 = arith.mulf %455, %456 : vector<8x1xf32>
    %458 = math.sqrt %457 : vector<8x1xf32>
    %cst_123 = arith.constant 9.99999997E-7 : f32
    %459 = vector.broadcast %cst_123 : f32 to vector<8x1xf32>
    %460 = arith.addf %458, %459 : vector<8x1xf32>
    %461 = tpu.reciprocal %460 {approx = true} : vector<8x1xf32> -> vector<8x1xf32>
    %462 = vector.broadcast %461 : vector<8x1xf32> to vector<8x32xf32>
    %463 = arith.mulf %452, %462 : vector<8x32xf32>
    %464 = vector.broadcast %6 : vector<1x32xf32> to vector<8x32xf32>
    %465 = arith.mulf %464, %463 : vector<8x32xf32>
    %466 = vector.broadcast %7 : vector<1x32xf32> to vector<8x32xf32>
    %467 = arith.addf %465, %466 : vector<8x32xf32>
    %468 = arith.index_cast %c4_i32 : i32 to index
    %c0_124 = arith.constant 0 : index
    %c0_125 = arith.constant 0 : index
    %469 = vector.load %arg11[%468, %c0_124, %c0_125] : memref<8x8x32xf32, #tpu.memory_space<vmem>>, vector<1x8x32xf32>
    %470 = vector.shape_cast %469 : vector<1x8x32xf32> to vector<8x32xf32>
    %471 = vector.shape_cast %467 : vector<8x32xf32> to vector<1x8x32xf32>
    tpu.vector_store %arg11[%468, %c0_124, %c0_125], %471 {strides = array<i32>} : memref<8x8x32xf32, #tpu.memory_space<vmem>>, vector<1x8x32xf32>,
    %c5_i32 = arith.constant 5 : i32
    %472 = arith.truncf %446 : vector<8x32xf32> to vector<8x32xbf16>
    %cst_126 = arith.constant dense<0.000000e+00> : vector<8x96xf32>
    %473 = tpu.matmul %472, %1, %cst_126 {dimension_numbers = #tpu.dot_dimension_numbers<[1], [0], [0], [1], [0, 0, 1, 1], [], []>} : vector<8x32xbf16>, vector<32x96xbf16>, vector<8x96xf32> -> vector<8x96xf32>
    %474 = arith.index_cast %c5_i32 : i32 to index
    %c0_127 = arith.constant 0 : index
    %c0_128 = arith.constant 0 : index
    %475 = vector.load %arg12[%474, %c0_127, %c0_128] : memref<8x8x96xf32, #tpu.memory_space<vmem>>, vector<1x8x96xf32>
    %476 = vector.shape_cast %475 : vector<1x8x96xf32> to vector<8x96xf32>
    %477 = vector.extract_strided_slice %476 {offsets = [0, 0], sizes = [8, 32], strides = [1, 1]} : vector<8x96xf32> to vector<8x32xf32>
    %478 = vector.extract_strided_slice %473 {offsets = [0, 0], sizes = [8, 32], strides = [1, 1]} : vector<8x96xf32> to vector<8x32xf32>
    %479 = arith.addf %477, %478 : vector<8x32xf32>
    %480 = arith.negf %479 : vector<8x32xf32>
    %481 = math.exp %480 : vector<8x32xf32>
    %cst_129 = arith.constant 1.000000e+00 : f32
    %482 = vector.broadcast %cst_129 : f32 to vector<8x32xf32>
    %483 = arith.addf %482, %481 : vector<8x32xf32>
    %484 = arith.divf %482, %483 : vector<8x32xf32>
    %485 = vector.extract_strided_slice %476 {offsets = [0, 32], sizes = [8, 32], strides = [1, 1]} : vector<8x96xf32> to vector<8x32xf32>
    %486 = vector.extract_strided_slice %473 {offsets = [0, 32], sizes = [8, 32], strides = [1, 1]} : vector<8x96xf32> to vector<8x32xf32>
    %487 = arith.addf %485, %486 : vector<8x32xf32>
    %488 = arith.negf %487 : vector<8x32xf32>
    %489 = math.exp %488 : vector<8x32xf32>
    %cst_130 = arith.constant 1.000000e+00 : f32
    %490 = vector.broadcast %cst_130 : f32 to vector<8x32xf32>
    %491 = arith.addf %490, %489 : vector<8x32xf32>
    %492 = arith.divf %490, %491 : vector<8x32xf32>
    %493 = vector.extract_strided_slice %476 {offsets = [0, 64], sizes = [8, 32], strides = [1, 1]} : vector<8x96xf32> to vector<8x32xf32>
    %494 = vector.extract_strided_slice %473 {offsets = [0, 64], sizes = [8, 32], strides = [1, 1]} : vector<8x96xf32> to vector<8x32xf32>
    %495 = arith.mulf %484, %494 : vector<8x32xf32>
    %496 = arith.addf %493, %495 : vector<8x32xf32>
    %497 = math.tanh %496 : vector<8x32xf32>
    %cst_131 = arith.constant 1.000000e+00 : f32
    %498 = vector.broadcast %cst_131 : f32 to vector<8x32xf32>
    %499 = arith.subf %498, %492 : vector<8x32xf32>
    %500 = arith.mulf %499, %497 : vector<8x32xf32>
    %501 = arith.mulf %492, %446 : vector<8x32xf32>
    %502 = arith.addf %500, %501 : vector<8x32xf32>
    %503 = arith.truncf %502 : vector<8x32xf32> to vector<8x32xbf16>
    %cst_132 = arith.constant dense<0.000000e+00> : vector<8x96xf32>
    %504 = tpu.matmul %503, %2, %cst_132 {dimension_numbers = #tpu.dot_dimension_numbers<[1], [0], [0], [1], [0, 0, 1, 1], [], []>} : vector<8x32xbf16>, vector<32x96xbf16>, vector<8x96xf32> -> vector<8x96xf32>
    %505 = arith.truncf %441 : vector<8x32xf32> to vector<8x32xbf16>
    %cst_133 = arith.constant dense<0.000000e+00> : vector<8x96xf32>
    %506 = tpu.matmul %505, %3, %cst_133 {dimension_numbers = #tpu.dot_dimension_numbers<[1], [0], [0], [1], [0, 0, 1, 1], [], []>} : vector<8x32xbf16>, vector<32x96xbf16>, vector<8x96xf32> -> vector<8x96xf32>
    %507 = vector.extract_strided_slice %504 {offsets = [0, 0], sizes = [8, 32], strides = [1, 1]} : vector<8x96xf32> to vector<8x32xf32>
    %508 = vector.extract_strided_slice %506 {offsets = [0, 0], sizes = [8, 32], strides = [1, 1]} : vector<8x96xf32> to vector<8x32xf32>
    %509 = arith.addf %507, %508 : vector<8x32xf32>
    %510 = arith.negf %509 : vector<8x32xf32>
    %511 = math.exp %510 : vector<8x32xf32>
    %cst_134 = arith.constant 1.000000e+00 : f32
    %512 = vector.broadcast %cst_134 : f32 to vector<8x32xf32>
    %513 = arith.addf %512, %511 : vector<8x32xf32>
    %514 = arith.divf %512, %513 : vector<8x32xf32>
    %515 = vector.extract_strided_slice %504 {offsets = [0, 32], sizes = [8, 32], strides = [1, 1]} : vector<8x96xf32> to vector<8x32xf32>
    %516 = vector.extract_strided_slice %506 {offsets = [0, 32], sizes = [8, 32], strides = [1, 1]} : vector<8x96xf32> to vector<8x32xf32>
    %517 = arith.addf %515, %516 : vector<8x32xf32>
    %518 = arith.negf %517 : vector<8x32xf32>
    %519 = math.exp %518 : vector<8x32xf32>
    %cst_135 = arith.constant 1.000000e+00 : f32
    %520 = vector.broadcast %cst_135 : f32 to vector<8x32xf32>
    %521 = arith.addf %520, %519 : vector<8x32xf32>
    %522 = arith.divf %520, %521 : vector<8x32xf32>
    %523 = vector.extract_strided_slice %504 {offsets = [0, 64], sizes = [8, 32], strides = [1, 1]} : vector<8x96xf32> to vector<8x32xf32>
    %524 = vector.extract_strided_slice %506 {offsets = [0, 64], sizes = [8, 32], strides = [1, 1]} : vector<8x96xf32> to vector<8x32xf32>
    %525 = arith.mulf %514, %524 : vector<8x32xf32>
    %526 = arith.addf %523, %525 : vector<8x32xf32>
    %527 = math.tanh %526 : vector<8x32xf32>
    %cst_136 = arith.constant 1.000000e+00 : f32
    %528 = vector.broadcast %cst_136 : f32 to vector<8x32xf32>
    %529 = arith.subf %528, %522 : vector<8x32xf32>
    %530 = arith.mulf %529, %527 : vector<8x32xf32>
    %531 = arith.mulf %522, %441 : vector<8x32xf32>
    %532 = arith.addf %530, %531 : vector<8x32xf32>
    %cst_137 = arith.constant dense<0.000000e+00> : vector<8x32xf32>
    %533 = tpu.matmul %472, %4, %cst_137 {dimension_numbers = #tpu.dot_dimension_numbers<[1], [0], [0], [1], [0, 0, 1, 1], [], []>} : vector<8x32xbf16>, vector<32x32xbf16>, vector<8x32xf32> -> vector<8x32xf32>
    %534 = arith.truncf %532 : vector<8x32xf32> to vector<8x32xbf16>
    %cst_138 = arith.constant dense<0.000000e+00> : vector<8x32xf32>
    %535 = tpu.matmul %534, %5, %cst_138 {dimension_numbers = #tpu.dot_dimension_numbers<[1], [0], [0], [1], [0, 0, 1, 1], [], []>} : vector<8x32xbf16>, vector<32x32xbf16>, vector<8x32xf32> -> vector<8x32xf32>
    %536 = arith.addf %533, %535 : vector<8x32xf32>
    %537 = math.tanh %536 : vector<8x32xf32>
    %cst_139 = arith.constant dense<0.000000e+00> : vector<8xf32>
    %538 = vector.multi_reduction <add>, %537, %cst_139 [1] : vector<8x32xf32> to vector<8xf32>
    %539 = vector.shape_cast %538 : vector<8xf32> to vector<8x1xf32>
    %cst_140 = arith.constant 3.200000e+01 : f32
    %540 = vector.broadcast %cst_140 : f32 to vector<8x1xf32>
    %541 = arith.divf %539, %540 : vector<8x1xf32>
    %542 = vector.broadcast %541 : vector<8x1xf32> to vector<8x32xf32>
    %543 = arith.subf %537, %542 : vector<8x32xf32>
    %544 = arith.mulf %543, %543 : vector<8x32xf32>
    %cst_141 = arith.constant dense<0.000000e+00> : vector<8xf32>
    %545 = vector.multi_reduction <add>, %544, %cst_141 [1] : vector<8x32xf32> to vector<8xf32>
    %546 = vector.shape_cast %545 : vector<8xf32> to vector<8x1xf32>
    %cst_142 = arith.constant 0.0322580636 : f32
    %547 = vector.broadcast %cst_142 : f32 to vector<8x1xf32>
    %548 = arith.mulf %546, %547 : vector<8x1xf32>
    %549 = math.sqrt %548 : vector<8x1xf32>
    %cst_143 = arith.constant 9.99999997E-7 : f32
    %550 = vector.broadcast %cst_143 : f32 to vector<8x1xf32>
    %551 = arith.addf %549, %550 : vector<8x1xf32>
    %552 = tpu.reciprocal %551 {approx = true} : vector<8x1xf32> -> vector<8x1xf32>
    %553 = vector.broadcast %552 : vector<8x1xf32> to vector<8x32xf32>
    %554 = arith.mulf %543, %553 : vector<8x32xf32>
    %555 = vector.broadcast %6 : vector<1x32xf32> to vector<8x32xf32>
    %556 = arith.mulf %555, %554 : vector<8x32xf32>
    %557 = vector.broadcast %7 : vector<1x32xf32> to vector<8x32xf32>
    %558 = arith.addf %556, %557 : vector<8x32xf32>
    %559 = arith.index_cast %c5_i32 : i32 to index
    %c0_144 = arith.constant 0 : index
    %c0_145 = arith.constant 0 : index
    %560 = vector.load %arg11[%559, %c0_144, %c0_145] : memref<8x8x32xf32, #tpu.memory_space<vmem>>, vector<1x8x32xf32>
    %561 = vector.shape_cast %560 : vector<1x8x32xf32> to vector<8x32xf32>
    %562 = vector.shape_cast %558 : vector<8x32xf32> to vector<1x8x32xf32>
    tpu.vector_store %arg11[%559, %c0_144, %c0_145], %562 {strides = array<i32>} : memref<8x8x32xf32, #tpu.memory_space<vmem>>, vector<1x8x32xf32>,
    %c6_i32 = arith.constant 6 : i32
    %563 = arith.truncf %537 : vector<8x32xf32> to vector<8x32xbf16>
    %cst_146 = arith.constant dense<0.000000e+00> : vector<8x96xf32>
    %564 = tpu.matmul %563, %1, %cst_146 {dimension_numbers = #tpu.dot_dimension_numbers<[1], [0], [0], [1], [0, 0, 1, 1], [], []>} : vector<8x32xbf16>, vector<32x96xbf16>, vector<8x96xf32> -> vector<8x96xf32>
    %565 = arith.index_cast %c6_i32 : i32 to index
    %c0_147 = arith.constant 0 : index
    %c0_148 = arith.constant 0 : index
    %566 = vector.load %arg12[%565, %c0_147, %c0_148] : memref<8x8x96xf32, #tpu.memory_space<vmem>>, vector<1x8x96xf32>
    %567 = vector.shape_cast %566 : vector<1x8x96xf32> to vector<8x96xf32>
    %568 = vector.extract_strided_slice %567 {offsets = [0, 0], sizes = [8, 32], strides = [1, 1]} : vector<8x96xf32> to vector<8x32xf32>
    %569 = vector.extract_strided_slice %564 {offsets = [0, 0], sizes = [8, 32], strides = [1, 1]} : vector<8x96xf32> to vector<8x32xf32>
    %570 = arith.addf %568, %569 : vector<8x32xf32>
    %571 = arith.negf %570 : vector<8x32xf32>
    %572 = math.exp %571 : vector<8x32xf32>
    %cst_149 = arith.constant 1.000000e+00 : f32
    %573 = vector.broadcast %cst_149 : f32 to vector<8x32xf32>
    %574 = arith.addf %573, %572 : vector<8x32xf32>
    %575 = arith.divf %573, %574 : vector<8x32xf32>
    %576 = vector.extract_strided_slice %567 {offsets = [0, 32], sizes = [8, 32], strides = [1, 1]} : vector<8x96xf32> to vector<8x32xf32>
    %577 = vector.extract_strided_slice %564 {offsets = [0, 32], sizes = [8, 32], strides = [1, 1]} : vector<8x96xf32> to vector<8x32xf32>
    %578 = arith.addf %576, %577 : vector<8x32xf32>
    %579 = arith.negf %578 : vector<8x32xf32>
    %580 = math.exp %579 : vector<8x32xf32>
    %cst_150 = arith.constant 1.000000e+00 : f32
    %581 = vector.broadcast %cst_150 : f32 to vector<8x32xf32>
    %582 = arith.addf %581, %580 : vector<8x32xf32>
    %583 = arith.divf %581, %582 : vector<8x32xf32>
    %584 = vector.extract_strided_slice %567 {offsets = [0, 64], sizes = [8, 32], strides = [1, 1]} : vector<8x96xf32> to vector<8x32xf32>
    %585 = vector.extract_strided_slice %564 {offsets = [0, 64], sizes = [8, 32], strides = [1, 1]} : vector<8x96xf32> to vector<8x32xf32>
    %586 = arith.mulf %575, %585 : vector<8x32xf32>
    %587 = arith.addf %584, %586 : vector<8x32xf32>
    %588 = math.tanh %587 : vector<8x32xf32>
    %cst_151 = arith.constant 1.000000e+00 : f32
    %589 = vector.broadcast %cst_151 : f32 to vector<8x32xf32>
    %590 = arith.subf %589, %583 : vector<8x32xf32>
    %591 = arith.mulf %590, %588 : vector<8x32xf32>
    %592 = arith.mulf %583, %537 : vector<8x32xf32>
    %593 = arith.addf %591, %592 : vector<8x32xf32>
    %594 = arith.truncf %593 : vector<8x32xf32> to vector<8x32xbf16>
    %cst_152 = arith.constant dense<0.000000e+00> : vector<8x96xf32>
    %595 = tpu.matmul %594, %2, %cst_152 {dimension_numbers = #tpu.dot_dimension_numbers<[1], [0], [0], [1], [0, 0, 1, 1], [], []>} : vector<8x32xbf16>, vector<32x96xbf16>, vector<8x96xf32> -> vector<8x96xf32>
    %596 = arith.truncf %532 : vector<8x32xf32> to vector<8x32xbf16>
    %cst_153 = arith.constant dense<0.000000e+00> : vector<8x96xf32>
    %597 = tpu.matmul %596, %3, %cst_153 {dimension_numbers = #tpu.dot_dimension_numbers<[1], [0], [0], [1], [0, 0, 1, 1], [], []>} : vector<8x32xbf16>, vector<32x96xbf16>, vector<8x96xf32> -> vector<8x96xf32>
    %598 = vector.extract_strided_slice %595 {offsets = [0, 0], sizes = [8, 32], strides = [1, 1]} : vector<8x96xf32> to vector<8x32xf32>
    %599 = vector.extract_strided_slice %597 {offsets = [0, 0], sizes = [8, 32], strides = [1, 1]} : vector<8x96xf32> to vector<8x32xf32>
    %600 = arith.addf %598, %599 : vector<8x32xf32>
    %601 = arith.negf %600 : vector<8x32xf32>
    %602 = math.exp %601 : vector<8x32xf32>
    %cst_154 = arith.constant 1.000000e+00 : f32
    %603 = vector.broadcast %cst_154 : f32 to vector<8x32xf32>
    %604 = arith.addf %603, %602 : vector<8x32xf32>
    %605 = arith.divf %603, %604 : vector<8x32xf32>
    %606 = vector.extract_strided_slice %595 {offsets = [0, 32], sizes = [8, 32], strides = [1, 1]} : vector<8x96xf32> to vector<8x32xf32>
    %607 = vector.extract_strided_slice %597 {offsets = [0, 32], sizes = [8, 32], strides = [1, 1]} : vector<8x96xf32> to vector<8x32xf32>
    %608 = arith.addf %606, %607 : vector<8x32xf32>
    %609 = arith.negf %608 : vector<8x32xf32>
    %610 = math.exp %609 : vector<8x32xf32>
    %cst_155 = arith.constant 1.000000e+00 : f32
    %611 = vector.broadcast %cst_155 : f32 to vector<8x32xf32>
    %612 = arith.addf %611, %610 : vector<8x32xf32>
    %613 = arith.divf %611, %612 : vector<8x32xf32>
    %614 = vector.extract_strided_slice %595 {offsets = [0, 64], sizes = [8, 32], strides = [1, 1]} : vector<8x96xf32> to vector<8x32xf32>
    %615 = vector.extract_strided_slice %597 {offsets = [0, 64], sizes = [8, 32], strides = [1, 1]} : vector<8x96xf32> to vector<8x32xf32>
    %616 = arith.mulf %605, %615 : vector<8x32xf32>
    %617 = arith.addf %614, %616 : vector<8x32xf32>
    %618 = math.tanh %617 : vector<8x32xf32>
    %cst_156 = arith.constant 1.000000e+00 : f32
    %619 = vector.broadcast %cst_156 : f32 to vector<8x32xf32>
    %620 = arith.subf %619, %613 : vector<8x32xf32>
    %621 = arith.mulf %620, %618 : vector<8x32xf32>
    %622 = arith.mulf %613, %532 : vector<8x32xf32>
    %623 = arith.addf %621, %622 : vector<8x32xf32>
    %cst_157 = arith.constant dense<0.000000e+00> : vector<8x32xf32>
    %624 = tpu.matmul %563, %4, %cst_157 {dimension_numbers = #tpu.dot_dimension_numbers<[1], [0], [0], [1], [0, 0, 1, 1], [], []>} : vector<8x32xbf16>, vector<32x32xbf16>, vector<8x32xf32> -> vector<8x32xf32>
    %625 = arith.truncf %623 : vector<8x32xf32> to vector<8x32xbf16>
    %cst_158 = arith.constant dense<0.000000e+00> : vector<8x32xf32>
    %626 = tpu.matmul %625, %5, %cst_158 {dimension_numbers = #tpu.dot_dimension_numbers<[1], [0], [0], [1], [0, 0, 1, 1], [], []>} : vector<8x32xbf16>, vector<32x32xbf16>, vector<8x32xf32> -> vector<8x32xf32>
    %627 = arith.addf %624, %626 : vector<8x32xf32>
    %628 = math.tanh %627 : vector<8x32xf32>
    %cst_159 = arith.constant dense<0.000000e+00> : vector<8xf32>
    %629 = vector.multi_reduction <add>, %628, %cst_159 [1] : vector<8x32xf32> to vector<8xf32>
    %630 = vector.shape_cast %629 : vector<8xf32> to vector<8x1xf32>
    %cst_160 = arith.constant 3.200000e+01 : f32
    %631 = vector.broadcast %cst_160 : f32 to vector<8x1xf32>
    %632 = arith.divf %630, %631 : vector<8x1xf32>
    %633 = vector.broadcast %632 : vector<8x1xf32> to vector<8x32xf32>
    %634 = arith.subf %628, %633 : vector<8x32xf32>
    %635 = arith.mulf %634, %634 : vector<8x32xf32>
    %cst_161 = arith.constant dense<0.000000e+00> : vector<8xf32>
    %636 = vector.multi_reduction <add>, %635, %cst_161 [1] : vector<8x32xf32> to vector<8xf32>
    %637 = vector.shape_cast %636 : vector<8xf32> to vector<8x1xf32>
    %cst_162 = arith.constant 0.0322580636 : f32
    %638 = vector.broadcast %cst_162 : f32 to vector<8x1xf32>
    %639 = arith.mulf %637, %638 : vector<8x1xf32>
    %640 = math.sqrt %639 : vector<8x1xf32>
    %cst_163 = arith.constant 9.99999997E-7 : f32
    %641 = vector.broadcast %cst_163 : f32 to vector<8x1xf32>
    %642 = arith.addf %640, %641 : vector<8x1xf32>
    %643 = tpu.reciprocal %642 {approx = true} : vector<8x1xf32> -> vector<8x1xf32>
    %644 = vector.broadcast %643 : vector<8x1xf32> to vector<8x32xf32>
    %645 = arith.mulf %634, %644 : vector<8x32xf32>
    %646 = vector.broadcast %6 : vector<1x32xf32> to vector<8x32xf32>
    %647 = arith.mulf %646, %645 : vector<8x32xf32>
    %648 = vector.broadcast %7 : vector<1x32xf32> to vector<8x32xf32>
    %649 = arith.addf %647, %648 : vector<8x32xf32>
    %650 = arith.index_cast %c6_i32 : i32 to index
    %c0_164 = arith.constant 0 : index
    %c0_165 = arith.constant 0 : index
    %651 = vector.load %arg11[%650, %c0_164, %c0_165] : memref<8x8x32xf32, #tpu.memory_space<vmem>>, vector<1x8x32xf32>
    %652 = vector.shape_cast %651 : vector<1x8x32xf32> to vector<8x32xf32>
    %653 = vector.shape_cast %649 : vector<8x32xf32> to vector<1x8x32xf32>
    tpu.vector_store %arg11[%650, %c0_164, %c0_165], %653 {strides = array<i32>} : memref<8x8x32xf32, #tpu.memory_space<vmem>>, vector<1x8x32xf32>,
    %c7_i32 = arith.constant 7 : i32
    %654 = arith.truncf %628 : vector<8x32xf32> to vector<8x32xbf16>
    %cst_166 = arith.constant dense<0.000000e+00> : vector<8x96xf32>
    %655 = tpu.matmul %654, %1, %cst_166 {dimension_numbers = #tpu.dot_dimension_numbers<[1], [0], [0], [1], [0, 0, 1, 1], [], []>} : vector<8x32xbf16>, vector<32x96xbf16>, vector<8x96xf32> -> vector<8x96xf32>
    %656 = arith.index_cast %c7_i32 : i32 to index
    %c0_167 = arith.constant 0 : index
    %c0_168 = arith.constant 0 : index
    %657 = vector.load %arg12[%656, %c0_167, %c0_168] : memref<8x8x96xf32, #tpu.memory_space<vmem>>, vector<1x8x96xf32>
    %658 = vector.shape_cast %657 : vector<1x8x96xf32> to vector<8x96xf32>
    %659 = vector.extract_strided_slice %658 {offsets = [0, 0], sizes = [8, 32], strides = [1, 1]} : vector<8x96xf32> to vector<8x32xf32>
    %660 = vector.extract_strided_slice %655 {offsets = [0, 0], sizes = [8, 32], strides = [1, 1]} : vector<8x96xf32> to vector<8x32xf32>
    %661 = arith.addf %659, %660 : vector<8x32xf32>
    %662 = arith.negf %661 : vector<8x32xf32>
    %663 = math.exp %662 : vector<8x32xf32>
    %cst_169 = arith.constant 1.000000e+00 : f32
    %664 = vector.broadcast %cst_169 : f32 to vector<8x32xf32>
    %665 = arith.addf %664, %663 : vector<8x32xf32>
    %666 = arith.divf %664, %665 : vector<8x32xf32>
    %667 = vector.extract_strided_slice %658 {offsets = [0, 32], sizes = [8, 32], strides = [1, 1]} : vector<8x96xf32> to vector<8x32xf32>
    %668 = vector.extract_strided_slice %655 {offsets = [0, 32], sizes = [8, 32], strides = [1, 1]} : vector<8x96xf32> to vector<8x32xf32>
    %669 = arith.addf %667, %668 : vector<8x32xf32>
    %670 = arith.negf %669 : vector<8x32xf32>
    %671 = math.exp %670 : vector<8x32xf32>
    %cst_170 = arith.constant 1.000000e+00 : f32
    %672 = vector.broadcast %cst_170 : f32 to vector<8x32xf32>
    %673 = arith.addf %672, %671 : vector<8x32xf32>
    %674 = arith.divf %672, %673 : vector<8x32xf32>
    %675 = vector.extract_strided_slice %658 {offsets = [0, 64], sizes = [8, 32], strides = [1, 1]} : vector<8x96xf32> to vector<8x32xf32>
    %676 = vector.extract_strided_slice %655 {offsets = [0, 64], sizes = [8, 32], strides = [1, 1]} : vector<8x96xf32> to vector<8x32xf32>
    %677 = arith.mulf %666, %676 : vector<8x32xf32>
    %678 = arith.addf %675, %677 : vector<8x32xf32>
    %679 = math.tanh %678 : vector<8x32xf32>
    %cst_171 = arith.constant 1.000000e+00 : f32
    %680 = vector.broadcast %cst_171 : f32 to vector<8x32xf32>
    %681 = arith.subf %680, %674 : vector<8x32xf32>
    %682 = arith.mulf %681, %679 : vector<8x32xf32>
    %683 = arith.mulf %674, %628 : vector<8x32xf32>
    %684 = arith.addf %682, %683 : vector<8x32xf32>
    %685 = arith.truncf %684 : vector<8x32xf32> to vector<8x32xbf16>
    %cst_172 = arith.constant dense<0.000000e+00> : vector<8x96xf32>
    %686 = tpu.matmul %685, %2, %cst_172 {dimension_numbers = #tpu.dot_dimension_numbers<[1], [0], [0], [1], [0, 0, 1, 1], [], []>} : vector<8x32xbf16>, vector<32x96xbf16>, vector<8x96xf32> -> vector<8x96xf32>
    %687 = arith.truncf %623 : vector<8x32xf32> to vector<8x32xbf16>
    %cst_173 = arith.constant dense<0.000000e+00> : vector<8x96xf32>
    %688 = tpu.matmul %687, %3, %cst_173 {dimension_numbers = #tpu.dot_dimension_numbers<[1], [0], [0], [1], [0, 0, 1, 1], [], []>} : vector<8x32xbf16>, vector<32x96xbf16>, vector<8x96xf32> -> vector<8x96xf32>
    %689 = vector.extract_strided_slice %686 {offsets = [0, 0], sizes = [8, 32], strides = [1, 1]} : vector<8x96xf32> to vector<8x32xf32>
    %690 = vector.extract_strided_slice %688 {offsets = [0, 0], sizes = [8, 32], strides = [1, 1]} : vector<8x96xf32> to vector<8x32xf32>
    %691 = arith.addf %689, %690 : vector<8x32xf32>
    %692 = arith.negf %691 : vector<8x32xf32>
    %693 = math.exp %692 : vector<8x32xf32>
    %cst_174 = arith.constant 1.000000e+00 : f32
    %694 = vector.broadcast %cst_174 : f32 to vector<8x32xf32>
    %695 = arith.addf %694, %693 : vector<8x32xf32>
    %696 = arith.divf %694, %695 : vector<8x32xf32>
    %697 = vector.extract_strided_slice %686 {offsets = [0, 32], sizes = [8, 32], strides = [1, 1]} : vector<8x96xf32> to vector<8x32xf32>
    %698 = vector.extract_strided_slice %688 {offsets = [0, 32], sizes = [8, 32], strides = [1, 1]} : vector<8x96xf32> to vector<8x32xf32>
    %699 = arith.addf %697, %698 : vector<8x32xf32>
    %700 = arith.negf %699 : vector<8x32xf32>
    %701 = math.exp %700 : vector<8x32xf32>
    %cst_175 = arith.constant 1.000000e+00 : f32
    %702 = vector.broadcast %cst_175 : f32 to vector<8x32xf32>
    %703 = arith.addf %702, %701 : vector<8x32xf32>
    %704 = arith.divf %702, %703 : vector<8x32xf32>
    %705 = vector.extract_strided_slice %686 {offsets = [0, 64], sizes = [8, 32], strides = [1, 1]} : vector<8x96xf32> to vector<8x32xf32>
    %706 = vector.extract_strided_slice %688 {offsets = [0, 64], sizes = [8, 32], strides = [1, 1]} : vector<8x96xf32> to vector<8x32xf32>
    %707 = arith.mulf %696, %706 : vector<8x32xf32>
    %708 = arith.addf %705, %707 : vector<8x32xf32>
    %709 = math.tanh %708 : vector<8x32xf32>
    %cst_176 = arith.constant 1.000000e+00 : f32
    %710 = vector.broadcast %cst_176 : f32 to vector<8x32xf32>
    %711 = arith.subf %710, %704 : vector<8x32xf32>
    %712 = arith.mulf %711, %709 : vector<8x32xf32>
    %713 = arith.mulf %704, %623 : vector<8x32xf32>
    %714 = arith.addf %712, %713 : vector<8x32xf32>
    %cst_177 = arith.constant dense<0.000000e+00> : vector<8x32xf32>
    %715 = tpu.matmul %654, %4, %cst_177 {dimension_numbers = #tpu.dot_dimension_numbers<[1], [0], [0], [1], [0, 0, 1, 1], [], []>} : vector<8x32xbf16>, vector<32x32xbf16>, vector<8x32xf32> -> vector<8x32xf32>
    %716 = arith.truncf %714 : vector<8x32xf32> to vector<8x32xbf16>
    %cst_178 = arith.constant dense<0.000000e+00> : vector<8x32xf32>
    %717 = tpu.matmul %716, %5, %cst_178 {dimension_numbers = #tpu.dot_dimension_numbers<[1], [0], [0], [1], [0, 0, 1, 1], [], []>} : vector<8x32xbf16>, vector<32x32xbf16>, vector<8x32xf32> -> vector<8x32xf32>
    %718 = arith.addf %715, %717 : vector<8x32xf32>
    %719 = math.tanh %718 : vector<8x32xf32>
    %cst_179 = arith.constant dense<0.000000e+00> : vector<8xf32>
    %720 = vector.multi_reduction <add>, %719, %cst_179 [1] : vector<8x32xf32> to vector<8xf32>
    %721 = vector.shape_cast %720 : vector<8xf32> to vector<8x1xf32>
    %cst_180 = arith.constant 3.200000e+01 : f32
    %722 = vector.broadcast %cst_180 : f32 to vector<8x1xf32>
    %723 = arith.divf %721, %722 : vector<8x1xf32>
    %724 = vector.broadcast %723 : vector<8x1xf32> to vector<8x32xf32>
    %725 = arith.subf %719, %724 : vector<8x32xf32>
    %726 = arith.mulf %725, %725 : vector<8x32xf32>
    %cst_181 = arith.constant dense<0.000000e+00> : vector<8xf32>
    %727 = vector.multi_reduction <add>, %726, %cst_181 [1] : vector<8x32xf32> to vector<8xf32>
    %728 = vector.shape_cast %727 : vector<8xf32> to vector<8x1xf32>
    %cst_182 = arith.constant 0.0322580636 : f32
    %729 = vector.broadcast %cst_182 : f32 to vector<8x1xf32>
    %730 = arith.mulf %728, %729 : vector<8x1xf32>
    %731 = math.sqrt %730 : vector<8x1xf32>
    %cst_183 = arith.constant 9.99999997E-7 : f32
    %732 = vector.broadcast %cst_183 : f32 to vector<8x1xf32>
    %733 = arith.addf %731, %732 : vector<8x1xf32>
    %734 = tpu.reciprocal %733 {approx = true} : vector<8x1xf32> -> vector<8x1xf32>
    %735 = vector.broadcast %734 : vector<8x1xf32> to vector<8x32xf32>
    %736 = arith.mulf %725, %735 : vector<8x32xf32>
    %737 = vector.broadcast %6 : vector<1x32xf32> to vector<8x32xf32>
    %738 = arith.mulf %737, %736 : vector<8x32xf32>
    %739 = vector.broadcast %7 : vector<1x32xf32> to vector<8x32xf32>
    %740 = arith.addf %738, %739 : vector<8x32xf32>
    %741 = arith.index_cast %c7_i32 : i32 to index
    %c0_184 = arith.constant 0 : index
    %c0_185 = arith.constant 0 : index
    %742 = vector.load %arg11[%741, %c0_184, %c0_185] : memref<8x8x32xf32, #tpu.memory_space<vmem>>, vector<1x8x32xf32>
    %743 = vector.shape_cast %742 : vector<1x8x32xf32> to vector<8x32xf32>
    %744 = vector.shape_cast %740 : vector<8x32xf32> to vector<1x8x32xf32>
    tpu.vector_store %arg11[%741, %c0_184, %c0_185], %744 {strides = array<i32>} : memref<8x8x32xf32, #tpu.memory_space<vmem>>, vector<1x8x32xf32>,
    %c8_i32 = arith.constant 8 : i32
    return
  }
  func.func @transform_0(%arg0: i32) -> (i32, i32, i32) {
    %c0_i32 = arith.constant 0 : i32
    %c0_i32_0 = arith.constant 0 : i32
    %c0_i32_1 = arith.constant 0 : i32
    return %c0_i32, %arg0, %c0_i32_0 : i32, i32, i32
  }
  func.func @transform_1(%arg0: i32) -> (i32, i32, i32) {
    %c0_i32 = arith.constant 0 : i32
    %c0_i32_0 = arith.constant 0 : i32
    %c0_i32_1 = arith.constant 0 : i32
    return %c0_i32, %arg0, %c0_i32_0 : i32, i32, i32
  }
  func.func @transform_2(%arg0: i32) -> (i32, i32) {
    %c0_i32 = arith.constant 0 : i32
    %c0_i32_0 = arith.constant 0 : i32
    %c0_i32_1 = arith.constant 0 : i32
    return %c0_i32, %c0_i32_0 : i32, i32
  }
  func.func @transform_3(%arg0: i32) -> (i32, i32) {
    %c0_i32 = arith.constant 0 : i32
    %c0_i32_0 = arith.constant 0 : i32
    %c0_i32_1 = arith.constant 0 : i32
    return %c0_i32, %c0_i32_0 : i32, i32
  }
  func.func @transform_4(%arg0: i32) -> (i32, i32) {
    %c0_i32 = arith.constant 0 : i32
    %c0_i32_0 = arith.constant 0 : i32
    %c0_i32_1 = arith.constant 0 : i32
    return %c0_i32, %c0_i32_0 : i32, i32
  }
  func.func @transform_5(%arg0: i32) -> (i32, i32) {
    %c0_i32 = arith.constant 0 : i32
    %c0_i32_0 = arith.constant 0 : i32
    %c0_i32_1 = arith.constant 0 : i32
    return %c0_i32, %c0_i32_0 : i32, i32
  }
  func.func @transform_6(%arg0: i32) -> (i32, i32) {
    %c0_i32 = arith.constant 0 : i32
    %c0_i32_0 = arith.constant 0 : i32
    %c0_i32_1 = arith.constant 0 : i32
    return %c0_i32, %c0_i32_0 : i32, i32
  }
  func.func @transform_7(%arg0: i32) -> (i32, i32) {
    %c0_i32 = arith.constant 0 : i32
    %c0_i32_0 = arith.constant 0 : i32
    %c0_i32_1 = arith.constant 0 : i32
    return %c0_i32, %c0_i32_0 : i32, i32
  }
  func.func @transform_8(%arg0: i32) -> (i32, i32) {
    %c0_i32 = arith.constant 0 : i32
    %c0_i32_0 = arith.constant 0 : i32
    %c0_i32_1 = arith.constant 0 : i32
    return %c0_i32, %c0_i32_0 : i32, i32
  }
  func.func @transform_9(%arg0: i32) -> (i32, i32) {
    %c0_i32 = arith.constant 0 : i32
    %c0_i32_0 = arith.constant 0 : i32
    %c0_i32_1 = arith.constant 0 : i32
    return %c0_i32, %c0_i32_0 : i32, i32
  }
  func.func @transform_10(%arg0: i32) -> (i32, i32, i32) {
    %c0_i32 = arith.constant 0 : i32
    %c0_i32_0 = arith.constant 0 : i32
    %c0_i32_1 = arith.constant 0 : i32
    return %c0_i32, %arg0, %c0_i32_0 : i32, i32, i32
  }
}

</mosaic_0001>

<bundles_post_ra>
// kernel: tpu_custom_call.1
= control target key start
LH: loop header
LB: loop body
LE: loop exit
PB: predicated region body
PF: predicated region fallthrough
CT: control target
= control target key end

     0   :  { %15 = vsyncpa [#allocation4], 0  ;;  %s3051_s0 = inlined_call_operand.hbm [shape: bf16[8,8,16], index: 0, kind: input, shape index: {}]   ;;  %s3052_s1 = inlined_call_operand.hbm [shape: f32[2,8,32], index: 1, kind: input, shape index: {}]   ;;  %s3053_s2 = inlined_call_operand.hbm [shape: bf16[16,96], index: 2, kind: input, shape index: {}]   ;;  %s3054_s3 = inlined_call_operand.hbm [shape: bf16[32,96], index: 3, kind: input, shape index: {}]   ;;  %s3055_s4 = inlined_call_operand.hbm [shape: bf16[32,96], index: 4, kind: input, shape index: {}]   ;;  %s3056_s5 = inlined_call_operand.hbm [shape: bf16[32,96], index: 5, kind: input, shape index: {}]   ;;  %s3057_s6 = inlined_call_operand.hbm [shape: bf16[32,32], index: 6, kind: input, shape index: {}]   ;;  %s3058_s7 = inlined_call_operand.hbm [shape: bf16[32,32], index: 7, kind: input, shape index: {}]   ;;  %s3059_s8 = inlined_call_operand.vmem [shape: f32[1,32], index: 8, kind: input, shape index: {}]   ;;  %s3060_s9 = inlined_call_operand.vmem [shape: f32[1,32], index: 9, kind: input, shape index: {}]   ;;  %s3061_s10 = inlined_call_operand.hbm [shape: f32[8,8,32], index: 10, kind: output, shape index: {}]  }
   0x1   :  { %16 = vsyncpa [#allocation7], 0 }
   0x2   :  { %17 = vsyncpa [#allocation10], 0 }
   0x3   :  { %18 = vsyncpa [#allocation13], 0 }
   0x4   :  { %19 = vsyncpa [#allocation16], 0  ;;  %s38_s15 = sshll.u32 %s3052_s1, 4  ;;  %s39_s15 = int_to_ptr.hbm [resolvable:$true] %s38_s15 }
   0x5   :  { %20 = vsyncpa [#allocation5], 0  ;;  %s2490_s16 = smov [#allocation6]   ;;  %s2491_s18 = smov 128  }
   0x6   :  { %s40_s17 = sshll.u32 %s2490_s16, 4  ;;  %s2492_s19 = smov 8   ;;  %s41_s17 = int_to_ptr.vmem [resolvable:$true] %s40_s17 }
   0x7   :  { %46 = dma.hbm_to_vmem [thread:$0]  %s39_s15, 256, %s41_s17, [#allocation7], %s2491_s18, %s2491_s18, %s2492_s19  }
   0x8   :  { %s64_s22 = sshll.u32 %s3054_s3, 4  ;;  %s2493_s23 = smov [#allocation9]   ;;  %s65_s22 = int_to_ptr.hbm [resolvable:$true] %s64_s22 }
   0x9   :  { %s66_s24 = sshll.u32 %s2493_s23, 4  ;;  %s90_s26 = sshll.u32 %s3056_s5, 4  ;;  %s67_s24 = int_to_ptr.vmem [resolvable:$true] %s66_s24  ;;  %s91_s26 = int_to_ptr.hbm [resolvable:$true] %s90_s26 }
   0xa   :  { %s2494_s27 = smov 64   ;;  %s2495_s28 = smov 4  }
   0xb   :  { %72 = dma.hbm_to_vmem [thread:$0]  %s65_s22, 256, %s67_s24, [#allocation10], %s2494_s27, %s2494_s27, %s2495_s28  }
   0xc   :  { %s25_s11 = sshll.u32 %s3051_s0, 4  ;;  %s2496_s3 = smov [#allocation12]   ;;  %s26_s11 = int_to_ptr.hbm [resolvable:$true] %s25_s11 }
   0xd   :  { %s92_s12 = sshll.u32 %s2496_s3, 4  ;;  %s2497_s5 = smov [#allocation3]   ;;  %s93_s12 = int_to_ptr.vmem [resolvable:$true] %s92_s12 }
   0xe   :  { %98 = dma.hbm_to_vmem [thread:$0]  %s91_s26, 256, %s93_s12, [#allocation13], %s2494_s27, %s2494_s27, %s2495_s28  }
   0xf   :  { %s27_s13 = sshll.u32 %s2497_s5, 4  ;;  %s51_s16 = sshll.u32 %s3053_s2, 4  ;;  %s28_s13 = int_to_ptr.vmem [resolvable:$true] %s27_s13  ;;  %s52_s16 = int_to_ptr.hbm [resolvable:$true] %s51_s16 }
  0x10   :  { %33 = dma.hbm_to_vmem [thread:$0]  %s26_s11, 512, %s28_s13, [#allocation4], %s2494_s27, %s2494_s27, %s2495_s28  }
  0x11   :  { %s77_s20 = sshll.u32 %s3055_s4, 4  ;;  %s2498_s21 = smov [#allocation8]   ;;  %s78_s20 = int_to_ptr.hbm [resolvable:$true] %s77_s20 }
  0x12   :  { %s53_s22 = sshll.u32 %s2498_s21, 4  ;;  %s2499_s23 = smov [#allocation11]   ;;  %s54_s22 = int_to_ptr.vmem [resolvable:$true] %s53_s22 }
  0x13   :  { %59 = dma.hbm_to_vmem [thread:$0]  %s52_s16, 128, %s54_s22, [#allocation7], %s2494_s27, %s2494_s27, %s2495_s28  }
  0x14   :  { %s79_s2 = sshll.u32 %s2499_s23, 4  ;;  %s103_s1 = sshll.u32 %s3057_s6, 4  ;;  %s80_s2 = int_to_ptr.vmem [resolvable:$true] %s79_s2  ;;  %s104_s1 = int_to_ptr.hbm [resolvable:$true] %s103_s1 }
  0x15   :  { %85 = dma.hbm_to_vmem [thread:$0]  %s78_s20, 256, %s80_s2, [#allocation10], %s2494_s27, %s2494_s27, %s2495_s28  }
  0x16   :  { %s116_s29 = sshll.u32 %s3058_s7, 4  ;;  %s2500_s30 = smov [#allocation14]   ;;  %s117_s29 = int_to_ptr.hbm [resolvable:$true] %s116_s29 }
  0x17   :  { %s105_s11 = sshll.u32 %s2500_s30, 4  ;;  %s2501_s3 = smov [#allocation15]   ;;  %s106_s11 = int_to_ptr.vmem [resolvable:$true] %s105_s11 }
  0x18   :  { %111 = dma.hbm_to_vmem [thread:$0]  %s104_s1, 256, %s106_s11, [#allocation13], %s2494_s27, %s2494_s27, %s2495_s28  }
  0x19   :  { %s118_s6 = sshll.u32 %s2501_s3, 4  ;;  %s119_s6 = int_to_ptr.vmem [resolvable:$true] %s118_s6 }
  0x1a   :  { %124 = dma.hbm_to_vmem [thread:$0]  %s117_s29, 256, %s119_s6, [#allocation16], %s2494_s27, %s2494_s27, %s2495_s28  }
  0x1b   :  { %2478 = dma.done.wait [#allocation4], 512  }
  0x1c   :  { %2479 = vsyncadd [#allocation4], 4294966784 }
  0x1d   :  { %2480 = dma.done.wait [#allocation7], 384  }
  0x1e   :  { %2481 = vsyncadd [#allocation7], 4294966912 }
  0x1f   :  { %2482 = dma.done.wait [#allocation10], 512  }
  0x20   :  { %2483 = vsyncadd [#allocation10], 4294966784 }
  0x21   :  { %2484 = dma.done.wait [#allocation13], 512  }
  0x22   :  { %2485 = vsyncadd [#allocation13], 4294966784 }
  0x23   :  { %2486 = dma.done.wait [#allocation16], 256  }
  0x24   :  { %2487 = vsyncadd [#allocation16], 4294967040  ;;  %v2073_v0 = vld [vmem:[#allocation8] sm:$0xff]  ;;  %v2609_v1 = vld [vmem:[#allocation9 + $0x8] sm:$0xff]  ;;  %vm220_vm0 = vcmask 130048   ;;  %vm287_vm1 = vcmask 261120  }
  0x25   :  { %v2084_v2 = vld [vmem:[#allocation3] sm:$0xff]  ;;  %240 = vmatpush.bf16.msra.mxu0 %v2073_v0  ;;  %297 = vmatpush.bf16.msra.mxu1 %v2609_v1  ;;  %v2612_v3 = vld [vmem:[#allocation9] sm:$0xff]  ;;  %vm262_vm2 = vcmask 785408   ;;  %s2502_s7 = smov 96   ;;  %s2503_s28 = smov 32   ;;  %v2628_v31 = vld [vmem:[#allocation11 + $0x8] sm:$0xff] }
  0x26   :  { %v271_v4 = vld [vmem:[#allocation6] sm:$0xff]  ;;  %v2631_v32 = vld [vmem:[#allocation12] sm:$0xff]  ;;  %v273_v33 = vld [vmem:[#allocation6 + $0x8] sm:$0xff]  ;;  %373 = vmatpush.bf16.msra.mxu2 %v2628_v31  ;;  %s1936_s16 = sshll.u32 %s3061_s10, 4  ;;  %s1937_s16 = int_to_ptr.hbm [resolvable:$true] %s1936_s16 }
  0x27   :  { %v2615_v5 = vpack.c.bf16 %v271_v4, %v271_v4  ;;  %v2626_v30 = vld [vmem:[#allocation12 + $0x8] sm:$0xff]  ;;  %v2635_v34 = vld [vmem:[#allocation11] sm:$0xff]  ;;  %v380_v35 = vpack.c.bf16 %v273_v33, %v273_v33 }
  0x28   :  { %1973 = vmatmul.msk.bf16.vlgmr.msra.gmra.mxu0 %vm220_vm0, %v2084_v2  ;;  %402 = vmatpush.bf16.msra.mxu3 %v2626_v30 }
  0x29   :  { %298 = vmatpush.bf16.msra.mxu1 %v2612_v3  ;;  %836 = vmatpush.bf16.msrb.mxu0 %v2626_v30 }
  0x2a   :  { %374 = vmatpush.bf16.msra.mxu2 %v2635_v34 }
  0x2c   :  { %1985 = vmatmul.msk.bf16.vlgmr.msra.gmra.mxu1 %vm287_vm1, %v2615_v5  ;;  %403 = vmatpush.bf16.msra.mxu3 %v2631_v32 }
  0x2d   :  { %837 = vmatpush.bf16.msrb.mxu0 %v2631_v32 }
  0x2f   :  { %2004 = vmatmul.msk.bf16.vlgmr.msra.gmra.mxu3 %vm287_vm1, %v380_v35 }
  0x30   :  { %561 = vmatpush.bf16.msrb.mxu3 %v2609_v1 }
  0x31   :  { %1020 = vmatpush.bf16.msra.mxu0 %v2628_v31 }
  0x34   :  { %562 = vmatpush.bf16.msrb.mxu3 %v2612_v3 }
  0x35   :  { %1021 = vmatpush.bf16.msra.mxu0 %v2635_v34 }
  0xa5   :  { %v242_v6 = vpop.f32.mrf.mxu0 }
  0xa6   :  { %263 = vst.msk [vmem:[#allocation2] sm:$0xff] %vm262_vm2, %v242_v6  ;;  %v2651_v6 = vld [vmem:[#allocation14 + $0x8] sm:$0xff] }
  0xa7   :  { %502 = vmatpush.bf16.msrb.mxu2 %v2651_v6 }
  0xa9   :  { %v300_v7 = vpop.f32.mrf.mxu1 }
  0xaa   :  { %326 = vrot.lane.b32.xlu0 %v300_v7, %s2494_s27 }
  0xad   :  { %v244_v8 = vpop.f32.mrf.mxu0  ;;  %v304_v10 = vld [vmem:[#allocation2] sm:$0xff] }
  0xae   :  { %264 = vst.msk [vmem:[#allocation2 + $0x8] sm:$0xff] %vm262_vm2, %v244_v8  ;;  %v305_v11 = vadd.f32 %v304_v10, %v300_v7  ;;  %v2653_v7 = vld [vmem:[#allocation15 + $0x8] sm:$0xff]  ;;  %v2656_v8 = vld [vmem:[#allocation14] sm:$0xff] }
  0xaf   :  { %477 = vmatpush.bf16.msrb.mxu1 %v2653_v7  ;;  %698 = vmatpush.bf16.msra.mxu3 %v2653_v7 }
  0xb0   :  { %v1986_v12 = vmul.f32 -1.442695, %v305_v11  ;;  %503 = vmatpush.bf16.msrb.mxu2 %v2656_v8 }
  0xb1   :  { %v302_v9 = vpop.f32.mrf.mxu1 }
  0xb2   :  { %2106 = vpow2.f32 %v1986_v12  ;;  %v405_v44 = vpop.f32.mrf.mxu3  ;;  %v2659_v9 = vld [vmem:[#allocation15] sm:$0xff] }
  0xb3   :  { %478 = vmatpush.bf16.msrb.mxu1 %v2659_v9  ;;  %699 = vmatpush.bf16.msra.mxu3 %v2659_v9 }
  0xb7   :  { %626 = vmatpush.bf16.msra.mxu1 %v2628_v31 }
  0xb8   :  { %v2107_v13 = vpop.eup %2106 }
  0xb9   :  { %v309_v14 = vadd.f32 1.0, %v2107_v13 }
  0xba   :  { %v407_v45 = vpop.f32.mrf.mxu3 }
  0xbb   :  { %2108 = vrcp.f32 %v309_v14  ;;  %v321_v20 = vand.u32 2147483648, %v309_v14  ;;  %vm315_vm4 = vweird.f32 %v309_v14  ;;  %v319_v21 = vand.u32 2147483647, %v309_v14  ;;  %627 = vmatpush.bf16.msra.mxu1 %v2635_v34 }
  0xbd   :  { %v322_v23 = vor.u32 1.1754944e-38, %v321_v20  ;;  %vm320_vm6 = vcmp.eq.f32.partialorder %v319_v21, 8.507059e+37 }
  0xc1   :  { %v2109_v15 = vpop.eup %2108 }
  0xc2   :  { %v311_v16 = vmul.f32 %v2109_v15, %v309_v14  ;;  %vm316_vm3 = vweird.f32 %v2109_v15 }
  0xc3   :  { %vm317_vm5 = vmor %vm315_vm4, %vm316_vm3 }
  0xc4   :  { %v312_v17 = vsub.f32 1.0, %v311_v16 }
  0xc6   :  { %v313_v18 = vmul.f32 %v2109_v15, %v312_v17 }
  0xc8   :  { %v314_v19 = vadd.f32 %v2109_v15, %v313_v18 }
  0xca   :  { %v318_v22 = vsel %vm317_vm5, %v2109_v15, %v314_v19 }
  0xcb   :  { %v323_v25 = vsel %vm320_vm6, %v322_v23, %v318_v22 }
  0xcc   :  { %v336_v37 = vsub.f32 1.0, %v323_v25 }
 0x11c   :  { %v327_v24 = vpop.permute.xlu0 %326 }
 0x11d   :  { %v329_v26 = vmul.f32 %v327_v24, %v323_v25 }
 0x11f   :  { %331 = vrot.lane.b32.xlu0 %v329_v26, %s2494_s27 }
 0x191   :  { %v332_v27 = vpop.permute.xlu0 %331 }
 0x192   :  { %v334_v28 = vadd.f32 %v332_v27, %v304_v10 }
 0x194   :  { %2110 = vtanh.f32 %v334_v28  ;;  %v569_v28 = vld [vmem:[#allocation2 + $0x8] sm:$0xff] }
 0x19a   :  { %v2111_v29 = vpop.eup %2110 }
 0x19b   :  { %338 = vrot.lane.b32.xlu1 %v2111_v29, %s2502_s7 }
 0x1a3   :  { %343 = vrot.lane.b32.xlu1 %v271_v4, %s2503_s28 }
 0x20d   :  { %v339_v36 = vpop.permute.xlu1 %338 }
 0x20e   :  { %v341_v39 = vmul.f32 %v339_v36, %v336_v37 }
 0x215   :  { %v344_v38 = vpop.permute.xlu1 %343 }
 0x216   :  { %v346_v40 = vmul.f32 %v344_v38, %v323_v25 }
 0x218   :  { %v347_v41 = vadd.f32 %v346_v40, %v341_v39 }
 0x21a   :  { %v348_v42 = vpack.c.bf16 %v347_v41, %v347_v41 }
 0x21c   :  { %350 = vrot.lane.b32.xlu2 %v348_v42, %s2502_s7 }
 0x224   :  { %430 = vrot.lane.b32.xlu2 %v405_v44, %s2494_s27 }
 0x22c   :  { %447 = vrot.lane.b32.xlu2 %v273_v33, %s2503_s28 }
 0x276   :  { %v351_v43 = vpop.permute.xlu2 %350 }
 0x277   :  { %1995 = vmatmul.msk.bf16.vlgmr.msra.gmra.mxu2 %vm287_vm1, %v351_v43 }
 0x278   :  { %639 = vmatpush.bf16.msra.mxu2 %v2626_v30 }
 0x27c   :  { %640 = vmatpush.bf16.msra.mxu2 %v2631_v32 }
 0x27e   :  { %v431_v62 = vpop.permute.xlu2 %430 }
 0x286   :  { %v448_v10 = vpop.permute.xlu2 %447 }
 0x287   :  { %2023 = vmatmul.msk.bf16.vlgmr.msrb.gmra.mxu2 %vm287_vm1, %v2615_v5 }
 0x288   :  { %758 = vmatpush.bf16.msrb.mxu2 %v2609_v1 }
 0x28c   :  { %759 = vmatpush.bf16.msrb.mxu2 %v2612_v3 }
 0x2fa   :  { %v376_v46 = vpop.f32.mrf.mxu2 }
 0x2fb   :  { %v409_v47 = vadd.f32 %v405_v44, %v376_v46 }
 0x2fd   :  { %v2005_v48 = vmul.f32 -1.442695, %v409_v47 }
 0x2ff   :  { %2112 = vpow2.f32 %v2005_v48 }
 0x302   :  { %v378_v49 = vpop.f32.mrf.mxu2 }
 0x305   :  { %v2113_v50 = vpop.eup %2112 }
 0x306   :  { %v413_v51 = vadd.f32 1.0, %v2113_v50 }
 0x308   :  { %2114 = vrcp.f32 %v413_v51  ;;  %v425_v55 = vand.u32 2147483648, %v413_v51  ;;  %v423_v57 = vand.u32 2147483647, %v413_v51  ;;  %vm419_vm8 = vweird.f32 %v413_v51 }
 0x30a   :  { %v426_v59 = vor.u32 1.1754944e-38, %v425_v55  ;;  %vm424_vm10 = vcmp.eq.f32.partialorder %v423_v57, 8.507059e+37  ;;  %v505_v5 = vpop.f32.mrf.mxu2 }
 0x30e   :  { %v2115_v52 = vpop.eup %2114 }
 0x30f   :  { %v415_v53 = vmul.f32 %v2115_v52, %v413_v51  ;;  %vm420_vm7 = vweird.f32 %v2115_v52 }
 0x310   :  { %vm421_vm9 = vmor %vm419_vm8, %vm420_vm7 }
 0x311   :  { %v416_v54 = vsub.f32 1.0, %v415_v53 }
 0x312   :  { %v507_v18 = vpop.f32.mrf.mxu2 }
 0x313   :  { %v417_v56 = vmul.f32 %v2115_v52, %v416_v54 }
 0x315   :  { %v418_v58 = vadd.f32 %v2115_v52, %v417_v56 }
 0x317   :  { %v422_v60 = vsel %vm421_vm9, %v2115_v52, %v418_v58 }
 0x318   :  { %v427_v61 = vsel %vm424_vm10, %v426_v59, %v422_v60 }
 0x319   :  { %v433_v63 = vmul.f32 %v431_v62, %v427_v61  ;;  %v440_v11 = vsub.f32 1.0, %v427_v61  ;;  %v450_v13 = vmul.f32 %v448_v10, %v427_v61 }
 0x31b   :  { %435 = vrot.lane.b32.xlu0 %v433_v63, %s2494_s27 }
 0x38d   :  { %v436_v0 = vpop.permute.xlu0 %435 }
 0x38e   :  { %v438_v2 = vadd.f32 %v436_v0, %v376_v46 }
 0x390   :  { %2116 = vtanh.f32 %v438_v2 }
 0x396   :  { %v2117_v4 = vpop.eup %2116 }
 0x397   :  { %442 = vrot.lane.b32.xlu1 %v2117_v4, %s2502_s7 }
 0x409   :  { %v443_v12 = vpop.permute.xlu1 %442 }
 0x40a   :  { %v445_v14 = vmul.f32 %v443_v12, %v440_v11 }
 0x40c   :  { %v2673_v15 = vadd.f32 %v450_v13, %v445_v14 }
 0x40e   :  { %v452_v16 = vpack.c.bf16 %v2673_v15, %v2673_v15 }
 0x410   :  { %454 = vrot.lane.b32.xlu0 %v452_v16, %s2502_s7 }
 0x482   :  { %v455_v17 = vpop.permute.xlu0 %454 }
 0x483   :  { %2014 = vmatmul.msk.bf16.vlgmr.msrb.gmra.mxu1 %vm287_vm1, %v455_v17  ;;  %2027 = vmatmul.msk.bf16.vlgmr.msra.gmra.mxu2 %vm287_vm1, %v455_v17 }
 0x484   :  { %711 = vmatpush.bf16.msrb.mxu1 %v2651_v6  ;;  %908 = vmatpush.bf16.msra.mxu2 %v2651_v6 }
 0x488   :  { %712 = vmatpush.bf16.msrb.mxu1 %v2656_v8  ;;  %909 = vmatpush.bf16.msra.mxu2 %v2656_v8 }
 0x500   :  { %v480_v19 = vpop.f32.mrf.mxu1 }
 0x501   :  { %v506_v20 = vadd.f32 %v505_v5, %v480_v19 }
 0x503   :  { %2118 = vtanh.f32 %v506_v20 }
 0x506   :  { %v642_v21 = vpop.f32.mrf.mxu2 }
 0x508   :  { %v482_v22 = vpop.f32.mrf.mxu1 }
 0x509   :  { %v2684_v23 = vpop.eup %2118 }
 0x50a   :  { %v551_v24 = vpack.c.bf16 %v2684_v23, %v2684_v23 }
 0x50c   :  { %2024 = vmatmul.msk.bf16.vlgmr.msrb.gmra.mxu3 %vm287_vm1, %v551_v24 }
 0x50d   :  { %823 = vmatpush.bf16.msrb.mxu3 %v2628_v31 }
 0x50e   :  { %v644_v25 = vpop.f32.mrf.mxu2 }
 0x511   :  { %824 = vmatpush.bf16.msrb.mxu3 %v2635_v34 }
 0x58f   :  { %v564_v26 = vpop.f32.mrf.mxu3 }
 0x590   :  { %591 = vrot.lane.b32.xlu1 %v564_v26, %s2494_s27  ;;  %v570_v29 = vadd.f32 %v569_v28, %v564_v26 }
 0x592   :  { %v2025_v33 = vmul.f32 -1.442695, %v570_v29 }
 0x594   :  { %2120 = vpow2.f32 %v2025_v33 }
 0x597   :  { %v566_v27 = vpop.f32.mrf.mxu3 }
 0x598   :  { %608 = vrot.lane.b32.xlu1 %v2684_v23, %s2503_s28  ;;  %v2085_v27 = vld [vmem:[#allocation3 + $0x8] sm:$0xff] }
 0x599   :  { %1974 = vmatmul.msk.bf16.gmra.mxu0 %vm220_vm0, %v2085_v27 }
 0x59a   :  { %v2121_v35 = vpop.eup %2120 }
 0x59b   :  { %v574_v36 = vadd.f32 1.0, %v2121_v35 }
 0x59d   :  { %2122 = vrcp.f32 %v574_v36  ;;  %v586_v42 = vand.u32 2147483648, %v574_v36  ;;  %vm580_vm12 = vweird.f32 %v574_v36  ;;  %v584_v43 = vand.u32 2147483647, %v574_v36 }
 0x59f   :  { %v587_v45 = vor.u32 1.1754944e-38, %v586_v42  ;;  %vm585_vm14 = vcmp.eq.f32.partialorder %v584_v43, 8.507059e+37 }
 0x5a3   :  { %v2123_v37 = vpop.eup %2122 }
 0x5a4   :  { %v576_v38 = vmul.f32 %v2123_v37, %v574_v36  ;;  %vm581_vm11 = vweird.f32 %v2123_v37 }
 0x5a5   :  { %vm582_vm13 = vmor %vm580_vm12, %vm581_vm11 }
 0x5a6   :  { %v577_v39 = vsub.f32 1.0, %v576_v38 }
 0x5a8   :  { %v578_v40 = vmul.f32 %v2123_v37, %v577_v39  ;;  %v2087_v39 = vld [vmem:[#allocation3 + $0x18] sm:$0xff] }
 0x5aa   :  { %v579_v41 = vadd.f32 %v2123_v37, %v578_v40 }
 0x5ac   :  { %v583_v44 = vsel %vm582_vm13, %v2123_v37, %v579_v41 }
 0x5ad   :  { %v588_v47 = vsel %vm585_vm14, %v587_v45, %v583_v44 }
 0x5ae   :  { %v601_v53 = vsub.f32 1.0, %v588_v47 }
 0x602   :  { %v592_v46 = vpop.permute.xlu1 %591 }
 0x603   :  { %v594_v48 = vmul.f32 %v592_v46, %v588_v47 }
 0x605   :  { %596 = vrot.lane.b32.xlu2 %v594_v48, %s2494_s27 }
 0x60a   :  { %v609_v52 = vpop.permute.xlu1 %608 }
 0x60b   :  { %v611_v55 = vmul.f32 %v609_v52, %v588_v47 }
 0x616   :  { %v247_v40 = vpop.f32.mrf.mxu0 }
 0x617   :  { %265 = vst.msk [vmem:[#allocation2 + $0x10] sm:$0xff] %vm262_vm2, %v247_v40 }
 0x61e   :  { %v249_v41 = vpop.f32.mrf.mxu0 }
 0x61f   :  { %266 = vst.msk [vmem:[#allocation2 + $0x18] sm:$0xff] %vm262_vm2, %v249_v41 }
 0x65f   :  { %v597_v49 = vpop.permute.xlu2 %596 }
 0x660   :  { %v599_v50 = vadd.f32 %v597_v49, %v569_v28  ;;  %v2086_v28 = vld [vmem:[#allocation3 + $0x10] sm:$0xff] }
 0x661   :  { %1975 = vmatmul.msk.bf16.gmra.mxu0 %vm220_vm0, %v2086_v28 }
 0x662   :  { %2124 = vtanh.f32 %v599_v50 }
 0x668   :  { %v2125_v51 = vpop.eup %2124 }
 0x669   :  { %603 = vrot.lane.b32.xlu0 %v2125_v51, %s2502_s7 }
 0x671   :  { %667 = vrot.lane.b32.xlu0 %v642_v21, %s2494_s27  ;;  %1976 = vmatmul.msk.bf16.gmra.mxu0 %vm220_vm0, %v2087_v39 }
 0x6db   :  { %v604_v54 = vpop.permute.xlu0 %603 }
 0x6dc   :  { %v606_v56 = vmul.f32 %v604_v54, %v601_v53 }
 0x6de   :  { %v612_v57 = vadd.f32 %v611_v55, %v606_v56  ;;  %v252_v42 = vpop.f32.mrf.mxu0 }
 0x6df   :  { %267 = vst.msk [vmem:[#allocation2 + $0x20] sm:$0xff] %vm262_vm2, %v252_v42 }
 0x6e0   :  { %v613_v58 = vpack.c.bf16 %v612_v57, %v612_v57  ;;  %v766_v57 = vld [vmem:[#allocation2 + $0x10] sm:$0xff] }
 0x6e2   :  { %615 = vrot.lane.b32.xlu2 %v613_v58, %s2502_s7 }
 0x6e3   :  { %v668_v20 = vpop.permute.xlu0 %667 }
 0x6e6   :  { %v254_v43 = vpop.f32.mrf.mxu0 }
 0x6e7   :  { %268 = vst.msk [vmem:[#allocation2 + $0x28] sm:$0xff] %vm262_vm2, %v254_v43 }
 0x6ee   :  { %v257_v44 = vpop.f32.mrf.mxu0 }
 0x6ef   :  { %269 = vst.msk [vmem:[#allocation2 + $0x30] sm:$0xff] %vm262_vm2, %v257_v44 }
 0x6f6   :  { %v259_v45 = vpop.f32.mrf.mxu0 }
 0x6f7   :  { %270 = vst.msk [vmem:[#allocation2 + $0x38] sm:$0xff] %vm262_vm2, %v259_v45 }
 0x73c   :  { %v616_v59 = vpop.permute.xlu2 %615 }
 0x73d   :  { %2026 = vmatmul.msk.bf16.vlgmr.msra.gmra.mxu1 %vm287_vm1, %v616_v59 }
 0x73e   :  { %895 = vmatpush.bf16.msra.mxu1 %v2653_v7 }
 0x742   :  { %896 = vmatpush.bf16.msra.mxu1 %v2659_v9 }
 0x74d   :  { %2030 = vmatmul.msk.bf16.vlgmr.msrb.gmra.mxu1 %vm287_vm1, %v551_v24 }
 0x74e   :  { %1033 = vmatpush.bf16.msrb.mxu1 %v2626_v30 }
 0x752   :  { %1034 = vmatpush.bf16.msrb.mxu1 %v2631_v32 }
 0x7ba   :  { %v629_v60 = vpop.f32.mrf.mxu1 }
 0x7bb   :  { %v646_v61 = vadd.f32 %v642_v21, %v629_v60 }
 0x7bd   :  { %v2028_v62 = vmul.f32 -1.442695, %v646_v61 }
 0x7bf   :  { %2126 = vpow2.f32 %v2028_v62 }
 0x7c2   :  { %v631_v63 = vpop.f32.mrf.mxu1 }
 0x7c5   :  { %v2127_v0 = vpop.eup %2126 }
 0x7c6   :  { %v650_v2 = vadd.f32 1.0, %v2127_v0 }
 0x7c8   :  { %2128 = vrcp.f32 %v650_v2  ;;  %v662_v14 = vand.u32 2147483648, %v650_v2  ;;  %v660_v5 = vand.u32 2147483647, %v650_v2  ;;  %vm656_vm3 = vweird.f32 %v650_v2 }
 0x7ca   :  { %v714_v4 = vpop.f32.mrf.mxu1  ;;  %v663_v18 = vor.u32 1.1754944e-38, %v662_v14  ;;  %vm661_vm5 = vcmp.eq.f32.partialorder %v660_v5, 8.507059e+37 }
 0x7ce   :  { %v2129_v10 = vpop.eup %2128 }
 0x7cf   :  { %v652_v11 = vmul.f32 %v2129_v10, %v650_v2  ;;  %vm657_vm15 = vweird.f32 %v2129_v10 }
 0x7d0   :  { %vm658_vm4 = vmor %vm656_vm3, %vm657_vm15 }
 0x7d1   :  { %v653_v12 = vsub.f32 1.0, %v652_v11 }
 0x7d2   :  { %v716_v13 = vpop.f32.mrf.mxu1 }
 0x7d3   :  { %v654_v16 = vmul.f32 %v2129_v10, %v653_v12 }
 0x7d5   :  { %v655_v17 = vadd.f32 %v2129_v10, %v654_v16 }
 0x7d7   :  { %v659_v19 = vsel %vm658_vm4, %v2129_v10, %v655_v17 }
 0x7d8   :  { %v664_v21 = vsel %vm661_vm5, %v663_v18, %v659_v19 }
 0x7d9   :  { %v670_v22 = vmul.f32 %v668_v20, %v664_v21  ;;  %v677_v29 = vsub.f32 1.0, %v664_v21  ;;  %v683_v35 = vmul.f32 %v664_v21, %v2673_v15 }
 0x7db   :  { %672 = vrot.lane.b32.xlu1 %v670_v22, %s2494_s27 }
 0x84d   :  { %v673_v24 = vpop.permute.xlu1 %672 }
 0x84e   :  { %v675_v25 = vadd.f32 %v673_v24, %v629_v60 }
 0x850   :  { %2130 = vtanh.f32 %v675_v25 }
 0x856   :  { %v2131_v26 = vpop.eup %2130 }
 0x857   :  { %679 = vrot.lane.b32.xlu2 %v2131_v26, %s2502_s7 }
 0x8b1   :  { %v680_v33 = vpop.permute.xlu2 %679 }
 0x8b2   :  { %v682_v36 = vmul.f32 %v680_v33, %v677_v29 }
 0x8b4   :  { %v2709_v37 = vadd.f32 %v683_v35, %v682_v36 }
 0x8b6   :  { %v685_v38 = vpack.c.bf16 %v2709_v37, %v2709_v37 }
 0x8b8   :  { %687 = vrot.lane.b32.xlu0 %v685_v38, %s2502_s7 }
 0x92a   :  { %v688_v15 = vpop.permute.xlu0 %687 }
 0x92b   :  { %2029 = vmatmul.msk.bf16.vlgmr.msra.gmra.mxu3 %vm287_vm1, %v688_v15  ;;  %2034 = vmatmul.msk.bf16.vlgmr.msrb.gmra.mxu0 %vm287_vm1, %v688_v15 }
 0x92c   :  { %955 = vmatpush.bf16.msra.mxu3 %v2609_v1  ;;  %1152 = vmatpush.bf16.msrb.mxu0 %v2609_v1 }
 0x930   :  { %956 = vmatpush.bf16.msra.mxu3 %v2612_v3  ;;  %1153 = vmatpush.bf16.msrb.mxu0 %v2612_v3 }
 0x9a8   :  { %v2727_v46 = vpop.f32.mrf.mxu0 }
 0x9ae   :  { %v701_v47 = vpop.f32.mrf.mxu3 }
 0x9af   :  { %v715_v48 = vadd.f32 %v714_v4, %v701_v47 }
 0x9b0   :  { %v841_v49 = vpop.f32.mrf.mxu0 }
 0x9b1   :  { %2132 = vtanh.f32 %v715_v48 }
 0x9b6   :  { %v703_v50 = vpop.f32.mrf.mxu3 }
 0x9b7   :  { %v2729_v51 = vpop.eup %2132 }
 0x9b8   :  { %v748_v52 = vpack.c.bf16 %v2729_v51, %v2729_v51 }
 0x9ba   :  { %2031 = vmatmul.msk.bf16.vlgmr.msrb.gmra.mxu2 %vm287_vm1, %v748_v52 }
 0x9bb   :  { %1092 = vmatpush.bf16.msrb.mxu2 %v2653_v7 }
 0x9bf   :  { %1093 = vmatpush.bf16.msrb.mxu2 %v2659_v9 }
 0x9ca   :  { %2037 = vmatmul.msk.bf16.vlgmr.msra.gmra.mxu2 %vm287_vm1, %v748_v52 }
 0x9cb   :  { %1230 = vmatpush.bf16.msra.mxu2 %v2626_v30 }
 0x9cf   :  { %1231 = vmatpush.bf16.msra.mxu2 %v2631_v32 }
 0xa3d   :  { %v761_v53 = vpop.f32.mrf.mxu2 }
 0xa3e   :  { %788 = vrot.lane.b32.xlu1 %v761_v53, %s2494_s27  ;;  %v767_v58 = vadd.f32 %v766_v57, %v761_v53 }
 0xa40   :  { %v2032_v59 = vmul.f32 -1.442695, %v767_v58 }
 0xa42   :  { %2134 = vpow2.f32 %v2032_v59 }
 0xa45   :  { %v763_v54 = vpop.f32.mrf.mxu2 }
 0xa46   :  { %805 = vrot.lane.b32.xlu1 %v2729_v51, %s2503_s28 }
 0xa48   :  { %v2135_v60 = vpop.eup %2134 }
 0xa49   :  { %v771_v61 = vadd.f32 1.0, %v2135_v60 }
 0xa4b   :  { %2136 = vrcp.f32 %v771_v61  ;;  %v783_v10 = vand.u32 2147483648, %v771_v61  ;;  %vm777_vm2 = vweird.f32 %v771_v61  ;;  %v781_v11 = vand.u32 2147483647, %v771_v61 }
 0xa4d   :  { %v2742_v55 = vpop.f32.mrf.mxu2  ;;  %v784_v13 = vor.u32 1.1754944e-38, %v783_v10  ;;  %vm782_vm7 = vcmp.eq.f32.partialorder %v781_v11, 8.507059e+37 }
 0xa51   :  { %v2137_v62 = vpop.eup %2136 }
 0xa52   :  { %v773_v63 = vmul.f32 %v2137_v62, %v771_v61  ;;  %vm778_vm0 = vweird.f32 %v2137_v62 }
 0xa53   :  { %vm779_vm6 = vmor %vm777_vm2, %vm778_vm0 }
 0xa54   :  { %v774_v0 = vsub.f32 1.0, %v773_v63 }
 0xa55   :  { %v913_v56 = vpop.f32.mrf.mxu2 }
 0xa56   :  { %v775_v2 = vmul.f32 %v2137_v62, %v774_v0 }
 0xa58   :  { %v776_v4 = vadd.f32 %v2137_v62, %v775_v2 }
 0xa5a   :  { %v780_v12 = vsel %vm779_vm6, %v2137_v62, %v776_v4 }
 0xa5b   :  { %v785_v16 = vsel %vm782_vm7, %v784_v13, %v780_v12 }
 0xa5c   :  { %v798_v21 = vsub.f32 1.0, %v785_v16 }
 0xab0   :  { %v789_v14 = vpop.permute.xlu1 %788 }
 0xab1   :  { %v791_v5 = vmul.f32 %v789_v14, %v785_v16 }
 0xab3   :  { %793 = vrot.lane.b32.xlu2 %v791_v5, %s2494_s27 }
 0xab8   :  { %v806_v20 = vpop.permute.xlu1 %805 }
 0xab9   :  { %v808_v24 = vmul.f32 %v806_v20, %v785_v16  ;;  %v963_v16 = vld [vmem:[#allocation2 + $0x18] sm:$0xff] }
 0xb0d   :  { %v794_v17 = vpop.permute.xlu2 %793 }
 0xb0e   :  { %v796_v18 = vadd.f32 %v794_v17, %v766_v57 }
 0xb10   :  { %2138 = vtanh.f32 %v796_v18 }
 0xb16   :  { %v2139_v19 = vpop.eup %2138 }
 0xb17   :  { %800 = vrot.lane.b32.xlu0 %v2139_v19, %s2502_s7 }
 0xb1f   :  { %864 = vrot.lane.b32.xlu0 %v2727_v46, %s2494_s27 }
 0xb89   :  { %v801_v22 = vpop.permute.xlu0 %800 }
 0xb8a   :  { %v803_v25 = vmul.f32 %v801_v22, %v798_v21 }
 0xb8c   :  { %v809_v26 = vadd.f32 %v808_v24, %v803_v25 }
 0xb8e   :  { %v810_v27 = vpack.c.bf16 %v809_v26, %v809_v26 }
 0xb90   :  { %812 = vrot.lane.b32.xlu2 %v810_v27, %s2502_s7 }
 0xbea   :  { %v813_v28 = vpop.permute.xlu2 %812 }
 0xbeb   :  { %2033 = vmatmul.msk.bf16.vlgmr.msrb.gmra.mxu3 %vm287_vm1, %v813_v28 }
 0xbec   :  { %1105 = vmatpush.bf16.msrb.mxu3 %v2651_v6 }
 0xbf0   :  { %1106 = vmatpush.bf16.msrb.mxu3 %v2656_v8 }
 0xc6e   :  { %v826_v29 = vpop.f32.mrf.mxu3 }
 0xc6f   :  { %v843_v33 = vadd.f32 %v2727_v46, %v826_v29  ;;  %v865_v46 = vpop.permute.xlu0 %864 }
 0xc71   :  { %v2035_v35 = vmul.f32 -1.442695, %v843_v33 }
 0xc73   :  { %2140 = vpow2.f32 %v2035_v35 }
 0xc76   :  { %v828_v36 = vpop.f32.mrf.mxu3 }
 0xc79   :  { %v2141_v38 = vpop.eup %2140 }
 0xc7a   :  { %v847_v39 = vadd.f32 1.0, %v2141_v38 }
 0xc7c   :  { %2142 = vrcp.f32 %v847_v39  ;;  %v859_v15 = vand.u32 2147483648, %v847_v39  ;;  %v857_v44 = vand.u32 2147483647, %v847_v39  ;;  %vm853_vm9 = vweird.f32 %v847_v39 }
 0xc7e   :  { %v860_v47 = vor.u32 1.1754944e-38, %v859_v15  ;;  %vm858_vm11 = vcmp.eq.f32.partialorder %v857_v44, 8.507059e+37 }
 0xc82   :  { %v2143_v40 = vpop.eup %2142 }
 0xc83   :  { %v849_v41 = vmul.f32 %v2143_v40, %v847_v39  ;;  %vm854_vm8 = vweird.f32 %v2143_v40 }
 0xc84   :  { %vm855_vm10 = vmor %vm853_vm9, %vm854_vm8 }
 0xc85   :  { %v850_v42 = vsub.f32 1.0, %v849_v41 }
 0xc87   :  { %v851_v43 = vmul.f32 %v2143_v40, %v850_v42 }
 0xc89   :  { %v852_v45 = vadd.f32 %v2143_v40, %v851_v43 }
 0xc8b   :  { %v856_v48 = vsel %vm855_vm10, %v2143_v40, %v852_v45 }
 0xc8c   :  { %v861_v49 = vsel %vm858_vm11, %v860_v47, %v856_v48 }
 0xc8d   :  { %v867_v50 = vmul.f32 %v865_v46, %v861_v49  ;;  %v874_v56 = vsub.f32 1.0, %v861_v49  ;;  %v880_v58 = vmul.f32 %v861_v49, %v2709_v37 }
 0xc8f   :  { %869 = vrot.lane.b32.xlu1 %v867_v50, %s2494_s27 }
 0xd01   :  { %v870_v52 = vpop.permute.xlu1 %869 }
 0xd02   :  { %v872_v53 = vadd.f32 %v870_v52, %v826_v29 }
 0xd04   :  { %2144 = vtanh.f32 %v872_v53 }
 0xd0a   :  { %v2145_v54 = vpop.eup %2144 }
 0xd0b   :  { %876 = vrot.lane.b32.xlu2 %v2145_v54, %s2502_s7 }
 0xd65   :  { %v877_v57 = vpop.permute.xlu2 %876 }
 0xd66   :  { %v879_v59 = vmul.f32 %v877_v57, %v874_v56 }
 0xd68   :  { %v2756_v60 = vadd.f32 %v880_v58, %v879_v59 }
 0xd6a   :  { %v882_v61 = vpack.c.bf16 %v2756_v60, %v2756_v60 }
 0xd6c   :  { %884 = vrot.lane.b32.xlu0 %v882_v61, %s2502_s7 }
 0xdde   :  { %v885_v62 = vpop.permute.xlu0 %884 }
 0xddf   :  { %2036 = vmatmul.msk.bf16.vlgmr.msra.gmra.mxu1 %vm287_vm1, %v885_v62 }
 0xde0   :  { %1217 = vmatpush.bf16.msra.mxu1 %v2628_v31 }
 0xde4   :  { %1218 = vmatpush.bf16.msra.mxu1 %v2635_v34 }
 0xdef   :  { %2041 = vmatmul.msk.bf16.vlgmr.msrb.gmra.mxu1 %vm287_vm1, %v885_v62 }
 0xdf0   :  { %1349 = vmatpush.bf16.msrb.mxu1 %v2609_v1 }
 0xdf4   :  { %1350 = vmatpush.bf16.msrb.mxu1 %v2612_v3 }
 0xe5c   :  { %v898_v37 = vpop.f32.mrf.mxu1 }
 0xe5d   :  { %v912_v63 = vadd.f32 %v2742_v55, %v898_v37 }
 0xe5f   :  { %2146 = vtanh.f32 %v912_v63 }
 0xe64   :  { %v900_v0 = vpop.f32.mrf.mxu1 }
 0xe65   :  { %v2768_v2 = vpop.eup %2146 }
 0xe66   :  { %v945_v4 = vpack.c.bf16 %v2768_v2, %v2768_v2 }
 0xe68   :  { %2038 = vmatmul.msk.bf16.vlgmr.msra.gmra.mxu3 %vm287_vm1, %v945_v4 }
 0xe69   :  { %1289 = vmatpush.bf16.msra.mxu3 %v2653_v7 }
 0xe6c   :  { %v1036_v10 = vpop.f32.mrf.mxu1 }
 0xe6d   :  { %1290 = vmatpush.bf16.msra.mxu3 %v2659_v9 }
 0xe74   :  { %v1038_v11 = vpop.f32.mrf.mxu1 }
 0xe78   :  { %2044 = vmatmul.msk.bf16.vlgmr.msrb.gmra.mxu3 %vm287_vm1, %v945_v4 }
 0xe79   :  { %1427 = vmatpush.bf16.msrb.mxu3 %v2626_v30 }
 0xe7d   :  { %1428 = vmatpush.bf16.msrb.mxu3 %v2631_v32 }
 0xeeb   :  { %v958_v55 = vpop.f32.mrf.mxu3 }
 0xeec   :  { %985 = vrot.lane.b32.xlu1 %v958_v55, %s2494_s27  ;;  %v964_v5 = vadd.f32 %v963_v16, %v958_v55 }
 0xeee   :  { %v2039_v17 = vmul.f32 -1.442695, %v964_v5 }
 0xef0   :  { %2148 = vpow2.f32 %v2039_v17 }
 0xef3   :  { %v960_v12 = vpop.f32.mrf.mxu3 }
 0xef4   :  { %1002 = vrot.lane.b32.xlu1 %v2768_v2, %s2503_s28 }
 0xef6   :  { %v2149_v18 = vpop.eup %2148 }
 0xef7   :  { %v968_v19 = vadd.f32 1.0, %v2149_v18 }
 0xef9   :  { %2150 = vrcp.f32 %v968_v19  ;;  %v980_v26 = vand.u32 2147483648, %v968_v19  ;;  %vm974_vm13 = vweird.f32 %v968_v19  ;;  %v978_v27 = vand.u32 2147483647, %v968_v19 }
 0xefb   :  { %v2781_v13 = vpop.f32.mrf.mxu3  ;;  %v981_v29 = vor.u32 1.1754944e-38, %v980_v26  ;;  %vm979_vm15 = vcmp.eq.f32.partialorder %v978_v27, 8.507059e+37 }
 0xeff   :  { %v2151_v20 = vpop.eup %2150 }
 0xf00   :  { %v970_v21 = vmul.f32 %v2151_v20, %v968_v19  ;;  %vm975_vm12 = vweird.f32 %v2151_v20 }
 0xf01   :  { %vm976_vm14 = vmor %vm974_vm13, %vm975_vm12 }
 0xf02   :  { %v971_v22 = vsub.f32 1.0, %v970_v21 }
 0xf03   :  { %v1110_v14 = vpop.f32.mrf.mxu3 }
 0xf04   :  { %v972_v24 = vmul.f32 %v2151_v20, %v971_v22 }
 0xf06   :  { %v973_v25 = vadd.f32 %v2151_v20, %v972_v24 }
 0xf08   :  { %v977_v28 = vsel %vm976_vm14, %v2151_v20, %v973_v25 }
 0xf09   :  { %v982_v35 = vsel %vm979_vm15, %v981_v29, %v977_v28  ;;  %v1160_v28 = vld [vmem:[#allocation2 + $0x20] sm:$0xff] }
 0xf0a   :  { %v995_v42 = vsub.f32 1.0, %v982_v35 }
 0xf5e   :  { %v986_v33 = vpop.permute.xlu1 %985 }
 0xf5f   :  { %v988_v36 = vmul.f32 %v986_v33, %v982_v35 }
 0xf61   :  { %990 = vrot.lane.b32.xlu2 %v988_v36, %s2494_s27 }
 0xf66   :  { %v1003_v41 = vpop.permute.xlu1 %1002 }
 0xf67   :  { %v1005_v43 = vmul.f32 %v1003_v41, %v982_v35 }
 0xfbb   :  { %v991_v38 = vpop.permute.xlu2 %990 }
 0xfbc   :  { %v993_v39 = vadd.f32 %v991_v38, %v963_v16 }
 0xfbe   :  { %2152 = vtanh.f32 %v993_v39 }
 0xfc4   :  { %v2153_v40 = vpop.eup %2152 }
 0xfc5   :  { %997 = vrot.lane.b32.xlu0 %v2153_v40, %s2502_s7 }
 0xfcd   :  { %1061 = vrot.lane.b32.xlu0 %v1036_v10, %s2494_s27 }
0x1037   :  { %v998_v15 = vpop.permute.xlu0 %997 }
0x1038   :  { %v1000_v44 = vmul.f32 %v998_v15, %v995_v42 }
0x103a   :  { %v1006_v45 = vadd.f32 %v1005_v43, %v1000_v44 }
0x103c   :  { %v1007_v47 = vpack.c.bf16 %v1006_v45, %v1006_v45 }
0x103e   :  { %1009 = vrot.lane.b32.xlu2 %v1007_v47, %s2502_s7 }
0x103f   :  { %v1062_v4 = vpop.permute.xlu0 %1061 }
0x1098   :  { %v1010_v48 = vpop.permute.xlu2 %1009 }
0x1099   :  { %2040 = vmatmul.msk.bf16.vlgmr.msra.gmra.mxu0 %vm287_vm1, %v1010_v48 }
0x109a   :  { %1302 = vmatpush.bf16.msra.mxu0 %v2651_v6 }
0x109e   :  { %1303 = vmatpush.bf16.msra.mxu0 %v2656_v8 }
0x1116   :  { %v1023_v46 = vpop.f32.mrf.mxu0 }
0x1117   :  { %v1040_v49 = vadd.f32 %v1036_v10, %v1023_v46 }
0x1119   :  { %v2042_v50 = vmul.f32 -1.442695, %v1040_v49 }
0x111b   :  { %2154 = vpow2.f32 %v2042_v50 }
0x111e   :  { %v1025_v52 = vpop.f32.mrf.mxu0 }
0x1121   :  { %v2155_v53 = vpop.eup %2154 }
0x1122   :  { %v1044_v54 = vadd.f32 1.0, %v2155_v53 }
0x1124   :  { %2156 = vrcp.f32 %v1044_v54  ;;  %v1056_v59 = vand.u32 2147483648, %v1044_v54  ;;  %v1054_v62 = vand.u32 2147483647, %v1044_v54  ;;  %vm1050_vm4 = vweird.f32 %v1044_v54 }
0x1126   :  { %v1057_v63 = vor.u32 1.1754944e-38, %v1056_v59  ;;  %vm1055_vm0 = vcmp.eq.f32.partialorder %v1054_v62, 8.507059e+37 }
0x112a   :  { %v2157_v56 = vpop.eup %2156 }
0x112b   :  { %v1046_v57 = vmul.f32 %v2157_v56, %v1044_v54  ;;  %vm1051_vm3 = vweird.f32 %v2157_v56 }
0x112c   :  { %vm1052_vm5 = vmor %vm1050_vm4, %vm1051_vm3 }
0x112d   :  { %v1047_v58 = vsub.f32 1.0, %v1046_v57 }
0x112f   :  { %v1048_v61 = vmul.f32 %v2157_v56, %v1047_v58 }
0x1131   :  { %v1049_v37 = vadd.f32 %v2157_v56, %v1048_v61 }
0x1133   :  { %v1053_v0 = vsel %vm1052_vm5, %v2157_v56, %v1049_v37 }
0x1134   :  { %v1058_v10 = vsel %vm1055_vm0, %v1057_v63, %v1053_v0 }
0x1135   :  { %v1064_v11 = vmul.f32 %v1062_v4, %v1058_v10  ;;  %v1071_v16 = vsub.f32 1.0, %v1058_v10  ;;  %v1077_v17 = vmul.f32 %v1058_v10, %v2756_v60 }
0x1137   :  { %1066 = vrot.lane.b32.xlu1 %v1064_v11, %s2494_s27 }
0x11a9   :  { %v1067_v55 = vpop.permute.xlu1 %1066 }
0x11aa   :  { %v1069_v12 = vadd.f32 %v1067_v55, %v1023_v46 }
0x11ac   :  { %2158 = vtanh.f32 %v1069_v12 }
0x11b2   :  { %v2159_v14 = vpop.eup %2158 }
0x11b3   :  { %1073 = vrot.lane.b32.xlu2 %v2159_v14, %s2502_s7 }
0x120d   :  { %v1074_v5 = vpop.permute.xlu2 %1073 }
0x120e   :  { %v1076_v18 = vmul.f32 %v1074_v5, %v1071_v16 }
0x1210   :  { %v2793_v19 = vadd.f32 %v1077_v17, %v1076_v18 }
0x1212   :  { %v1079_v20 = vpack.c.bf16 %v2793_v19, %v2793_v19 }
0x1214   :  { %1081 = vrot.lane.b32.xlu0 %v1079_v20, %s2502_s7 }
0x1286   :  { %v1082_v21 = vpop.permute.xlu0 %1081 }
0x1287   :  { %2043 = vmatmul.msk.bf16.vlgmr.msrb.gmra.mxu2 %vm287_vm1, %v1082_v21 }
0x1288   :  { %1414 = vmatpush.bf16.msrb.mxu2 %v2628_v31 }
0x128c   :  { %1415 = vmatpush.bf16.msrb.mxu2 %v2635_v34 }
0x1297   :  { %2048 = vmatmul.msk.bf16.vlgmr.msra.gmra.mxu2 %vm287_vm1, %v1082_v21 }
0x1298   :  { %1546 = vmatpush.bf16.msra.mxu2 %v2609_v1 }
0x129c   :  { %1547 = vmatpush.bf16.msra.mxu2 %v2612_v3 }
0x130a   :  { %v1095_v60 = vpop.f32.mrf.mxu2 }
0x130b   :  { %v1109_v22 = vadd.f32 %v2781_v13, %v1095_v60 }
0x130d   :  { %2160 = vtanh.f32 %v1109_v22 }
0x1312   :  { %v1097_v24 = vpop.f32.mrf.mxu2 }
0x1313   :  { %v2805_v25 = vpop.eup %2160 }
0x1314   :  { %v1142_v26 = vpack.c.bf16 %v2805_v25, %v2805_v25 }
0x1316   :  { %2045 = vmatmul.msk.bf16.vlgmr.msrb.gmra.mxu0 %vm287_vm1, %v1142_v26 }
0x1317   :  { %1486 = vmatpush.bf16.msrb.mxu0 %v2653_v7 }
0x131a   :  { %v1233_v31 = vpop.f32.mrf.mxu2 }
0x131b   :  { %1487 = vmatpush.bf16.msrb.mxu0 %v2659_v9 }
0x1322   :  { %v1235_v1 = vpop.f32.mrf.mxu2 }
0x1326   :  { %2051 = vmatmul.msk.bf16.vlgmr.msra.gmra.mxu0 %vm287_vm1, %v1142_v26 }
0x1327   :  { %1624 = vmatpush.bf16.msra.mxu0 %v2626_v30 }
0x132b   :  { %1625 = vmatpush.bf16.msra.mxu0 %v2631_v32 }
0x1393   :  { %v1155_v3 = vpop.f32.mrf.mxu0 }
0x1394   :  { %1182 = vrot.lane.b32.xlu1 %v1155_v3, %s2494_s27  ;;  %v1161_v29 = vadd.f32 %v1160_v28, %v1155_v3 }
0x1396   :  { %v2046_v33 = vmul.f32 -1.442695, %v1161_v29  ;;  %v2839_v29 = vld [vmem:[#allocation11] sm:$0xff] }
0x1398   :  { %2162 = vpow2.f32 %v2046_v33  ;;  %v2255_v33 = vld [vmem:[#allocation9] sm:$0xff] }
0x139b   :  { %v1157_v34 = vpop.f32.mrf.mxu0 }
0x139c   :  { %1199 = vrot.lane.b32.xlu1 %v2805_v25, %s2503_s28 }
0x139e   :  { %v2163_v35 = vpop.eup %2162 }
0x139f   :  { %v1165_v36 = vadd.f32 1.0, %v2163_v35 }
0x13a1   :  { %2164 = vrcp.f32 %v1165_v36  ;;  %v1177_v41 = vand.u32 2147483648, %v1165_v36  ;;  %vm1171_vm6 = vweird.f32 %v1165_v36  ;;  %v1175_v42 = vand.u32 2147483647, %v1165_v36 }
0x13a3   :  { %v2818_v13 = vpop.f32.mrf.mxu0  ;;  %v1178_v43 = vor.u32 1.1754944e-38, %v1177_v41  ;;  %vm1176_vm8 = vcmp.eq.f32.partialorder %v1175_v42, 8.507059e+37  ;;  %v2256_v41 = vld [vmem:[#allocation12 + $0x8] sm:$0xff] }
0x13a7   :  { %v2165_v30 = vpop.eup %2164 }
0x13a8   :  { %v1167_v38 = vmul.f32 %v2165_v30, %v1165_v36  ;;  %vm1172_vm2 = vweird.f32 %v2165_v30 }
0x13a9   :  { %vm1173_vm7 = vmor %vm1171_vm6, %vm1172_vm2 }
0x13aa   :  { %v1168_v32 = vsub.f32 1.0, %v1167_v38 }
0x13ab   :  { %v1307_v27 = vpop.f32.mrf.mxu0 }
0x13ac   :  { %v1169_v39 = vmul.f32 %v2165_v30, %v1168_v32 }
0x13ae   :  { %v1170_v40 = vadd.f32 %v2165_v30, %v1169_v39 }
0x13b0   :  { %v1174_v15 = vsel %vm1173_vm7, %v2165_v30, %v1170_v40 }
0x13b1   :  { %v1179_v45 = vsel %vm1176_vm8, %v1178_v43, %v1174_v15 }
0x13b2   :  { %v1192_v52 = vsub.f32 1.0, %v1179_v45 }
0x1406   :  { %v1183_v44 = vpop.permute.xlu1 %1182 }
0x1407   :  { %v1185_v47 = vmul.f32 %v1183_v44, %v1179_v45  ;;  %v1357_v44 = vld [vmem:[#allocation2 + $0x28] sm:$0xff] }
0x1409   :  { %1187 = vrot.lane.b32.xlu2 %v1185_v47, %s2494_s27 }
0x140e   :  { %v1200_v50 = vpop.permute.xlu1 %1199 }
0x140f   :  { %v1202_v54 = vmul.f32 %v1200_v50, %v1179_v45 }
0x1463   :  { %v1188_v48 = vpop.permute.xlu2 %1187 }
0x1464   :  { %v1190_v46 = vadd.f32 %v1188_v48, %v1160_v28  ;;  %v2836_v28 = vld [vmem:[#allocation11 + $0x8] sm:$0xff] }
0x1466   :  { %2166 = vtanh.f32 %v1190_v46 }
0x146c   :  { %v2167_v49 = vpop.eup %2166 }
0x146d   :  { %1194 = vrot.lane.b32.xlu0 %v2167_v49, %s2502_s7 }
0x1475   :  { %1258 = vrot.lane.b32.xlu0 %v1233_v31, %s2494_s27 }
0x14df   :  { %v1195_v53 = vpop.permute.xlu0 %1194 }
0x14e0   :  { %v1197_v56 = vmul.f32 %v1195_v53, %v1192_v52 }
0x14e2   :  { %v1203_v57 = vadd.f32 %v1202_v54, %v1197_v56 }
0x14e4   :  { %v1204_v58 = vpack.c.bf16 %v1203_v57, %v1203_v57 }
0x14e6   :  { %1206 = vrot.lane.b32.xlu2 %v1204_v58, %s2502_s7 }
0x14e7   :  { %v1259_v17 = vpop.permute.xlu0 %1258 }
0x1540   :  { %v1207_v59 = vpop.permute.xlu2 %1206 }
0x1541   :  { %2047 = vmatmul.msk.bf16.vlgmr.msra.gmra.mxu1 %vm287_vm1, %v1207_v59 }
0x1542   :  { %1499 = vmatpush.bf16.msra.mxu1 %v2651_v6 }
0x1546   :  { %1500 = vmatpush.bf16.msra.mxu1 %v2656_v8 }
0x15be   :  { %v1220_v61 = vpop.f32.mrf.mxu1 }
0x15bf   :  { %v1237_v62 = vadd.f32 %v1233_v31, %v1220_v61 }
0x15c1   :  { %v2049_v37 = vmul.f32 -1.442695, %v1237_v62 }
0x15c3   :  { %2168 = vpow2.f32 %v2049_v37 }
0x15c6   :  { %v1222_v63 = vpop.f32.mrf.mxu1 }
0x15c9   :  { %v2169_v0 = vpop.eup %2168 }
0x15ca   :  { %v1241_v4 = vadd.f32 1.0, %v2169_v0 }
0x15cc   :  { %2170 = vrcp.f32 %v1241_v4  ;;  %v1253_v12 = vand.u32 2147483648, %v1241_v4  ;;  %v1251_v16 = vand.u32 2147483647, %v1241_v4  ;;  %vm1247_vm10 = vweird.f32 %v1241_v4 }
0x15ce   :  { %v1254_v6 = vor.u32 1.1754944e-38, %v1253_v12  ;;  %vm1252_vm12 = vcmp.eq.f32.partialorder %v1251_v16, 8.507059e+37 }
0x15d2   :  { %v2171_v10 = vpop.eup %2170 }
0x15d3   :  { %v1243_v11 = vmul.f32 %v2171_v10, %v1241_v4  ;;  %vm1248_vm9 = vweird.f32 %v2171_v10 }
0x15d4   :  { %vm1249_vm11 = vmor %vm1247_vm10, %vm1248_vm9 }
0x15d5   :  { %v1244_v55 = vsub.f32 1.0, %v1243_v11 }
0x15d7   :  { %v1245_v14 = vmul.f32 %v2171_v10, %v1244_v55 }
0x15d9   :  { %v1246_v5 = vadd.f32 %v2171_v10, %v1245_v14 }
0x15db   :  { %v1250_v8 = vsel %vm1249_vm11, %v2171_v10, %v1246_v5 }
0x15dc   :  { %v1255_v18 = vsel %vm1252_vm12, %v1254_v6, %v1250_v8  ;;  %v2862_v6 = vld [vmem:[#allocation14 + $0x8] sm:$0xff]  ;;  %v2865_v8 = vld [vmem:[#allocation14] sm:$0xff] }
0x15dd   :  { %v1261_v20 = vmul.f32 %v1259_v17, %v1255_v18  ;;  %v1268_v24 = vsub.f32 1.0, %v1255_v18  ;;  %v1274_v31 = vmul.f32 %v1255_v18, %v2793_v19  ;;  %v2254_v19 = vld [vmem:[#allocation9 + $0x8] sm:$0xff] }
0x15df   :  { %1263 = vrot.lane.b32.xlu1 %v1261_v20, %s2494_s27 }
0x1651   :  { %v1264_v21 = vpop.permute.xlu1 %1263 }
0x1652   :  { %v1266_v60 = vadd.f32 %v1264_v21, %v1220_v61 }
0x1654   :  { %2172 = vtanh.f32 %v1266_v60 }
0x165a   :  { %v2173_v22 = vpop.eup %2172 }
0x165b   :  { %1270 = vrot.lane.b32.xlu2 %v2173_v22, %s2502_s7 }
0x16b5   :  { %v1271_v26 = vpop.permute.xlu2 %1270 }
0x16b6   :  { %v1273_v1 = vmul.f32 %v1271_v26, %v1268_v24 }
0x16b8   :  { %v2830_v3 = vadd.f32 %v1274_v31, %v1273_v1 }
0x16ba   :  { %v1276_v34 = vpack.c.bf16 %v2830_v3, %v2830_v3 }
0x16bc   :  { %1278 = vrot.lane.b32.xlu0 %v1276_v34, %s2502_s7 }
0x172e   :  { %v1279_v27 = vpop.permute.xlu0 %1278 }
0x172f   :  { %2050 = vmatmul.msk.bf16.vlgmr.msra.gmra.mxu3 %vm287_vm1, %v1279_v27 }
0x1730   :  { %1611 = vmatpush.bf16.msra.mxu3 %v2836_v28 }
0x1734   :  { %1612 = vmatpush.bf16.msra.mxu3 %v2839_v29 }
0x173f   :  { %2055 = vmatmul.msk.bf16.vlgmr.msrb.gmra.mxu3 %vm287_vm1, %v1279_v27 }
0x1740   :  { %1743 = vmatpush.bf16.msrb.mxu3 %v2254_v19 }
0x1744   :  { %1744 = vmatpush.bf16.msrb.mxu3 %v2255_v33 }
0x17b2   :  { %v1292_v35 = vpop.f32.mrf.mxu3 }
0x17b3   :  { %v1306_v36 = vadd.f32 %v2818_v13, %v1292_v35  ;;  %v2257_v13 = vld [vmem:[#allocation12] sm:$0xff] }
0x17b5   :  { %2174 = vtanh.f32 %v1306_v36 }
0x17ba   :  { %v1294_v30 = vpop.f32.mrf.mxu3 }
0x17bb   :  { %v2844_v38 = vpop.eup %2174 }
0x17bc   :  { %v1339_v32 = vpack.c.bf16 %v2844_v38, %v2844_v38 }
0x17be   :  { %2052 = vmatmul.msk.bf16.vlgmr.msrb.gmra.mxu1 %vm287_vm1, %v1339_v32 }
0x17bf   :  { %1683 = vmatpush.bf16.msrb.mxu1 %v2653_v7 }
0x17c2   :  { %v1430_v39 = vpop.f32.mrf.mxu3 }
0x17c3   :  { %1684 = vmatpush.bf16.msrb.mxu1 %v2659_v9 }
0x17ca   :  { %v1432_v40 = vpop.f32.mrf.mxu3 }
0x17ce   :  { %2058 = vmatmul.msk.bf16.vlgmr.msra.gmra.mxu1 %vm287_vm1, %v1339_v32 }
0x17cf   :  { %1821 = vmatpush.bf16.msra.mxu1 %v2256_v41 }
0x17d3   :  { %1822 = vmatpush.bf16.msra.mxu1 %v2257_v13 }
0x183b   :  { %v1352_v42 = vpop.f32.mrf.mxu1 }
0x183c   :  { %1379 = vrot.lane.b32.xlu1 %v1352_v42, %s2494_s27  ;;  %v1358_v45 = vadd.f32 %v1357_v44, %v1352_v42 }
0x183e   :  { %v2053_v9 = vmul.f32 -1.442695, %v1358_v45 }
0x1840   :  { %2176 = vpow2.f32 %v2053_v9 }
0x1843   :  { %v1354_v15 = vpop.f32.mrf.mxu1 }
0x1844   :  { %1396 = vrot.lane.b32.xlu1 %v2844_v38, %s2503_s28 }
0x1846   :  { %v2177_v47 = vpop.eup %2176 }
0x1847   :  { %v1362_v48 = vadd.f32 1.0, %v2177_v47 }
0x1849   :  { %2178 = vrcp.f32 %v1362_v48  ;;  %v1374_v54 = vand.u32 2147483648, %v1362_v48  ;;  %vm1368_vm14 = vweird.f32 %v1362_v48  ;;  %v1372_v56 = vand.u32 2147483647, %v1362_v48 }
0x184b   :  { %v2855_v43 = vpop.f32.mrf.mxu1  ;;  %v1375_v58 = vor.u32 1.1754944e-38, %v1374_v54  ;;  %vm1373_vm3 = vcmp.eq.f32.partialorder %v1372_v56, 8.507059e+37 }
0x184f   :  { %v2179_v46 = vpop.eup %2178 }
0x1850   :  { %v1364_v49 = vmul.f32 %v2179_v46, %v1362_v48  ;;  %vm1369_vm13 = vweird.f32 %v2179_v46 }
0x1851   :  { %vm1370_vm15 = vmor %vm1368_vm14, %vm1369_vm13 }
0x1852   :  { %v1365_v50 = vsub.f32 1.0, %v1364_v49 }
0x1853   :  { %v1504_v7 = vpop.f32.mrf.mxu1 }
0x1854   :  { %v1366_v52 = vmul.f32 %v2179_v46, %v1365_v50  ;;  %v2260_v50 = vld [vmem:[#allocation15 + $0x8] sm:$0xff] }
0x1856   :  { %v1367_v53 = vadd.f32 %v2179_v46, %v1366_v52 }
0x1858   :  { %v1371_v57 = vsel %vm1370_vm15, %v2179_v46, %v1367_v53 }
0x1859   :  { %v1376_v61 = vsel %vm1373_vm3, %v1375_v58, %v1371_v57  ;;  %v1554_v57 = vld [vmem:[#allocation2 + $0x30] sm:$0xff] }
0x185a   :  { %v1389_v10 = vsub.f32 1.0, %v1376_v61 }
0x18ae   :  { %v1380_v59 = vpop.permute.xlu1 %1379 }
0x18af   :  { %v1382_v62 = vmul.f32 %v1380_v59, %v1376_v61 }
0x18b1   :  { %1384 = vrot.lane.b32.xlu2 %v1382_v62, %s2494_s27 }
0x18b6   :  { %v1397_v4 = vpop.permute.xlu1 %1396 }
0x18b7   :  { %v1399_v55 = vmul.f32 %v1397_v4, %v1376_v61 }
0x190b   :  { %v1385_v37 = vpop.permute.xlu2 %1384 }
0x190c   :  { %v1387_v63 = vadd.f32 %v1385_v37, %v1357_v44 }
0x190e   :  { %2180 = vtanh.f32 %v1387_v63 }
0x1914   :  { %v2181_v0 = vpop.eup %2180 }
0x1915   :  { %1391 = vrot.lane.b32.xlu0 %v2181_v0, %s2502_s7 }
0x191d   :  { %1455 = vrot.lane.b32.xlu0 %v1430_v39, %s2494_s27 }
0x1987   :  { %v1392_v11 = vpop.permute.xlu0 %1391 }
0x1988   :  { %v1394_v12 = vmul.f32 %v1392_v11, %v1389_v10 }
0x198a   :  { %v1400_v14 = vadd.f32 %v1399_v55, %v1394_v12 }
0x198c   :  { %v1401_v16 = vpack.c.bf16 %v1400_v14, %v1400_v14 }
0x198e   :  { %1403 = vrot.lane.b32.xlu2 %v1401_v16, %s2502_s7 }
0x198f   :  { %v1456_v36 = vpop.permute.xlu0 %1455 }
0x19e8   :  { %v1404_v5 = vpop.permute.xlu2 %1403 }
0x19e9   :  { %2054 = vmatmul.msk.bf16.vlgmr.msrb.gmra.mxu2 %vm287_vm1, %v1404_v5 }
0x19ea   :  { %1696 = vmatpush.bf16.msrb.mxu2 %v2862_v6 }
0x19ee   :  { %1697 = vmatpush.bf16.msrb.mxu2 %v2865_v8 }
0x1a6c   :  { %v1417_v17 = vpop.f32.mrf.mxu2 }
0x1a6d   :  { %v1434_v18 = vadd.f32 %v1430_v39, %v1417_v17 }
0x1a6f   :  { %v2056_v20 = vmul.f32 -1.442695, %v1434_v18 }
0x1a71   :  { %2182 = vpow2.f32 %v2056_v20 }
0x1a74   :  { %v1419_v21 = vpop.f32.mrf.mxu2 }
0x1a77   :  { %v2183_v60 = vpop.eup %2182 }
0x1a78   :  { %v1438_v22 = vadd.f32 1.0, %v2183_v60 }
0x1a7a   :  { %2184 = vrcp.f32 %v1438_v22  ;;  %v1450_v1 = vand.u32 2147483648, %v1438_v22  ;;  %v1448_v27 = vand.u32 2147483647, %v1438_v22  ;;  %vm1444_vm5 = vweird.f32 %v1438_v22 }
0x1a7c   :  { %v1451_v33 = vor.u32 1.1754944e-38, %v1450_v1  ;;  %vm1449_vm2 = vcmp.eq.f32.partialorder %v1448_v27, 8.507059e+37 }
0x1a80   :  { %v2185_v24 = vpop.eup %2184 }
0x1a81   :  { %v1440_v26 = vmul.f32 %v2185_v24, %v1438_v22  ;;  %vm1445_vm4 = vweird.f32 %v2185_v24 }
0x1a82   :  { %vm1446_vm0 = vmor %vm1444_vm5, %vm1445_vm4 }
0x1a83   :  { %v1441_v31 = vsub.f32 1.0, %v1440_v26 }
0x1a85   :  { %v1442_v34 = vmul.f32 %v2185_v24, %v1441_v31 }
0x1a87   :  { %v1443_v19 = vadd.f32 %v2185_v24, %v1442_v34 }
0x1a89   :  { %v1447_v35 = vsel %vm1446_vm0, %v2185_v24, %v1443_v19 }
0x1a8a   :  { %v1452_v30 = vsel %vm1449_vm2, %v1451_v33, %v1447_v35 }
0x1a8b   :  { %v1458_v32 = vmul.f32 %v1456_v36, %v1452_v30  ;;  %v1465_v13 = vsub.f32 1.0, %v1452_v30  ;;  %v1471_v15 = vmul.f32 %v1452_v30, %v2830_v3 }
0x1a8d   :  { %1460 = vrot.lane.b32.xlu1 %v1458_v32, %s2494_s27 }
0x1aff   :  { %v1461_v39 = vpop.permute.xlu1 %1460 }
0x1b00   :  { %v1463_v40 = vadd.f32 %v1461_v39, %v1417_v17 }
0x1b02   :  { %2186 = vtanh.f32 %v1463_v40 }
0x1b08   :  { %v2187_v41 = vpop.eup %2186 }
0x1b09   :  { %1467 = vrot.lane.b32.xlu2 %v2187_v41, %s2502_s7 }
0x1b63   :  { %v1468_v42 = vpop.permute.xlu2 %1467 }
0x1b64   :  { %v1470_v7 = vmul.f32 %v1468_v42, %v1465_v13 }
0x1b66   :  { %v2871_v44 = vadd.f32 %v1471_v15, %v1470_v7 }
0x1b68   :  { %v1473_v45 = vpack.c.bf16 %v2871_v44, %v2871_v44 }
0x1b6a   :  { %1475 = vrot.lane.b32.xlu0 %v1473_v45, %s2502_s7 }
0x1bdc   :  { %v1476_v9 = vpop.permute.xlu0 %1475 }
0x1bdd   :  { %2057 = vmatmul.msk.bf16.vlgmr.msrb.gmra.mxu0 %vm287_vm1, %v1476_v9 }
0x1bde   :  { %1808 = vmatpush.bf16.msrb.mxu0 %v2836_v28  ;;  %v2261_v28 = vld [vmem:[#allocation15] sm:$0xff] }
0x1be2   :  { %1809 = vmatpush.bf16.msrb.mxu0 %v2839_v29 }
0x1bed   :  { %2062 = vmatmul.msk.bf16.vlgmr.msra.gmra.mxu0 %vm287_vm1, %v1476_v9 }
0x1c5a   :  { %v1489_v47 = vpop.f32.mrf.mxu0 }
0x1c5b   :  { %v1503_v3 = vadd.f32 %v2855_v43, %v1489_v47 }
0x1c5d   :  { %2188 = vtanh.f32 %v1503_v3 }
0x1c62   :  { %v1491_v48 = vpop.f32.mrf.mxu0 }
0x1c63   :  { %v2881_v46 = vpop.eup %2188 }
0x1c64   :  { %v1536_v49 = vpack.c.bf16 %v2881_v46, %v2881_v46 }
0x1c66   :  { %2059 = vmatmul.msk.bf16.vlgmr.msra.gmra.mxu2 %vm287_vm1, %v1536_v49 }
0x1c67   :  { %1880 = vmatpush.bf16.msra.mxu2 %v2260_v50 }
0x1c6a   :  { %v1627_v52 = vpop.f32.mrf.mxu0 }
0x1c6b   :  { %1881 = vmatpush.bf16.msra.mxu2 %v2261_v28 }
0x1c72   :  { %v1629_v29 = vpop.f32.mrf.mxu0 }
0x1c76   :  { %2065 = vmatmul.msk.bf16.vlgmr.msrb.gmra.mxu2 %vm287_vm1, %v1536_v49 }
0x1ce9   :  { %v1549_v53 = vpop.f32.mrf.mxu2 }
0x1cea   :  { %1576 = vrot.lane.b32.xlu1 %v1549_v53, %s2494_s27  ;;  %v1555_v58 = vadd.f32 %v1554_v57, %v1549_v53 }
0x1cec   :  { %v2060_v59 = vmul.f32 -1.442695, %v1555_v58 }
0x1cee   :  { %2190 = vpow2.f32 %v2060_v59 }
0x1cf1   :  { %v1551_v43 = vpop.f32.mrf.mxu2 }
0x1cf2   :  { %1593 = vrot.lane.b32.xlu1 %v2881_v46, %s2503_s28 }
0x1cf4   :  { %v2191_v61 = vpop.eup %2190 }
0x1cf5   :  { %v1559_v62 = vadd.f32 1.0, %v2191_v61 }
0x1cf7   :  { %2192 = vrcp.f32 %v1559_v62  ;;  %v1571_v11 = vand.u32 2147483648, %v1559_v62  ;;  %vm1565_vm7 = vweird.f32 %v1559_v62  ;;  %v1569_v55 = vand.u32 2147483647, %v1559_v62 }
0x1cf9   :  { %v2890_v54 = vpop.f32.mrf.mxu2  ;;  %v1572_v14 = vor.u32 1.1754944e-38, %v1571_v11  ;;  %vm1570_vm9 = vcmp.eq.f32.partialorder %v1569_v55, 8.507059e+37 }
0x1cfd   :  { %v2193_v37 = vpop.eup %2192 }
0x1cfe   :  { %v1561_v63 = vmul.f32 %v2193_v37, %v1559_v62  ;;  %vm1566_vm6 = vweird.f32 %v2193_v37 }
0x1cff   :  { %vm1567_vm8 = vmor %vm1565_vm7, %vm1566_vm6 }
0x1d00   :  { %v1562_v0 = vsub.f32 1.0, %v1561_v63 }
0x1d01   :  { %v1701_v56 = vpop.f32.mrf.mxu2 }
0x1d02   :  { %v1563_v4 = vmul.f32 %v2193_v37, %v1562_v0 }
0x1d04   :  { %v1564_v10 = vadd.f32 %v2193_v37, %v1563_v4 }
0x1d06   :  { %v1568_v12 = vsel %vm1567_vm8, %v2193_v37, %v1564_v10  ;;  %v1751_v10 = vld [vmem:[#allocation2 + $0x38] sm:$0xff] }
0x1d07   :  { %v1573_v5 = vsel %vm1570_vm9, %v1572_v14, %v1568_v12 }
0x1d08   :  { %v1586_v22 = vsub.f32 1.0, %v1573_v5 }
0x1d5c   :  { %v1577_v16 = vpop.permute.xlu1 %1576 }
0x1d5d   :  { %v1579_v17 = vmul.f32 %v1577_v16, %v1573_v5 }
0x1d5f   :  { %1581 = vrot.lane.b32.xlu2 %v1579_v17, %s2494_s27 }
0x1d64   :  { %v1594_v60 = vpop.permute.xlu1 %1593 }
0x1d65   :  { %v1596_v26 = vmul.f32 %v1594_v60, %v1573_v5 }
0x1db9   :  { %v1582_v18 = vpop.permute.xlu2 %1581 }
0x1dba   :  { %v1584_v20 = vadd.f32 %v1582_v18, %v1554_v57 }
0x1dbc   :  { %2194 = vtanh.f32 %v1584_v20 }
0x1dc2   :  { %v2195_v21 = vpop.eup %2194 }
0x1dc3   :  { %1588 = vrot.lane.b32.xlu0 %v2195_v21, %s2502_s7 }
0x1dcb   :  { %1652 = vrot.lane.b32.xlu0 %v1627_v52, %s2494_s27 }
0x1e35   :  { %v1589_v24 = vpop.permute.xlu0 %1588 }
0x1e36   :  { %v1591_v31 = vmul.f32 %v1589_v24, %v1586_v22 }
0x1e38   :  { %v1597_v1 = vadd.f32 %v1596_v26, %v1591_v31 }
0x1e3a   :  { %v1598_v34 = vpack.c.bf16 %v1597_v1, %v1597_v1 }
0x1e3c   :  { %1600 = vrot.lane.b32.xlu2 %v1598_v34, %s2502_s7 }
0x1e3d   :  { %v1653_v45 = vpop.permute.xlu0 %1652 }
0x1e96   :  { %v1601_v27 = vpop.permute.xlu2 %1600 }
0x1e97   :  { %2061 = vmatmul.msk.bf16.vlgmr.msra.gmra.mxu3 %vm287_vm1, %v1601_v27 }
0x1e98   :  { %1893 = vmatpush.bf16.msra.mxu3 %v2862_v6 }
0x1e9c   :  { %1894 = vmatpush.bf16.msra.mxu3 %v2865_v8 }
0x1f1a   :  { %v1614_v19 = vpop.f32.mrf.mxu3 }
0x1f1b   :  { %v1631_v33 = vadd.f32 %v1627_v52, %v1614_v19 }
0x1f1d   :  { %v2063_v35 = vmul.f32 -1.442695, %v1631_v33 }
0x1f1f   :  { %2196 = vpow2.f32 %v2063_v35 }
0x1f22   :  { %v1616_v36 = vpop.f32.mrf.mxu3 }
0x1f25   :  { %v2197_v30 = vpop.eup %2196 }
0x1f26   :  { %v1635_v32 = vadd.f32 1.0, %v2197_v30 }
0x1f28   :  { %2198 = vrcp.f32 %v1635_v32  ;;  %v1647_v13 = vand.u32 2147483648, %v1635_v32  ;;  %v1645_v15 = vand.u32 2147483647, %v1635_v32  ;;  %vm1641_vm11 = vweird.f32 %v1635_v32 }
0x1f2a   :  { %v1648_v6 = vor.u32 1.1754944e-38, %v1647_v13  ;;  %vm1646_vm13 = vcmp.eq.f32.partialorder %v1645_v15, 8.507059e+37 }
0x1f2e   :  { %v2199_v39 = vpop.eup %2198 }
0x1f2f   :  { %v1637_v40 = vmul.f32 %v2199_v39, %v1635_v32  ;;  %vm1642_vm10 = vweird.f32 %v2199_v39 }
0x1f30   :  { %vm1643_vm12 = vmor %vm1641_vm11, %vm1642_vm10 }
0x1f31   :  { %v1638_v41 = vsub.f32 1.0, %v1637_v40 }
0x1f33   :  { %v1639_v42 = vmul.f32 %v2199_v39, %v1638_v41 }
0x1f35   :  { %v1640_v7 = vadd.f32 %v2199_v39, %v1639_v42 }
0x1f37   :  { %v1644_v8 = vsel %vm1643_vm12, %v2199_v39, %v1640_v7 }
0x1f38   :  { %v1649_v9 = vsel %vm1646_vm13, %v1648_v6, %v1644_v8 }
0x1f39   :  { %v1655_v47 = vmul.f32 %v1653_v45, %v1649_v9  ;;  %v1662_v50 = vsub.f32 1.0, %v1649_v9  ;;  %v1668_v28 = vmul.f32 %v1649_v9, %v2871_v44 }
0x1f3b   :  { %1657 = vrot.lane.b32.xlu1 %v1655_v47, %s2494_s27 }
0x1fad   :  { %v1658_v3 = vpop.permute.xlu1 %1657 }
0x1fae   :  { %v1660_v48 = vadd.f32 %v1658_v3, %v1614_v19 }
0x1fb0   :  { %2200 = vtanh.f32 %v1660_v48 }
0x1fb6   :  { %v2201_v49 = vpop.eup %2200 }
0x1fb7   :  { %1664 = vrot.lane.b32.xlu2 %v2201_v49, %s2502_s7 }
0x2011   :  { %v1665_v52 = vpop.permute.xlu2 %1664 }
0x2012   :  { %v1667_v29 = vmul.f32 %v1665_v52, %v1662_v50 }
0x2014   :  { %v2902_v53 = vadd.f32 %v1668_v28, %v1667_v29 }
0x2016   :  { %v1670_v43 = vpack.c.bf16 %v2902_v53, %v2902_v53 }
0x2018   :  { %1672 = vrot.lane.b32.xlu0 %v1670_v43, %s2502_s7 }
0x208a   :  { %v1673_v56 = vpop.permute.xlu0 %1672 }
0x208b   :  { %2064 = vmatmul.msk.bf16.vlgmr.msrb.gmra.mxu1 %vm287_vm1, %v1673_v56 }
0x209b   :  { %2069 = vmatmul.msk.bf16.vlgmr.msra.gmra.mxu1 %vm287_vm1, %v1673_v56 }
0x2108   :  { %v1686_v57 = vpop.f32.mrf.mxu1 }
0x2109   :  { %v1700_v58 = vadd.f32 %v2890_v54, %v1686_v57  ;;  %v510_v57 = vsel %vm287_vm1, %v2684_v23, 0.0 }
0x210b   :  { %2202 = vtanh.f32 %v1700_v58  ;;  %v916_v58 = vsel %vm287_vm1, %v2768_v2, 0.0 }
0x2110   :  { %v1688_v59 = vpop.f32.mrf.mxu1 }
0x2111   :  { %v2910_v61 = vpop.eup %2202 }
0x2112   :  { %v1733_v44 = vpack.c.bf16 %v2910_v61, %v2910_v61 }
0x2114   :  { %2066 = vmatmul.msk.bf16.vlgmr.msrb.gmra.mxu3 %vm287_vm1, %v1733_v44 }
0x2118   :  { %v1824_v62 = vpop.f32.mrf.mxu1 }
0x2120   :  { %v1826_v37 = vpop.f32.mrf.mxu1 }
0x2121   :  { %v2504_v37 = vmov 32.0  }
0x2124   :  { %2072 = vmatmul.msk.bf16.vlgmr.msra.gmra.mxu3 %vm287_vm1, %v1733_v44 }
0x2197   :  { %v1746_v63 = vpop.f32.mrf.mxu3 }
0x2198   :  { %1773 = vrot.lane.b32.xlu1 %v1746_v63, %s2494_s27  ;;  %v1752_v11 = vadd.f32 %v1751_v10, %v1746_v63 }
0x219a   :  { %v2067_v55 = vmul.f32 -1.442695, %v1752_v11 }
0x219c   :  { %2204 = vpow2.f32 %v2067_v55 }
0x219f   :  { %v1748_v0 = vpop.f32.mrf.mxu3 }
0x21a0   :  { %1790 = vrot.lane.b32.xlu1 %v2910_v61, %s2503_s28 }
0x21a2   :  { %v2205_v12 = vpop.eup %2204 }
0x21a3   :  { %v1756_v14 = vadd.f32 1.0, %v2205_v12 }
0x21a5   :  { %2206 = vrcp.f32 %v1756_v14  ;;  %v1768_v21 = vand.u32 2147483648, %v1756_v14  ;;  %vm1762_vm15 = vweird.f32 %v1756_v14  ;;  %v1766_v60 = vand.u32 2147483647, %v1756_v14 }
0x21a7   :  { %v2919_v54 = vpop.f32.mrf.mxu3  ;;  %v1769_v24 = vor.u32 1.1754944e-38, %v1768_v21  ;;  %vm1767_vm4 = vcmp.eq.f32.partialorder %v1766_v60, 8.507059e+37 }
0x21ab   :  { %v2207_v16 = vpop.eup %2206 }
0x21ac   :  { %v1758_v5 = vmul.f32 %v2207_v16, %v1756_v14  ;;  %vm1763_vm14 = vweird.f32 %v2207_v16 }
0x21ad   :  { %vm1764_vm3 = vmor %vm1762_vm15, %vm1763_vm14 }
0x21ae   :  { %v1759_v17 = vsub.f32 1.0, %v1758_v5 }
0x21af   :  { %v1898_v4 = vpop.f32.mrf.mxu3 }
0x21b0   :  { %v1760_v18 = vmul.f32 %v2207_v16, %v1759_v17 }
0x21b2   :  { %v1761_v20 = vadd.f32 %v2207_v16, %v1760_v18 }
0x21b4   :  { %v1765_v22 = vsel %vm1764_vm3, %v2207_v16, %v1761_v20 }
0x21b5   :  { %v1770_v31 = vsel %vm1767_vm4, %v1769_v24, %v1765_v22 }
0x21b6   :  { %v1783_v35 = vsub.f32 1.0, %v1770_v31 }
0x220a   :  { %v1774_v26 = vpop.permute.xlu1 %1773 }
0x220b   :  { %v1776_v1 = vmul.f32 %v1774_v26, %v1770_v31  ;;  %v719_v26 = vsel %vm287_vm1, %v2729_v51, 0.0 }
0x220d   :  { %1778 = vrot.lane.b32.xlu2 %v1776_v1, %s2494_s27 }
0x2212   :  { %v1791_v33 = vpop.permute.xlu1 %1790 }
0x2213   :  { %v1793_v30 = vmul.f32 %v1791_v33, %v1770_v31  ;;  %v1507_v31 = vsel %vm287_vm1, %v2881_v46, 0.0 }
0x2267   :  { %v1779_v34 = vpop.permute.xlu2 %1778 }
0x2268   :  { %v1781_v27 = vadd.f32 %v1779_v34, %v1751_v10 }
0x226a   :  { %2208 = vtanh.f32 %v1781_v27 }
0x2270   :  { %v2209_v19 = vpop.eup %2208 }
0x2271   :  { %1785 = vrot.lane.b32.xlu0 %v2209_v19, %s2502_s7 }
0x2279   :  { %1849 = vrot.lane.b32.xlu0 %v1824_v62, %s2494_s27 }
0x22e3   :  { %v1786_v36 = vpop.permute.xlu0 %1785 }
0x22e4   :  { %v1788_v32 = vmul.f32 %v1786_v36, %v1783_v35 }
0x22e6   :  { %v1794_v39 = vadd.f32 %v1793_v30, %v1788_v32 }
0x22e8   :  { %v1795_v40 = vpack.c.bf16 %v1794_v39, %v1794_v39 }
0x22ea   :  { %1797 = vrot.lane.b32.xlu2 %v1795_v40, %s2502_s7 }
0x22eb   :  { %v1850_v29 = vpop.permute.xlu0 %1849 }
0x2344   :  { %v1798_v41 = vpop.permute.xlu2 %1797 }
0x2345   :  { %2068 = vmatmul.msk.bf16.vlgmr.msrb.gmra.mxu0 %vm287_vm1, %v1798_v41 }
0x23c2   :  { %v1811_v13 = vpop.f32.mrf.mxu0 }
0x23c3   :  { %v1828_v42 = vadd.f32 %v1824_v62, %v1811_v13 }
0x23c5   :  { %v2070_v15 = vmul.f32 -1.442695, %v1828_v42 }
0x23c7   :  { %2210 = vpow2.f32 %v2070_v15 }
0x23ca   :  { %v1813_v7 = vpop.f32.mrf.mxu0 }
0x23cb   :  { %v2953_v7 = vld [vmem:[%s3060_s9] ss:$0 sm:$0xff] }
0x23cd   :  { %v2211_v6 = vpop.eup %2210 }
0x23ce   :  { %v1832_v8 = vadd.f32 1.0, %v2211_v6 }
0x23d0   :  { %2212 = vrcp.f32 %v1832_v8  ;;  %v1844_v3 = vand.u32 2147483648, %v1832_v8  ;;  %v1842_v49 = vand.u32 2147483647, %v1832_v8  ;;  %vm1838_vm0 = vweird.f32 %v1832_v8 }
0x23d2   :  { %v1845_v52 = vor.u32 1.1754944e-38, %v1844_v3  ;;  %vm1843_vm6 = vcmp.eq.f32.partialorder %v1842_v49, 8.507059e+37 }
0x23d6   :  { %v2213_v45 = vpop.eup %2212 }
0x23d7   :  { %v1834_v9 = vmul.f32 %v2213_v45, %v1832_v8  ;;  %vm1839_vm5 = vweird.f32 %v2213_v45 }
0x23d8   :  { %vm1840_vm2 = vmor %vm1838_vm0, %vm1839_vm5 }
0x23d9   :  { %v1835_v47 = vsub.f32 1.0, %v1834_v9 }
0x23db   :  { %v1836_v48 = vmul.f32 %v2213_v45, %v1835_v47 }
0x23dd   :  { %v1837_v50 = vadd.f32 %v2213_v45, %v1836_v48 }
0x23df   :  { %v1841_v28 = vsel %vm1840_vm2, %v2213_v45, %v1837_v50 }
0x23e0   :  { %v1846_v43 = vsel %vm1843_vm6, %v1845_v52, %v1841_v28 }
0x23e1   :  { %v1852_v56 = vmul.f32 %v1850_v29, %v1846_v43  ;;  %v1859_v18 = vsub.f32 1.0, %v1846_v43  ;;  %v1865_v21 = vmul.f32 %v1846_v43, %v2902_v53 }
0x23e3   :  { %1854 = vrot.lane.b32.xlu1 %v1852_v56, %s2494_s27 }
0x240d   :  { %511 = vadd.xlane.f32.xlu1 %v510_v57 }
0x2415   :  { %917 = vadd.xlane.f32.xlu1 %v916_v58 }
0x2455   :  { %v1855_v59 = vpop.permute.xlu1 %1854 }
0x2456   :  { %v1857_v44 = vadd.f32 %v1855_v59, %v1811_v13  ;;  %v2948_v13 = vld [vmem:[%s3059_s8] ss:$0 sm:$0xff]  ;;  %s2505_s8 = smov [#allocation17]  }
0x2457   :  { %s1934_s9 = sshll.u32 %s2505_s8, 4  ;;  %s1935_s9 = int_to_ptr.vmem [resolvable:$true] %s1934_s9 }
0x2458   :  { %2214 = vtanh.f32 %v1857_v44 }
0x2459   :  { %2216 = vrcp.f32 %v2504_v37  ;;  %v1310_v37 = vsel %vm287_vm1, %v2844_v38, 0.0 }
0x245e   :  { %v2215_v62 = vpop.eup %2214 }
0x245f   :  { %1861 = vrot.lane.b32.xlu2 %v2215_v62, %s2502_s7  ;;  %v2217_v63 = vpop.eup %2216 }
0x2460   :  { %v514_v0 = vmul.f32 32.0, %v2217_v63  ;;  %vm518_vm7 = vweird.f32 %v2217_v63 }
0x2462   :  { %v515_v4 = vsub.f32 1.0, %v514_v0 }
0x2464   :  { %v516_v10 = vmul.f32 %v2217_v63, %v515_v4 }
0x2466   :  { %v517_v11 = vadd.f32 %v2217_v63, %v516_v10 }
0x2468   :  { %v2932_v55 = vsel %vm518_vm7, %v2217_v63, %v517_v11 }
0x2480   :  { %v512_v12 = vpop.xlane.xlu1 %511 }
0x2481   :  { %v520_v14 = vmul.f32 %v2932_v55, %v512_v12 }
0x2483   :  { %v521_v16 = vsub.f32 %v2684_v23, %v520_v14  ;;  %v1113_v23 = vsel %vm287_vm1, %v2805_v25, 0.0 }
0x2485   :  { %v522_v5 = vmul.f32 %v521_v16, %v521_v16 }
0x2487   :  { %v523_v17 = vsel %vm287_vm1, %v522_v5, 0.0 }
0x2488   :  { %524 = vadd.xlane.f32.xlu2 %v523_v17  ;;  %v918_v9 = vpop.xlane.xlu1 %917 }
0x2489   :  { %v919_v48 = vmul.f32 %v918_v9, %v2932_v55 }
0x248b   :  { %v2967_v52 = vsub.f32 %v2768_v2, %v919_v48 }
0x248d   :  { %v921_v57 = vmul.f32 %v2967_v52, %v2967_v52 }
0x248f   :  { %v922_v2 = vsel %vm287_vm1, %v921_v57, 0.0 }
0x24b9   :  { %v1862_v20 = vpop.permute.xlu2 %1861 }
0x24ba   :  { %v1864_v60 = vmul.f32 %v1862_v20, %v1859_v18 }
0x24bc   :  { %v1866_v22 = vadd.f32 %v1865_v21, %v1864_v60 }
0x24be   :  { %v1867_v24 = vpack.c.bf16 %v1866_v22, %v1866_v22 }
0x24c0   :  { %1869 = vrot.lane.b32.xlu0 %v1867_v24, %s2502_s7 }
0x24ea   :  { %720 = vadd.xlane.f32.xlu0 %v719_v26 }
0x24f2   :  { %1114 = vadd.xlane.f32.xlu0 %v1113_v23 }
0x24fa   :  { %1508 = vadd.xlane.f32.xlu0 %v1507_v31 }
0x24fb   :  { %v525_v1 = vpop.xlane.xlu2 %524 }
0x24fc   :  { %v526_v34 = vmul.f32 0.032258064, %v525_v1 }
0x24fe   :  { %2218 = vrsqrt.f32 %v526_v34  ;;  %vm534_vm8 = vcmp.eq.f32.partialorder %v526_v34, inf  ;;  %v537_v32 = vand.u32 2147483648, %v526_v34  ;;  %vm536_vm9 = vcmp.eq.f32.partialorder %v526_v34, 0.0 }
0x2504   :  { %v2219_v53 = vpop.eup %2218 }
0x2505   :  { %v528_v27 = vmul.f32 %v2219_v53, %v526_v34 }
0x2507   :  { %v529_v19 = vmul.f32 %v2219_v53, %v528_v27 }
0x2509   :  { %v530_v33 = vmul.f32 0.5, %v529_v19 }
0x250b   :  { %v531_v35 = vsub.f32 1.5, %v530_v33 }
0x250d   :  { %v532_v36 = vmul.f32 %v2219_v53, %v531_v35 }
0x250f   :  { %v533_v30 = vmul.f32 %v532_v36, %v526_v34 }
0x2511   :  { %v535_v39 = vsel %vm534_vm8, %v526_v34, %v533_v30 }
0x2512   :  { %v538_v40 = vsel %vm536_vm9, %v537_v32, %v535_v39 }
0x2513   :  { %v539_v41 = vadd.f32 1e-06, %v538_v40 }
0x2515   :  { %2220 = vrcp.f32 %v539_v41 }
0x251b   :  { %v2221_v42 = vpop.eup %2220 }
0x251c   :  { %v541_v15 = vmul.f32 %v2221_v42, %v521_v16 }
0x251e   :  { %v545_v6 = vmul.f32 %v2948_v13, %v541_v15 }
0x2520   :  { %v549_v8 = vadd.f32 %v2953_v7, %v545_v6 }
0x2522   :  { %550 = vst.msk [vmem:[#allocation17] sm:$0xff] %vm287_vm1, %v549_v8 }
0x2532   :  { %v1870_v45 = vpop.permute.xlu0 %1869 }
0x2533   :  { %2071 = vmatmul.msk.bf16.vlgmr.msra.gmra.mxu2 %vm287_vm1, %v1870_v45 }
0x255d   :  { %v721_v47 = vpop.xlane.xlu0 %720 }
0x255e   :  { %v722_v3 = vmul.f32 %v721_v47, %v2932_v55 }
0x2560   :  { %v2962_v49 = vsub.f32 %v2729_v51, %v722_v3 }
0x2562   :  { %v724_v50 = vmul.f32 %v2962_v49, %v2962_v49 }
0x2564   :  { %v725_v28 = vsel %vm287_vm1, %v724_v50, 0.0 }
0x2565   :  { %v1115_v29 = vpop.xlane.xlu0 %1114  ;;  %726 = vadd.xlane.f32.xlu2 %v725_v28 }
0x2566   :  { %v1116_v43 = vmul.f32 %v1115_v29, %v2932_v55 }
0x2568   :  { %v2972_v56 = vsub.f32 %v2805_v25, %v1116_v43  ;;  %v1704_v25 = vsel %vm287_vm1, %v2910_v61, 0.0 }
0x256a   :  { %v1118_v51 = vmul.f32 %v2972_v56, %v2972_v56 }
0x256c   :  { %v1119_v58 = vsel %vm287_vm1, %v1118_v51, 0.0 }
0x256d   :  { %1120 = vadd.xlane.f32.xlu1 %v1119_v58  ;;  %v1509_v59 = vpop.xlane.xlu0 %1508  ;;  %923 = vadd.xlane.f32.xlu2 %v922_v2 }
0x256e   :  { %v1510_v44 = vmul.f32 %v1509_v59, %v2932_v55 }
0x2570   :  { %v2982_v62 = vsub.f32 %v2881_v46, %v1510_v44 }
0x2572   :  { %v1512_v63 = vmul.f32 %v2982_v62, %v2982_v62 }
0x2574   :  { %v1513_v0 = vsel %vm287_vm1, %v1512_v63, 0.0 }
0x2575   :  { %1705 = vadd.xlane.f32.xlu1 %v1704_v25  ;;  %1311 = vadd.xlane.f32.xlu2 %v1310_v37 }
0x257d   :  { %1514 = vadd.xlane.f32.xlu1 %v1513_v0 }
0x25b6   :  { %v1883_v4 = vpop.f32.mrf.mxu2 }
0x25b7   :  { %v1897_v10 = vadd.f32 %v2919_v54, %v1883_v4 }
0x25b9   :  { %2222 = vtanh.f32 %v1897_v10 }
0x25be   :  { %v1885_v46 = vpop.f32.mrf.mxu2 }
0x25bf   :  { %v2992_v11 = vpop.eup %2222 }
0x25c0   :  { %v1901_v12 = vsel %vm287_vm1, %v2992_v11, 0.0 }
0x25c1   :  { %1902 = vadd.xlane.f32.xlu2 %v1901_v12 }
0x25d8   :  { %v727_v14 = vpop.xlane.xlu2 %726 }
0x25d9   :  { %v728_v16 = vmul.f32 0.032258064, %v727_v14 }
0x25db   :  { %2224 = vrsqrt.f32 %v728_v16  ;;  %vm736_vm10 = vcmp.eq.f32.partialorder %v728_v16, inf  ;;  %v739_v39 = vand.u32 2147483648, %v728_v16  ;;  %vm738_vm11 = vcmp.eq.f32.partialorder %v728_v16, 0.0 }
0x25e0   :  { %v924_v5 = vpop.xlane.xlu2 %923  ;;  %v1121_v17 = vpop.xlane.xlu1 %1120 }
0x25e1   :  { %v2225_v18 = vpop.eup %2224  ;;  %v925_v20 = vmul.f32 0.032258064, %v924_v5  ;;  %v1122_v21 = vmul.f32 0.032258064, %v1121_v17 }
0x25e2   :  { %v730_v60 = vmul.f32 %v2225_v18, %v728_v16 }
0x25e3   :  { %2226 = vrsqrt.f32 %v925_v20  ;;  %vm933_vm12 = vcmp.eq.f32.partialorder %v925_v20, inf  ;;  %v936_v57 = vand.u32 2147483648, %v925_v20  ;;  %vm935_vm13 = vcmp.eq.f32.partialorder %v925_v20, 0.0 }
0x25e4   :  { %v731_v22 = vmul.f32 %v2225_v18, %v730_v60  ;;  %2228 = vrsqrt.f32 %v1122_v21  ;;  %vm1130_vm14 = vcmp.eq.f32.partialorder %v1122_v21, inf  ;;  %v1133_v2 = vand.u32 2147483648, %v1122_v21 }
0x25e5   :  { %vm1132_vm15 = vcmp.eq.f32.partialorder %v1122_v21, 0.0 }
0x25e6   :  { %v732_v54 = vmul.f32 0.5, %v731_v22 }
0x25e8   :  { %v733_v24 = vsub.f32 1.5, %v732_v54  ;;  %v1312_v26 = vpop.xlane.xlu2 %1311  ;;  %v1706_v23 = vpop.xlane.xlu1 %1705 }
0x25e9   :  { %v2227_v31 = vpop.eup %2226  ;;  %v1313_v1 = vmul.f32 %v1312_v26, %v2932_v55  ;;  %v1707_v34 = vmul.f32 %v1706_v23, %v2932_v55 }
0x25ea   :  { %v2229_v53 = vpop.eup %2228  ;;  %v734_v27 = vmul.f32 %v2225_v18, %v733_v24  ;;  %v927_v19 = vmul.f32 %v2227_v31, %v925_v20 }
0x25eb   :  { %v1124_v33 = vmul.f32 %v2229_v53, %v1122_v21  ;;  %v2999_v35 = vsub.f32 %v2844_v38, %v1313_v1  ;;  %v3002_v36 = vsub.f32 %v2910_v61, %v1707_v34 }
0x25ec   :  { %v735_v30 = vmul.f32 %v734_v27, %v728_v16  ;;  %v928_v32 = vmul.f32 %v2227_v31, %v927_v19 }
0x25ed   :  { %v1125_v40 = vmul.f32 %v2229_v53, %v1124_v33  ;;  %v1315_v41 = vmul.f32 %v2999_v35, %v2999_v35  ;;  %v1709_v42 = vmul.f32 %v3002_v36, %v3002_v36 }
0x25ee   :  { %v737_v15 = vsel %vm736_vm10, %v728_v16, %v735_v30  ;;  %v929_v6 = vmul.f32 0.5, %v928_v32 }
0x25ef   :  { %v740_v8 = vsel %vm738_vm11, %v739_v39, %v737_v15  ;;  %v1126_v38 = vmul.f32 0.5, %v1125_v40  ;;  %v1316_v45 = vsel %vm287_vm1, %v1315_v41, 0.0  ;;  %v1710_v61 = vsel %vm287_vm1, %v1709_v42, 0.0 }
0x25f0   :  { %v741_v9 = vadd.f32 1e-06, %v740_v8  ;;  %v930_v47 = vsub.f32 1.5, %v929_v6  ;;  %1317 = vadd.xlane.f32.xlu0 %v1316_v45  ;;  %1711 = vadd.xlane.f32.xlu2 %v1710_v61  ;;  %v1515_v3 = vpop.xlane.xlu1 %1514 }
0x25f1   :  { %v1127_v48 = vsub.f32 1.5, %v1126_v38  ;;  %v1516_v50 = vmul.f32 0.032258064, %v1515_v3 }
0x25f2   :  { %2230 = vrcp.f32 %v741_v9  ;;  %v931_v28 = vmul.f32 %v2227_v31, %v930_v47 }
0x25f3   :  { %v1128_v29 = vmul.f32 %v2229_v53, %v1127_v48  ;;  %2232 = vrsqrt.f32 %v1516_v50  ;;  %vm1524_vm3 = vcmp.eq.f32.partialorder %v1516_v50, inf  ;;  %v1527_v26 = vand.u32 2147483648, %v1516_v50 }
0x25f4   :  { %v932_v43 = vmul.f32 %v931_v28, %v925_v20  ;;  %vm1526_vm4 = vcmp.eq.f32.partialorder %v1516_v50, 0.0 }
0x25f5   :  { %v1129_v51 = vmul.f32 %v1128_v29, %v1122_v21 }
0x25f6   :  { %v934_v58 = vsel %vm933_vm12, %v925_v20, %v932_v43 }
0x25f7   :  { %v937_v59 = vsel %vm935_vm13, %v936_v57, %v934_v58  ;;  %v1131_v44 = vsel %vm1130_vm14, %v1122_v21, %v1129_v51 }
0x25f8   :  { %v2231_v25 = vpop.eup %2230  ;;  %v938_v37 = vadd.f32 1e-06, %v937_v59  ;;  %v1134_v63 = vsel %vm1132_vm15, %v1133_v2, %v1131_v44 }
0x25f9   :  { %v2233_v0 = vpop.eup %2232  ;;  %v743_v4 = vmul.f32 %v2231_v25, %v2962_v49  ;;  %v1135_v10 = vadd.f32 1e-06, %v1134_v63 }
0x25fa   :  { %2234 = vrcp.f32 %v938_v37  ;;  %v1518_v46 = vmul.f32 %v2233_v0, %v1516_v50 }
0x25fb   :  { %2236 = vrcp.f32 %v1135_v10  ;;  %v744_v12 = vmul.f32 %v2948_v13, %v743_v4 }
0x25fc   :  { %v1519_v14 = vmul.f32 %v2233_v0, %v1518_v46 }
0x25fd   :  { %v745_v16 = vadd.f32 %v2953_v7, %v744_v12 }
0x25fe   :  { %v1520_v5 = vmul.f32 0.5, %v1519_v14 }
0x25ff   :  { %747 = vst.msk [vmem:[#allocation17 + $0x8] sm:$0xff] %vm287_vm1, %v745_v16 }
0x2600   :  { %v2235_v17 = vpop.eup %2234  ;;  %v1521_v18 = vsub.f32 1.5, %v1520_v5 }
0x2601   :  { %v2237_v20 = vpop.eup %2236  ;;  %v940_v21 = vmul.f32 %v2235_v17, %v2967_v52 }
0x2602   :  { %v1137_v60 = vmul.f32 %v2237_v20, %v2972_v56  ;;  %v1522_v49 = vmul.f32 %v2233_v0, %v1521_v18 }
0x2603   :  { %v941_v22 = vmul.f32 %v2948_v13, %v940_v21 }
0x2604   :  { %v1523_v54 = vmul.f32 %v1522_v49, %v1516_v50  ;;  %v1138_v24 = vmul.f32 %v2948_v13, %v1137_v60 }
0x2605   :  { %v942_v23 = vadd.f32 %v2953_v7, %v941_v22 }
0x2606   :  { %v1525_v31 = vsel %vm1524_vm3, %v1516_v50, %v1523_v54  ;;  %v1139_v1 = vadd.f32 %v2953_v7, %v1138_v24 }
0x2607   :  { %v1528_v34 = vsel %vm1526_vm4, %v1527_v26, %v1525_v31  ;;  %944 = vst.msk [vmem:[#allocation17 + $0x10] sm:$0xff] %vm287_vm1, %v942_v23 }
0x2608   :  { %v1529_v52 = vadd.f32 1e-06, %v1528_v34  ;;  %1141 = vst.msk [vmem:[#allocation17 + $0x18] sm:$0xff] %vm287_vm1, %v1139_v1 }
0x260a   :  { %2238 = vrcp.f32 %v1529_v52 }
0x2610   :  { %v2239_v56 = vpop.eup %2238 }
0x2611   :  { %v1531_v53 = vmul.f32 %v2239_v56, %v2982_v62 }
0x2613   :  { %v1532_v27 = vmul.f32 %v2948_v13, %v1531_v53 }
0x2615   :  { %v1533_v19 = vadd.f32 %v2953_v7, %v1532_v27 }
0x2617   :  { %1535 = vst.msk [vmem:[#allocation17 + $0x28] sm:$0xff] %vm287_vm1, %v1533_v19 }
0x2634   :  { %v1903_v33 = vpop.xlane.xlu2 %1902 }
0x2635   :  { %v1904_v30 = vmul.f32 %v1903_v33, %v2932_v55 }
0x2637   :  { %v3028_v32 = vsub.f32 %v2992_v11, %v1904_v30 }
0x2639   :  { %v1906_v39 = vmul.f32 %v3028_v32, %v3028_v32 }
0x263b   :  { %v1907_v40 = vsel %vm287_vm1, %v1906_v39, 0.0 }
0x263c   :  { %1908 = vadd.xlane.f32.xlu0 %v1907_v40 }
0x2663   :  { %v1318_v41 = vpop.xlane.xlu0 %1317  ;;  %v1712_v62 = vpop.xlane.xlu2 %1711 }
0x2664   :  { %v1319_v42 = vmul.f32 0.032258064, %v1318_v41  ;;  %v1713_v15 = vmul.f32 0.032258064, %v1712_v62 }
0x2666   :  { %2240 = vrsqrt.f32 %v1319_v42  ;;  %vm1327_vm5 = vcmp.eq.f32.partialorder %v1319_v42, inf  ;;  %v1330_v29 = vand.u32 2147483648, %v1319_v42  ;;  %vm1329_vm0 = vcmp.eq.f32.partialorder %v1319_v42, 0.0 }
0x2667   :  { %2242 = vrsqrt.f32 %v1713_v15  ;;  %vm1721_vm2 = vcmp.eq.f32.partialorder %v1713_v15, inf  ;;  %v1724_v51 = vand.u32 2147483648, %v1713_v15  ;;  %vm1723_vm6 = vcmp.eq.f32.partialorder %v1713_v15, 0.0 }
0x266c   :  { %v2241_v6 = vpop.eup %2240 }
0x266d   :  { %v2243_v8 = vpop.eup %2242  ;;  %v1321_v38 = vmul.f32 %v2241_v6, %v1319_v42 }
0x266e   :  { %v1715_v45 = vmul.f32 %v2243_v8, %v1713_v15 }
0x266f   :  { %v1322_v55 = vmul.f32 %v2241_v6, %v1321_v38 }
0x2670   :  { %v1716_v61 = vmul.f32 %v2243_v8, %v1715_v45 }
0x2671   :  { %v1323_v11 = vmul.f32 0.5, %v1322_v55 }
0x2672   :  { %v1717_v9 = vmul.f32 0.5, %v1716_v61 }
0x2673   :  { %v1324_v47 = vsub.f32 1.5, %v1323_v11 }
0x2674   :  { %v1718_v3 = vsub.f32 1.5, %v1717_v9 }
0x2675   :  { %v1325_v48 = vmul.f32 %v2241_v6, %v1324_v47 }
0x2676   :  { %v1719_v50 = vmul.f32 %v2243_v8, %v1718_v3 }
0x2677   :  { %v1326_v28 = vmul.f32 %v1325_v48, %v1319_v42 }
0x2678   :  { %v1720_v43 = vmul.f32 %v1719_v50, %v1713_v15 }
0x2679   :  { %v1328_v57 = vsel %vm1327_vm5, %v1319_v42, %v1326_v28 }
0x267a   :  { %v1331_v58 = vsel %vm1329_vm0, %v1330_v29, %v1328_v57  ;;  %v1722_v2 = vsel %vm1721_vm2, %v1713_v15, %v1720_v43 }
0x267b   :  { %v1332_v59 = vadd.f32 1e-06, %v1331_v58  ;;  %v1725_v44 = vsel %vm1723_vm6, %v1724_v51, %v1722_v2 }
0x267c   :  { %v1726_v25 = vadd.f32 1e-06, %v1725_v44 }
0x267d   :  { %2244 = vrcp.f32 %v1332_v59 }
0x267e   :  { %2246 = vrcp.f32 %v1726_v25 }
0x2683   :  { %v2245_v37 = vpop.eup %2244 }
0x2684   :  { %v2247_v63 = vpop.eup %2246  ;;  %v1334_v0 = vmul.f32 %v2245_v37, %v2999_v35 }
0x2685   :  { %v1728_v4 = vmul.f32 %v2247_v63, %v3002_v36 }
0x2686   :  { %v1335_v10 = vmul.f32 %v2948_v13, %v1334_v0 }
0x2687   :  { %v1729_v46 = vmul.f32 %v2948_v13, %v1728_v4 }
0x2688   :  { %v1336_v12 = vadd.f32 %v2953_v7, %v1335_v10 }
0x2689   :  { %v1730_v14 = vadd.f32 %v2953_v7, %v1729_v46 }
0x268a   :  { %1338 = vst.msk [vmem:[#allocation17 + $0x20] sm:$0xff] %vm287_vm1, %v1336_v12 }
0x268b   :  { %1732 = vst.msk [vmem:[#allocation17 + $0x30] sm:$0xff] %vm287_vm1, %v1730_v14 }
0x26af   :  { %v1909_v16 = vpop.xlane.xlu0 %1908 }
0x26b0   :  { %v1910_v5 = vmul.f32 0.032258064, %v1909_v16 }
0x26b2   :  { %2248 = vrsqrt.f32 %v1910_v5  ;;  %vm1918_vm7 = vcmp.eq.f32.partialorder %v1910_v5, inf  ;;  %v1921_v49 = vand.u32 2147483648, %v1910_v5  ;;  %vm1920_vm8 = vcmp.eq.f32.partialorder %v1910_v5, 0.0 }
0x26b8   :  { %v2249_v17 = vpop.eup %2248 }
0x26b9   :  { %v1912_v18 = vmul.f32 %v2249_v17, %v1910_v5 }
0x26bb   :  { %v1913_v35 = vmul.f32 %v2249_v17, %v1912_v18 }
0x26bd   :  { %v1914_v20 = vmul.f32 0.5, %v1913_v35 }
0x26bf   :  { %v1915_v36 = vsub.f32 1.5, %v1914_v20 }
0x26c1   :  { %v1916_v21 = vmul.f32 %v2249_v17, %v1915_v36 }
0x26c3   :  { %v1917_v60 = vmul.f32 %v1916_v21, %v1910_v5 }
0x26c5   :  { %v1919_v22 = vsel %vm1918_vm7, %v1910_v5, %v1917_v60 }
0x26c6   :  { %v1922_v54 = vsel %vm1920_vm8, %v1921_v49, %v1919_v22 }
0x26c7   :  { %v1923_v24 = vadd.f32 1e-06, %v1922_v54 }
0x26c9   :  { %2250 = vrcp.f32 %v1923_v24 }
0x26cf   :  { %v2251_v26 = vpop.eup %2250 }
0x26d0   :  { %v1925_v23 = vmul.f32 %v2251_v26, %v3028_v32 }
0x26d2   :  { %v1926_v31 = vmul.f32 %v2948_v13, %v1925_v23 }
0x26d4   :  { %v1927_v1 = vadd.f32 %v2953_v7, %v1926_v31 }
0x26d6   :  { %1929 = vst.msk [vmem:[#allocation17 + $0x38] sm:$0xff] %vm287_vm1, %v1927_v1 }
0x26d7   :  { %1942 = dma.vmem_to_hbm [thread:$0]  %s1935_s9, 1024, %s1937_s16, [#allocation5], %s2491_s18, %s2491_s18, %s2492_s19  }
0x26d8   :  { %2488 = dma.done.wait [#allocation5], 1024  }
0x26d9   :  { %2489 = vsyncadd [#allocation5], 4294966272 }
0x26da   :  { %1947 = vsyncpa [#allocation4], 1 }
0x26db   :  { %1948 = vsyncpa [#allocation7], 1 }
0x26dc   :  { %1949 = vsyncpa [#allocation10], 1 }
0x26dd   :  { %1950 = vsyncpa [#allocation13], 1 }
0x26de   :  { %1951 = vsyncpa [#allocation16], 1 }
0x26df   :  { %1952 = vsyncpa [#allocation5], 1 }

</bundles_post_ra>
